<compile_context>
chip_gen: v7x
topology: tpu7x:2x2x1
jax: 0.10.0
libtpu: 0.0.40
codegen_flags: <defaults>
</compile_context>

<pallas_src>
import jax
import jax.numpy as jnp
from jax.experimental import pallas as pl
from jax.experimental.pallas import tpu as pltpu

K_IN = 28 * 28        # 784
K_PAD = 896           # 7 * 128 : padded contraction dim of first matmul
H = 512               # hidden width
N_OUT = 10            # logits
N_PAD = 128           # lane-dense padded output width
TB = 256              # batch tile (rows per grid step)


def mlp_kernel(x_ref, w1_ref, b1_ref, w2_ref, b2_ref, w3_ref, b3_ref, o_ref):
    # hidden1 = relu(x @ W1 + b1)   (bf16 operands, f32 accumulation)
    h1 = jnp.dot(x_ref[...], w1_ref[...], preferred_element_type=jnp.float32)
    h1 = jnp.maximum(h1 + b1_ref[...], 0.0).astype(jnp.bfloat16)
    # hidden2 = relu(h1 @ W2 + b2)
    h2 = jnp.dot(h1, w2_ref[...], preferred_element_type=jnp.float32)
    h2 = jnp.maximum(h2 + b2_ref[...], 0.0).astype(jnp.bfloat16)
    # logits = h2 @ W3 + b3   (lane-dense 128-wide store; cols 10..127 are zero)
    logits = jnp.dot(h2, w3_ref[...], preferred_element_type=jnp.float32)
    o_ref[...] = (logits + b3_ref[...]).astype(o_ref.dtype)


def neural_network_forward(x_nchw, params, tb=TB):
    """x_nchw: (B, 1, 28, 28) float32 (NCHW like torch). Returns logits (B, 10)."""
    w1, b1, w2, b2, w3, b3 = params
    B = x_nchw.shape[0]
    x_flat = x_nchw.reshape(B, K_IN)  # nn.Flatten()

    # --- zero-padding for MXU/lane alignment (done once, outside the kernel) ---
    b_pad = max(tb, ((B + tb - 1) // tb) * tb)
    x_p = jnp.zeros((b_pad, K_PAD), jnp.bfloat16)
    x_p = x_p.at[:B, :K_IN].set(x_flat.astype(jnp.bfloat16))

    w1_p = jnp.zeros((K_PAD, H), jnp.bfloat16).at[:K_IN, :].set(w1.astype(jnp.bfloat16))
    w2_b = w2.astype(jnp.bfloat16)
    w3_p = jnp.zeros((H, N_PAD), jnp.bfloat16).at[:, :N_OUT].set(w3.astype(jnp.bfloat16))

    b1_f = b1.astype(jnp.float32)
    b2_f = b2.astype(jnp.float32)
    b3_p = jnp.zeros((1, N_PAD), jnp.float32).at[:, :N_OUT].set(b3.astype(jnp.float32))

    grid = (b_pad // tb,)

    in_specs = [
        pl.BlockSpec((tb, K_PAD), lambda i: (i, 0)),   # x: batch-tiled
        pl.BlockSpec((K_PAD, H), lambda i: (0, 0)),    # W1: resident across steps
        pl.BlockSpec((1, H), lambda i: (0, 0)),        # b1
        pl.BlockSpec((H, H), lambda i: (0, 0)),        # W2
        pl.BlockSpec((1, H), lambda i: (0, 0)),        # b2
        pl.BlockSpec((H, N_PAD), lambda i: (0, 0)),    # W3 (padded to 128 cols)
        pl.BlockSpec((1, N_PAD), lambda i: (0, 0)),    # b3 (padded)
    ]
    out_spec = pl.BlockSpec((tb, N_PAD), lambda i: (i, 0))

    logits_pad = pl.pallas_call(
        mlp_kernel,
        out_shape=jax.ShapeDtypeStruct((b_pad, N_PAD), jnp.float32),
        grid_spec=pltpu.PrefetchScalarGridSpec(
            num_scalar_prefetch=0,
            grid=grid,
            in_specs=in_specs,
            out_specs=out_spec,
        ),
        compiler_params=pltpu.CompilerParams(
            dimension_semantics=("parallel",),   # v7x: shard batch tiles across 2 TCs
            vmem_limit_bytes=32 << 20,
        ),
    )(x_p, w1_p, b1_f, w2_b, b2_f, w3_p, b3_p)

    return logits_pad[:B, :N_OUT]


def init_params(key):
    """Deterministic init mimicking torch.nn.Linear shapes.

    torch stores weight as (out, in); we store the transpose (in, out) so the
    kernel does x @ W + b directly.
    """
    dims = [(K_IN, H), (H, H), (H, N_OUT)]
    params = []
    for fan_in, fan_out in dims:
        kw, kb, key = jax.random.split(key, 3)
        bound = 1.0 / jnp.sqrt(fan_in)
        w = jax.random.uniform(kw, (fan_in, fan_out), jnp.float32, -bound, bound)
        b = jax.random.uniform(kb, (1, fan_out), jnp.float32, -bound, bound)
        params += [w, b]
    return tuple(params)


if __name__ == "__main__":
    key = jax.random.PRNGKey(0)
    kx, kp = jax.random.split(key)

    B = 2
    x = jax.random.normal(kx, (B, 1, 28, 28), dtype=jnp.float32)  # NCHW like torch
    params = init_params(kp)

    logits = neural_network_forward(x, params)
    logits = jax.block_until_ready(logits)

    # reference check in plain JAX (f32); kernel uses bf16 operands w/ f32 accum,
    # so allow ~1e-2-level deviation.
    w1, b1, w2, b2, w3, b3 = params
    xf = x.reshape(B, -1)
    ref = jnp.maximum(xf @ w1 + b1, 0.0)
    ref = jnp.maximum(ref @ w2 + b2, 0.0)
    ref = ref @ w3 + b3

    assert logits.shape == (B, N_OUT)
    assert jnp.allclose(logits, ref, atol=7.5e-2, rtol=7.5e-2), (
        f"max abs err {jnp.max(jnp.abs(logits - ref))}"
    )

    print("KERNEL_OK")
</pallas_src>

<mosaic_0001>
module attributes {stable_mosaic.version = 11 : i64} {
  func.func @mlp_kernel(%arg0: i32, %arg1: memref<256x896xbf16, #tpu.memory_space<vmem>>, %arg2: memref<896x512xbf16, #tpu.memory_space<vmem>>, %arg3: memref<1x512xf32, #tpu.memory_space<vmem>>, %arg4: memref<512x512xbf16, #tpu.memory_space<vmem>>, %arg5: memref<1x512xf32, #tpu.memory_space<vmem>>, %arg6: memref<512x128xbf16, #tpu.memory_space<vmem>>, %arg7: memref<1x128xf32, #tpu.memory_space<vmem>>, %arg8: memref<256x128xf32, #tpu.memory_space<vmem>>) attributes {dimension_semantics = [#tpu.dimension_semantics<parallel>], iteration_bounds = array<i64: 1>, scalar_prefetch = 0 : i64, scratch_operands = 0 : i64, tpu.core_type = #tpu.core_type<tc>, window_params = [{transform_indices = @transform_0, window_bounds = array<i64: 256, 896>}, {pipeline_mode = #tpu.pipeline_mode<synchronous>, transform_indices = @transform_1, window_bounds = array<i64: 896, 512>}, {pipeline_mode = #tpu.pipeline_mode<synchronous>, transform_indices = @transform_2, window_bounds = array<i64: 1, 512>}, {pipeline_mode = #tpu.pipeline_mode<synchronous>, transform_indices = @transform_3, window_bounds = array<i64: 512, 512>}, {pipeline_mode = #tpu.pipeline_mode<synchronous>, transform_indices = @transform_4, window_bounds = array<i64: 1, 512>}, {pipeline_mode = #tpu.pipeline_mode<synchronous>, transform_indices = @transform_5, window_bounds = array<i64: 512, 128>}, {pipeline_mode = #tpu.pipeline_mode<synchronous>, transform_indices = @transform_6, window_bounds = array<i64: 1, 128>}, {transform_indices = @transform_7, window_bounds = array<i64: 256, 128>}]} {
    %c0 = arith.constant 0 : index
    %c0_0 = arith.constant 0 : index
    %0 = vector.load %arg1[%c0, %c0_0] : memref<256x896xbf16, #tpu.memory_space<vmem>>, vector<256x896xbf16>
    %c0_1 = arith.constant 0 : index
    %c0_2 = arith.constant 0 : index
    %1 = vector.load %arg2[%c0_1, %c0_2] : memref<896x512xbf16, #tpu.memory_space<vmem>>, vector<896x512xbf16>
    %cst = arith.constant dense<0.000000e+00> : vector<256x512xf32>
    %2 = tpu.matmul %0, %1, %cst {dimension_numbers = #tpu.dot_dimension_numbers<[1], [0], [0], [1], [0, 0, 1, 1], [], []>} : vector<256x896xbf16>, vector<896x512xbf16>, vector<256x512xf32> -> vector<256x512xf32>
    %c0_3 = arith.constant 0 : index
    %c0_4 = arith.constant 0 : index
    %3 = vector.load %arg3[%c0_3, %c0_4] : memref<1x512xf32, #tpu.memory_space<vmem>>, vector<1x512xf32>
    %4 = vector.broadcast %3 : vector<1x512xf32> to vector<256x512xf32>
    %5 = arith.addf %2, %4 : vector<256x512xf32>
    %cst_5 = arith.constant 0.000000e+00 : f32
    %6 = vector.broadcast %cst_5 : f32 to vector<256x512xf32>
    %7 = arith.maximumf %5, %6 : vector<256x512xf32>
    %8 = arith.truncf %7 : vector<256x512xf32> to vector<256x512xbf16>
    %c0_6 = arith.constant 0 : index
    %c0_7 = arith.constant 0 : index
    %9 = vector.load %arg4[%c0_6, %c0_7] : memref<512x512xbf16, #tpu.memory_space<vmem>>, vector<512x512xbf16>
    %cst_8 = arith.constant dense<0.000000e+00> : vector<256x512xf32>
    %10 = tpu.matmul %8, %9, %cst_8 {dimension_numbers = #tpu.dot_dimension_numbers<[1], [0], [0], [1], [0, 0, 1, 1], [], []>} : vector<256x512xbf16>, vector<512x512xbf16>, vector<256x512xf32> -> vector<256x512xf32>
    %c0_9 = arith.constant 0 : index
    %c0_10 = arith.constant 0 : index
    %11 = vector.load %arg5[%c0_9, %c0_10] : memref<1x512xf32, #tpu.memory_space<vmem>>, vector<1x512xf32>
    %12 = vector.broadcast %11 : vector<1x512xf32> to vector<256x512xf32>
    %13 = arith.addf %10, %12 : vector<256x512xf32>
    %cst_11 = arith.constant 0.000000e+00 : f32
    %14 = vector.broadcast %cst_11 : f32 to vector<256x512xf32>
    %15 = arith.maximumf %13, %14 : vector<256x512xf32>
    %16 = arith.truncf %15 : vector<256x512xf32> to vector<256x512xbf16>
    %c0_12 = arith.constant 0 : index
    %c0_13 = arith.constant 0 : index
    %17 = vector.load %arg6[%c0_12, %c0_13] : memref<512x128xbf16, #tpu.memory_space<vmem>>, vector<512x128xbf16>
    %cst_14 = arith.constant dense<0.000000e+00> : vector<256x128xf32>
    %18 = tpu.matmul %16, %17, %cst_14 {dimension_numbers = #tpu.dot_dimension_numbers<[1], [0], [0], [1], [0, 0, 1, 1], [], []>} : vector<256x512xbf16>, vector<512x128xbf16>, vector<256x128xf32> -> vector<256x128xf32>
    %c0_15 = arith.constant 0 : index
    %c0_16 = arith.constant 0 : index
    %19 = vector.load %arg7[%c0_15, %c0_16] : memref<1x128xf32, #tpu.memory_space<vmem>>, vector<1x128xf32>
    %20 = vector.broadcast %19 : vector<1x128xf32> to vector<256x128xf32>
    %21 = arith.addf %18, %20 : vector<256x128xf32>
    %c0_17 = arith.constant 0 : index
    %c0_18 = arith.constant 0 : index
    %22 = vector.load %arg8[%c0_17, %c0_18] : memref<256x128xf32, #tpu.memory_space<vmem>>, vector<256x128xf32>
    tpu.vector_store %arg8[%c0_17, %c0_18], %21 {strides = array<i32>} : memref<256x128xf32, #tpu.memory_space<vmem>>, vector<256x128xf32>,
    return
  }
  func.func @transform_0(%arg0: i32) -> (i32, i32) {
    %c0_i32 = arith.constant 0 : i32
    %c0_i32_0 = arith.constant 0 : i32
    return %arg0, %c0_i32 : i32, i32
  }
  func.func @transform_1(%arg0: i32) -> (i32, i32) {
    %c0_i32 = arith.constant 0 : i32
    %c0_i32_0 = arith.constant 0 : i32
    %c0_i32_1 = arith.constant 0 : i32
    return %c0_i32, %c0_i32_0 : i32, i32
  }
  func.func @transform_2(%arg0: i32) -> (i32, i32) {
    %c0_i32 = arith.constant 0 : i32
    %c0_i32_0 = arith.constant 0 : i32
    %c0_i32_1 = arith.constant 0 : i32
    return %c0_i32, %c0_i32_0 : i32, i32
  }
  func.func @transform_3(%arg0: i32) -> (i32, i32) {
    %c0_i32 = arith.constant 0 : i32
    %c0_i32_0 = arith.constant 0 : i32
    %c0_i32_1 = arith.constant 0 : i32
    return %c0_i32, %c0_i32_0 : i32, i32
  }
  func.func @transform_4(%arg0: i32) -> (i32, i32) {
    %c0_i32 = arith.constant 0 : i32
    %c0_i32_0 = arith.constant 0 : i32
    %c0_i32_1 = arith.constant 0 : i32
    return %c0_i32, %c0_i32_0 : i32, i32
  }
  func.func @transform_5(%arg0: i32) -> (i32, i32) {
    %c0_i32 = arith.constant 0 : i32
    %c0_i32_0 = arith.constant 0 : i32
    %c0_i32_1 = arith.constant 0 : i32
    return %c0_i32, %c0_i32_0 : i32, i32
  }
  func.func @transform_6(%arg0: i32) -> (i32, i32) {
    %c0_i32 = arith.constant 0 : i32
    %c0_i32_0 = arith.constant 0 : i32
    %c0_i32_1 = arith.constant 0 : i32
    return %c0_i32, %c0_i32_0 : i32, i32
  }
  func.func @transform_7(%arg0: i32) -> (i32, i32) {
    %c0_i32 = arith.constant 0 : i32
    %c0_i32_0 = arith.constant 0 : i32
    return %arg0, %c0_i32 : i32, i32
  }
}

</mosaic_0001>

<bundles_post_ra>
// kernel: tpu_custom_call.1
= control target key start
LH: loop header
LB: loop body
LE: loop exit
PB: predicated region body
PF: predicated region fallthrough
CT: control target
= control target key end

     0   :  { %12 = vsyncpa [#allocation3], 0  ;;  %s9244_s0 = inlined_call_operand.hbm [shape: bf16[256,896], index: 0, kind: input, shape index: {}]   ;;  %s9245_s1 = inlined_call_operand.hbm [shape: bf16[896,512], index: 1, kind: input, shape index: {}]   ;;  %s9246_s2 = inlined_call_operand.vmem [shape: f32[1,512], index: 2, kind: input, shape index: {}]   ;;  %s9247_s3 = inlined_call_operand.hbm [shape: bf16[512,512], index: 3, kind: input, shape index: {}]   ;;  %s9248_s4 = inlined_call_operand.vmem [shape: f32[1,512], index: 4, kind: input, shape index: {}]   ;;  %s9249_s5 = inlined_call_operand.hbm [shape: bf16[512,128], index: 5, kind: input, shape index: {}]   ;;  %s9250_s6 = inlined_call_operand.vmem [shape: f32[1,128], index: 6, kind: input, shape index: {}]   ;;  %s9251_s7 = inlined_call_operand.hbm [shape: f32[256,128], index: 7, kind: output, shape index: {}]  }
   0x1   :  { %13 = vsyncpa [#allocation6], 0 }
   0x2   :  { %14 = vsyncpa [#allocation9], 0 }
   0x3   :  { %15 = vsyncpa [#allocation4], 0  ;;  %s8620_s24 = smov [#allocation5]   ;;  %s8502_s28 = scalar_lea.hbm %s9245_s1, 28672 }
   0x4   :  { %s33_s25 = sshll.u32 %s8620_s24, 4  ;;  %p8503_p0 = scmp.ne.s32.totalorder %s9245_s1, %s8502_s28  ;;  %s34_s25 = int_to_ptr.vmem [resolvable:$true] %s33_s25 }
   0x5   :  { %p8506_p1 = scmp.lt.u32.totalorder %s8502_s28, %s9245_s1 }
   0x7   :  { %p8508_p2 = pnand %p8506_p1, %p8503_p0 }
   0x9   :  { %8511 = shalt.err (!%p8508_p2)
}
   0xa   :  { %s8512_s10 = scalar_lea.vmem %s34_s25, 28672  ;;  %p8517_p4 = scmp.lt.s32.totalorder %s34_s25, %s34_s25 }
   0xb   :  { %p8513_p3 = scmp.ne.s32.totalorder %s34_s25, %s8512_s10  ;;  %p8518_p5 = scmp.lt.s32.totalorder %s8512_s10, %s8512_s10 }
   0xd   :  { %p8519_p6 = por %p8518_p5, %p8517_p4 }
   0xf   :  { %p8520_p7 = pnand %p8519_p6, %p8513_p3 }
  0x11   :  { %8523 = shalt.err (!%p8520_p7)
}
  0x12   :  { %s8621_s11 = smov 256   ;;  %s8622_s12 = smov 16  }
  0x13   :  { %39 = dma.hbm_to_vmem [thread:$0]  %s9245_s1, 28672, %s34_s25, [#allocation6], %s8621_s11, %s8621_s11, %s8622_s12  }
  0x14   :  { %s8623_s15 = smov [#allocation2]   ;;  %s8524_s19 = scalar_lea.hbm %s9244_s0, 14336 }
  0x15   :  { %s21_s16 = sshll.u32 %s8623_s15, 4  ;;  %p8525_p8 = scmp.ne.s32.totalorder %s9244_s0, %s8524_s19  ;;  %s22_s16 = int_to_ptr.vmem [resolvable:$true] %s21_s16 }
  0x16   :  { %p8528_p9 = scmp.lt.u32.totalorder %s8524_s19, %s9244_s0 }
  0x18   :  { %p8530_p10 = pnand %p8528_p9, %p8525_p8 }
  0x1a   :  { %8533 = shalt.err (!%p8530_p10)
}
  0x1b   :  { %s8534_s24 = scalar_lea.vmem %s22_s16, 14336  ;;  %p8539_p12 = scmp.lt.s32.totalorder %s22_s16, %s22_s16 }
  0x1c   :  { %p8535_p11 = scmp.ne.s32.totalorder %s22_s16, %s8534_s24  ;;  %p8540_p13 = scmp.lt.s32.totalorder %s8534_s24, %s8534_s24 }
  0x1e   :  { %p8541_p0 = por %p8540_p13, %p8539_p12 }
  0x20   :  { %p8542_p1 = pnand %p8541_p0, %p8535_p11 }
  0x22   :  { %8545 = shalt.err (!%p8542_p1)
}
  0x23   :  { %s8624_s1 = smov 448   ;;  %s8625_s25 = smov 28  }
  0x24   :  { %27 = dma.hbm_to_vmem [thread:$0]  %s9244_s0, 14336, %s22_s16, [#allocation3], %s8624_s1, %s8624_s1, %s8625_s25  }
  0x25   :  { %s8626_s28 = smov [#allocation7]   ;;  %s8627_s30 = smov [#allocation8]  }
  0x26   :  { %s47_s29 = sshll.u32 %s8626_s28, 4  ;;  %s61_s8 = sshll.u32 %s8627_s30, 4  ;;  %s48_s29 = int_to_ptr.vmem [resolvable:$true] %s47_s29  ;;  %s8701_s8 = int_to_ptr.vmem [resolvable:$true] %s61_s8 }
  0x27   :  { %s8546_s13 = scalar_lea.hbm %s9247_s3, 16384 }
  0x28   :  { %p8547_p2 = scmp.ne.s32.totalorder %s9247_s3, %s8546_s13  ;;  %p8550_p3 = scmp.lt.u32.totalorder %s8546_s13, %s9247_s3 }
  0x2a   :  { %p8552_p4 = pnand %p8550_p3, %p8547_p2 }
  0x2c   :  { %8555 = shalt.err (!%p8552_p4)
}
  0x2d   :  { %s8556_s0 = scalar_lea.vmem %s48_s29, 16384  ;;  %p8561_p6 = scmp.lt.s32.totalorder %s48_s29, %s48_s29 }
  0x2e   :  { %p8557_p5 = scmp.ne.s32.totalorder %s48_s29, %s8556_s0  ;;  %p8562_p7 = scmp.lt.s32.totalorder %s8556_s0, %s8556_s0 }
  0x30   :  { %p8563_p8 = por %p8562_p7, %p8561_p6 }
  0x32   :  { %p8564_p9 = pnand %p8563_p8, %p8557_p5 }
  0x34   :  { %8567 = shalt.err (!%p8564_p9)
}
  0x35   :  { %53 = dma.hbm_to_vmem [thread:$0]  %s9247_s3, 16384, %s48_s29, [#allocation6], %s8621_s11, %s8621_s11, %s8622_s12  }
  0x36   :  { %s8568_s22 = scalar_lea.hbm %s9249_s5, 4096 }
  0x37   :  { %p8569_p10 = scmp.ne.s32.totalorder %s9249_s5, %s8568_s22  ;;  %p8572_p11 = scmp.lt.u32.totalorder %s8568_s22, %s9249_s5 }
  0x39   :  { %p8574_p12 = pnand %p8572_p11, %p8569_p10 }
  0x3b   :  { %8577 = shalt.err (!%p8574_p12)
}
  0x3c   :  { %s8578_s26 = scalar_lea.vmem %s8701_s8, 4096  ;;  %p8583_p0 = scmp.lt.s32.totalorder %s8701_s8, %s8701_s8 }
  0x3d   :  { %p8579_p13 = scmp.ne.s32.totalorder %s8701_s8, %s8578_s26  ;;  %p8584_p1 = scmp.lt.s32.totalorder %s8578_s26, %s8578_s26 }
  0x3f   :  { %p8585_p2 = por %p8584_p1, %p8583_p0 }
  0x41   :  { %p8586_p3 = pnand %p8585_p2, %p8579_p13 }
  0x43   :  { %8589 = shalt.err (!%p8586_p3)
}
  0x44   :  { %s8628_s3 = smov 64   ;;  %s8629_s11 = smov 4  }
  0x45   :  { %67 = dma.hbm_to_vmem [thread:$0]  %s9249_s5, 4096, %s8701_s8, [#allocation9], %s8628_s3, %s8628_s3, %s8629_s11  }
  0x46   :  { %8612 = dma.done.wait [#allocation3], 14336  }
  0x47   :  { %8613 = vsyncadd [#allocation3], 4294952960 }
  0x48   :  { %8614 = dma.done.wait [#allocation6], 45056  }
  0x49   :  { %8615 = vsyncadd [#allocation6], 4294922240 }
  0x4a   :  { %8616 = dma.done.wait [#allocation9], 4096  }
  0x4b   :  { %8617 = vsyncadd [#allocation9], 4294963200  ;;  %v7782_v0 = vld [vmem:[#allocation5 + $0x4] ss:$16 sps:$4 sm:$0xff]   ;;  %v7784_v1 = vld [vmem:[#allocation5 + $0xc] ss:$16 sps:$4 sm:$0xff]  }
  0x4c   :  { %2153 = vmatprep.subr.bf16.mxu0 %v7782_v0  ;;  %v7786_v2 = vld [vmem:[#allocation5] ss:$16 sps:$4 sm:$0xff]   ;;  %v7787_v3 = vld [vmem:[#allocation5 + $0x8] ss:$16 sps:$4 sm:$0xff]   ;;  %2925 = vmatprep.subr.bf16.mxu1 %v7784_v1  ;;  %v7788_v4 = vld [vmem:[#allocation5 + $0x24] ss:$16 sps:$4 sm:$0xff]  }
  0x4d   :  { %2154 = vmatpush1.bf16.msra.mxu0 %v7786_v2  ;;  %2926 = vmatpush1.bf16.msra.mxu1 %v7787_v3  ;;  %v7790_v5 = vld [vmem:[#allocation5 + $0x2c] ss:$16 sps:$4 sm:$0xff]   ;;  %v7792_v6 = vld [vmem:[#allocation5 + $0x20] ss:$16 sps:$4 sm:$0xff]   ;;  %v7793_v7 = vld [vmem:[#allocation5 + $0x28] ss:$16 sps:$4 sm:$0xff]  }
  0x4e   :  { %2155 = vmatprep.subr.bf16.mxu0 %v7788_v4  ;;  %2927 = vmatprep.subr.bf16.mxu1 %v7790_v5  ;;  %v7794_v8 = vld [vmem:[#allocation5 + $0x44] ss:$16 sps:$4 sm:$0xff]   ;;  %v7796_v9 = vld [vmem:[#allocation5 + $0x4c] ss:$16 sps:$4 sm:$0xff]   ;;  %v7798_v10 = vld [vmem:[#allocation5 + $0x40] ss:$16 sps:$4 sm:$0xff]  }
  0x4f   :  { %v7799_v11 = vld [vmem:[#allocation5 + $0x48] ss:$16 sps:$4 sm:$0xff]   ;;  %v7800_v12 = vld [vmem:[#allocation5 + $0x64] ss:$16 sps:$4 sm:$0xff]   ;;  %v7802_v13 = vld [vmem:[#allocation5 + $0x6c] ss:$16 sps:$4 sm:$0xff]  }
  0x50   :  { %v7804_v14 = vld [vmem:[#allocation5 + $0x60] ss:$16 sps:$4 sm:$0xff]   ;;  %v7805_v15 = vld [vmem:[#allocation5 + $0x68] ss:$16 sps:$4 sm:$0xff]   ;;  %v7806_v16 = vld [vmem:[#allocation5 + $0x84] ss:$16 sps:$4 sm:$0xff]  }
  0x51   :  { %2156 = vmatpush1.bf16.msra.mxu0 %v7792_v6  ;;  %2928 = vmatpush1.bf16.msra.mxu1 %v7793_v7  ;;  %v7808_v17 = vld [vmem:[#allocation5 + $0x8c] ss:$16 sps:$4 sm:$0xff]   ;;  %v7810_v18 = vld [vmem:[#allocation5 + $0x80] ss:$16 sps:$4 sm:$0xff]   ;;  %v7811_v19 = vld [vmem:[#allocation5 + $0x88] ss:$16 sps:$4 sm:$0xff]  }
  0x52   :  { %2157 = vmatprep.subr.bf16.mxu0 %v7794_v8  ;;  %2929 = vmatprep.subr.bf16.mxu1 %v7796_v9  ;;  %v7812_v20 = vld [vmem:[#allocation5 + $0xa4] ss:$16 sps:$4 sm:$0xff]   ;;  %v7814_v21 = vld [vmem:[#allocation5 + $0xac] ss:$16 sps:$4 sm:$0xff]   ;;  %v7816_v22 = vld [vmem:[#allocation5 + $0xa0] ss:$16 sps:$4 sm:$0xff]  }
  0x53   :  { %v7817_v23 = vld [vmem:[#allocation5 + $0xa8] ss:$16 sps:$4 sm:$0xff]   ;;  %v7818_v24 = vld [vmem:[#allocation5 + $0xc4] ss:$16 sps:$4 sm:$0xff]   ;;  %v7820_v25 = vld [vmem:[#allocation5 + $0xcc] ss:$16 sps:$4 sm:$0xff]  }
  0x54   :  { %v7822_v26 = vld [vmem:[#allocation5 + $0xc0] ss:$16 sps:$4 sm:$0xff]   ;;  %v7823_v27 = vld [vmem:[#allocation5 + $0xc8] ss:$16 sps:$4 sm:$0xff]   ;;  %v7824_v28 = vld [vmem:[#allocation5 + $0xe4] ss:$16 sps:$4 sm:$0xff]  }
  0x55   :  { %2158 = vmatpush1.bf16.msra.mxu0 %v7798_v10  ;;  %2930 = vmatpush1.bf16.msra.mxu1 %v7799_v11  ;;  %v7826_v29 = vld [vmem:[#allocation5 + $0xec] ss:$16 sps:$4 sm:$0xff]   ;;  %v7828_v30 = vld [vmem:[#allocation5 + $0xe0] ss:$16 sps:$4 sm:$0xff]   ;;  %v7829_v31 = vld [vmem:[#allocation5 + $0xe8] ss:$16 sps:$4 sm:$0xff]  }
  0x56   :  { %2159 = vmatprep.subr.bf16.mxu0 %v7800_v12  ;;  %2931 = vmatprep.subr.bf16.mxu1 %v7802_v13  ;;  %v7830_v32 = vld [vmem:[#allocation5 + $0x104] ss:$16 sps:$4 sm:$0xff]   ;;  %v7832_v33 = vld [vmem:[#allocation5 + $0x10c] ss:$16 sps:$4 sm:$0xff]   ;;  %v7834_v34 = vld [vmem:[#allocation5 + $0x100] ss:$16 sps:$4 sm:$0xff]  }
  0x57   :  { %v7835_v35 = vld [vmem:[#allocation5 + $0x108] ss:$16 sps:$4 sm:$0xff]   ;;  %v7836_v36 = vld [vmem:[#allocation5 + $0x124] ss:$16 sps:$4 sm:$0xff]   ;;  %v7838_v37 = vld [vmem:[#allocation5 + $0x12c] ss:$16 sps:$4 sm:$0xff]  }
  0x58   :  { %v7840_v38 = vld [vmem:[#allocation5 + $0x120] ss:$16 sps:$4 sm:$0xff]   ;;  %v7841_v39 = vld [vmem:[#allocation5 + $0x128] ss:$16 sps:$4 sm:$0xff]   ;;  %v7842_v40 = vld [vmem:[#allocation5 + $0x144] ss:$16 sps:$4 sm:$0xff]  }
  0x59   :  { %2160 = vmatpush1.bf16.msra.mxu0 %v7804_v14  ;;  %2932 = vmatpush1.bf16.msra.mxu1 %v7805_v15  ;;  %v7844_v41 = vld [vmem:[#allocation5 + $0x14c] ss:$16 sps:$4 sm:$0xff]   ;;  %v7846_v42 = vld [vmem:[#allocation5 + $0x140] ss:$16 sps:$4 sm:$0xff]   ;;  %v7847_v43 = vld [vmem:[#allocation5 + $0x148] ss:$16 sps:$4 sm:$0xff]  }
  0x5a   :  { %2161 = vmatprep.subr.bf16.mxu0 %v7806_v16  ;;  %2933 = vmatprep.subr.bf16.mxu1 %v7808_v17  ;;  %v7848_v44 = vld [vmem:[#allocation5 + $0x164] ss:$16 sps:$4 sm:$0xff]   ;;  %v7850_v45 = vld [vmem:[#allocation5 + $0x16c] ss:$16 sps:$4 sm:$0xff]   ;;  %v7852_v46 = vld [vmem:[#allocation5 + $0x160] ss:$16 sps:$4 sm:$0xff]  }
  0x5b   :  { %v7853_v47 = vld [vmem:[#allocation5 + $0x168] ss:$16 sps:$4 sm:$0xff]   ;;  %v7880_v48 = vld [vmem:[#allocation2 + $0x4] ss:$28 sps:$4 sm:$0xff]   ;;  %v7856_v50 = vld [vmem:[#allocation5 + $0x18c] ss:$16 sps:$4 sm:$0xff]  }
  0x5c   :  { %v7854_v49 = vld [vmem:[#allocation5 + $0x184] ss:$16 sps:$4 sm:$0xff]   ;;  %2185 = vmatprep.mubr.bf16.mxu0 %v7880_v48  ;;  %2957 = vmatprep.mubr.bf16.mxu1 %v7880_v48  ;;  %v7858_v51 = vld [vmem:[#allocation5 + $0x180] ss:$16 sps:$4 sm:$0xff]   ;;  %v7859_v52 = vld [vmem:[#allocation5 + $0x188] ss:$16 sps:$4 sm:$0xff]  }
  0x5d   :  { %2162 = vmatpush1.bf16.msra.mxu0 %v7810_v18  ;;  %2934 = vmatpush1.bf16.msra.mxu1 %v7811_v19  ;;  %v7860_v53 = vld [vmem:[#allocation5 + $0x1a4] ss:$16 sps:$4 sm:$0xff]   ;;  %v7862_v54 = vld [vmem:[#allocation5 + $0x1ac] ss:$16 sps:$4 sm:$0xff]   ;;  %v7864_v55 = vld [vmem:[#allocation5 + $0x1a0] ss:$16 sps:$4 sm:$0xff]  }
  0x5e   :  { %2163 = vmatprep.subr.bf16.mxu0 %v7812_v20  ;;  %2935 = vmatprep.subr.bf16.mxu1 %v7814_v21  ;;  %v7865_v56 = vld [vmem:[#allocation5 + $0x1a8] ss:$16 sps:$4 sm:$0xff]   ;;  %v7866_v57 = vld [vmem:[#allocation5 + $0x1c4] ss:$16 sps:$4 sm:$0xff]   ;;  %v7868_v58 = vld [vmem:[#allocation5 + $0x1cc] ss:$16 sps:$4 sm:$0xff]  }
  0x5f   :  { %v7870_v59 = vld [vmem:[#allocation5 + $0x1c0] ss:$16 sps:$4 sm:$0xff]   ;;  %v7871_v60 = vld [vmem:[#allocation5 + $0x1c8] ss:$16 sps:$4 sm:$0xff]   ;;  %v7872_v61 = vld [vmem:[#allocation5 + $0x1e4] ss:$16 sps:$4 sm:$0xff]  }
  0x60   :  { %v7874_v62 = vld [vmem:[#allocation5 + $0x1ec] ss:$16 sps:$4 sm:$0xff]   ;;  %v7876_v63 = vld [vmem:[#allocation5 + $0x1e0] ss:$16 sps:$4 sm:$0xff]   ;;  %v7877_v0 = vld [vmem:[#allocation5 + $0x1e8] ss:$16 sps:$4 sm:$0xff]  }
  0x61   :  { %2164 = vmatpush1.bf16.msra.mxu0 %v7816_v22  ;;  %2936 = vmatpush1.bf16.msra.mxu1 %v7817_v23  ;;  %v7883_v1 = vld [vmem:[#allocation5 + $0x204] ss:$16 sps:$4 sm:$0xff]   ;;  %v7878_v2 = vld [vmem:[#allocation2] ss:$28 sps:$4 sm:$0xff]   ;;  %v7932_v7 = vld [vmem:[#allocation5 + $0x208] ss:$16 sps:$4 sm:$0xff]  }
  0x62   :  { %2165 = vmatprep.subr.bf16.mxu0 %v7818_v24  ;;  %2937 = vmatprep.subr.bf16.mxu1 %v7820_v25  ;;  %v7881_v3 = vld [vmem:[#allocation5 + $0x200] ss:$16 sps:$4 sm:$0xff]   ;;  %v7884_v4 = vld [vmem:[#allocation2 + $0x3c] ss:$28 sps:$4 sm:$0xff]   ;;  %v7889_v5 = vld [vmem:[#allocation5 + $0x224] ss:$16 sps:$4 sm:$0xff]  }
  0x63   :  { %v7887_v6 = vld [vmem:[#allocation5 + $0x220] ss:$16 sps:$4 sm:$0xff]   ;;  %v7934_v8 = vld [vmem:[#allocation5 + $0x20c] ss:$16 sps:$4 sm:$0xff]   ;;  %v7895_v9 = vld [vmem:[#allocation5 + $0x244] ss:$16 sps:$4 sm:$0xff]  }
  0x64   :  { %v7937_v10 = vld [vmem:[#allocation5 + $0x22c] ss:$16 sps:$4 sm:$0xff]   ;;  %v7886_v11 = vld [vmem:[#allocation2 + $0x38] ss:$28 sps:$4 sm:$0xff]   ;;  %v7893_v13 = vld [vmem:[#allocation5 + $0x240] ss:$16 sps:$4 sm:$0xff]  }
  0x65   :  { %2166 = vmatpush1.bf16.msra.mxu0 %v7822_v26  ;;  %2938 = vmatpush1.bf16.msra.mxu1 %v7823_v27  ;;  %v7890_v12 = vld [vmem:[#allocation2 + $0x74] ss:$28 sps:$4 sm:$0xff]   ;;  %v7935_v14 = vld [vmem:[#allocation5 + $0x228] ss:$16 sps:$4 sm:$0xff]   ;;  %v7946_v16 = vld [vmem:[#allocation5 + $0x24c] ss:$16 sps:$4 sm:$0xff]  }
  0x66   :  { %2167 = vmatprep.subr.bf16.mxu0 %v7824_v28  ;;  %2939 = vmatprep.subr.bf16.mxu1 %v7826_v29  ;;  %v7901_v15 = vld [vmem:[#allocation5 + $0x264] ss:$16 sps:$4 sm:$0xff]   ;;  %v7899_v17 = vld [vmem:[#allocation5 + $0x260] ss:$16 sps:$4 sm:$0xff]   ;;  %v7944_v18 = vld [vmem:[#allocation5 + $0x248] ss:$16 sps:$4 sm:$0xff]  }
  0x67   :  { %v7907_v19 = vld [vmem:[#allocation5 + $0x284] ss:$16 sps:$4 sm:$0xff]   ;;  %v7949_v20 = vld [vmem:[#allocation5 + $0x26c] ss:$16 sps:$4 sm:$0xff]   ;;  %v7905_v23 = vld [vmem:[#allocation5 + $0x280] ss:$16 sps:$4 sm:$0xff]  }
  0x68   :  { %v7892_v21 = vld [vmem:[#allocation2 + $0x70] ss:$28 sps:$4 sm:$0xff]   ;;  %v7947_v24 = vld [vmem:[#allocation5 + $0x268] ss:$16 sps:$4 sm:$0xff]   ;;  %v7913_v25 = vld [vmem:[#allocation5 + $0x2a4] ss:$16 sps:$4 sm:$0xff]  }
  0x69   :  { %2168 = vmatpush1.bf16.msra.mxu0 %v7828_v30  ;;  %2940 = vmatpush1.bf16.msra.mxu1 %v7829_v31  ;;  %v7896_v22 = vld [vmem:[#allocation2 + $0xac] ss:$28 sps:$4 sm:$0xff]   ;;  %v7911_v27 = vld [vmem:[#allocation5 + $0x2a0] ss:$16 sps:$4 sm:$0xff]   ;;  %v7919_v29 = vld [vmem:[#allocation5 + $0x2c4] ss:$16 sps:$4 sm:$0xff]  }
  0x6a   :  { %2169 = vmatprep.subr.bf16.mxu0 %v7830_v32  ;;  %2941 = vmatprep.subr.bf16.mxu1 %v7832_v33  ;;  %v7958_v26 = vld [vmem:[#allocation5 + $0x28c] ss:$16 sps:$4 sm:$0xff]   ;;  %v7956_v28 = vld [vmem:[#allocation5 + $0x288] ss:$16 sps:$4 sm:$0xff]   ;;  %v7902_v32 = vld [vmem:[#allocation2 + $0xe4] ss:$28 sps:$4 sm:$0xff]  }
  0x6b   :  { %v7961_v30 = vld [vmem:[#allocation5 + $0x2ac] ss:$16 sps:$4 sm:$0xff]   ;;  %v7898_v31 = vld [vmem:[#allocation2 + $0xa8] ss:$28 sps:$4 sm:$0xff]   ;;  %v7917_v33 = vld [vmem:[#allocation5 + $0x2c0] ss:$16 sps:$4 sm:$0xff]  }
  0x6c   :  { %v7980_v48 = vld [vmem:[#allocation5 + $0x308] ss:$16 sps:$4 sm:$0xff]  }
  0x6d   :  { %2170 = vmatpush1.bf16.msra.mxu0 %v7834_v34  ;;  %2942 = vmatpush1.bf16.msra.mxu1 %v7835_v35  ;;  %v7959_v34 = vld [vmem:[#allocation5 + $0x2a8] ss:$16 sps:$4 sm:$0xff]   ;;  %v7925_v35 = vld [vmem:[#allocation5 + $0x2e4] ss:$16 sps:$4 sm:$0xff]  }
  0x6e   :  { %2171 = vmatprep.subr.bf16.mxu0 %v7836_v36  ;;  %2943 = vmatprep.subr.bf16.mxu1 %v7838_v37  ;;  %v7970_v36 = vld [vmem:[#allocation5 + $0x2cc] ss:$16 sps:$4 sm:$0xff]   ;;  %v7923_v37 = vld [vmem:[#allocation5 + $0x2e0] ss:$16 sps:$4 sm:$0xff]  }
  0x71   :  { %2172 = vmatpush1.bf16.msra.mxu0 %v7840_v38  ;;  %2944 = vmatpush1.bf16.msra.mxu1 %v7841_v39  ;;  %v7968_v38 = vld [vmem:[#allocation5 + $0x2c8] ss:$16 sps:$4 sm:$0xff]   ;;  %v7931_v39 = vld [vmem:[#allocation5 + $0x304] ss:$16 sps:$4 sm:$0xff]  }
  0x72   :  { %2173 = vmatprep.subr.bf16.mxu0 %v7842_v40  ;;  %2945 = vmatprep.subr.bf16.mxu1 %v7844_v41  ;;  %v7973_v40 = vld [vmem:[#allocation5 + $0x2ec] ss:$16 sps:$4 sm:$0xff]  }
  0x73   :  { %v7904_v41 = vld [vmem:[#allocation2 + $0xe0] ss:$28 sps:$4 sm:$0xff]  }
  0x75   :  { %2174 = vmatpush1.bf16.msra.mxu0 %v7846_v42  ;;  %2946 = vmatpush1.bf16.msra.mxu1 %v7847_v43  ;;  %v7908_v42 = vld [vmem:[#allocation2 + $0x11c] ss:$28 sps:$4 sm:$0xff]   ;;  %v7929_v43 = vld [vmem:[#allocation5 + $0x300] ss:$16 sps:$4 sm:$0xff]  }
  0x76   :  { %2175 = vmatprep.subr.bf16.mxu0 %v7848_v44  ;;  %2947 = vmatprep.subr.bf16.mxu1 %v7850_v45  ;;  %v7971_v44 = vld [vmem:[#allocation5 + $0x2e8] ss:$16 sps:$4 sm:$0xff]   ;;  %v7943_v45 = vld [vmem:[#allocation5 + $0x324] ss:$16 sps:$4 sm:$0xff]  }
  0x79   :  { %2176 = vmatpush1.bf16.msra.mxu0 %v7852_v46  ;;  %2948 = vmatpush1.bf16.msra.mxu1 %v7853_v47  ;;  %v7982_v46 = vld [vmem:[#allocation5 + $0x30c] ss:$16 sps:$4 sm:$0xff]   ;;  %v7941_v47 = vld [vmem:[#allocation5 + $0x320] ss:$16 sps:$4 sm:$0xff]  }
  0x7a   :  { %2177 = vmatprep.subr.bf16.mxu0 %v7854_v49  ;;  %2949 = vmatprep.subr.bf16.mxu1 %v7856_v50  ;;  %v7955_v49 = vld [vmem:[#allocation5 + $0x344] ss:$16 sps:$4 sm:$0xff]   ;;  %v7985_v50 = vld [vmem:[#allocation5 + $0x32c] ss:$16 sps:$4 sm:$0xff]  }
  0x7d   :  { %2178 = vmatpush1.bf16.msra.mxu0 %v7858_v51  ;;  %2950 = vmatpush1.bf16.msra.mxu1 %v7859_v52  ;;  %v7910_v51 = vld [vmem:[#allocation2 + $0x118] ss:$28 sps:$4 sm:$0xff]  }
  0x7e   :  { %2179 = vmatprep.subr.bf16.mxu0 %v7860_v53  ;;  %2951 = vmatprep.subr.bf16.mxu1 %v7862_v54  ;;  %v7914_v52 = vld [vmem:[#allocation2 + $0x154] ss:$28 sps:$4 sm:$0xff]   ;;  %v7983_v54 = vld [vmem:[#allocation5 + $0x328] ss:$16 sps:$4 sm:$0xff]  }
  0x7f   :  { %v7953_v53 = vld [vmem:[#allocation5 + $0x340] ss:$16 sps:$4 sm:$0xff]  }
  0x81   :  { %2180 = vmatpush1.bf16.msra.mxu0 %v7864_v55  ;;  %2952 = vmatpush1.bf16.msra.mxu1 %v7865_v56  ;;  %v7967_v55 = vld [vmem:[#allocation5 + $0x364] ss:$16 sps:$4 sm:$0xff]   ;;  %v7994_v56 = vld [vmem:[#allocation5 + $0x34c] ss:$16 sps:$4 sm:$0xff]  }
  0x82   :  { %2181 = vmatprep.subr.bf16.mxu0 %v7866_v57  ;;  %2953 = vmatprep.subr.bf16.mxu1 %v7868_v58  ;;  %v7965_v57 = vld [vmem:[#allocation5 + $0x360] ss:$16 sps:$4 sm:$0xff]   ;;  %v7992_v58 = vld [vmem:[#allocation5 + $0x348] ss:$16 sps:$4 sm:$0xff]  }
  0x85   :  { %2182 = vmatpush1.bf16.msra.mxu0 %v7870_v59  ;;  %2954 = vmatpush1.bf16.msra.mxu1 %v7871_v60  ;;  %v7979_v59 = vld [vmem:[#allocation5 + $0x384] ss:$16 sps:$4 sm:$0xff]   ;;  %v7997_v60 = vld [vmem:[#allocation5 + $0x36c] ss:$16 sps:$4 sm:$0xff]  }
  0x86   :  { %2183 = vmatprep.subr.bf16.mxu0 %v7872_v61  ;;  %2955 = vmatprep.subr.bf16.mxu1 %v7874_v62  ;;  %v7916_v61 = vld [vmem:[#allocation2 + $0x150] ss:$28 sps:$4 sm:$0xff]  }
  0x87   :  { %v7920_v62 = vld [vmem:[#allocation2 + $0x18c] ss:$28 sps:$4 sm:$0xff]  }
  0x89   :  { %2184 = vmatpush1.bf16.msra.mxu0 %v7876_v63  ;;  %2956 = vmatpush1.bf16.msra.mxu1 %v7877_v0  ;;  %v7977_v63 = vld [vmem:[#allocation5 + $0x380] ss:$16 sps:$4 sm:$0xff]   ;;  %v7995_v0 = vld [vmem:[#allocation5 + $0x368] ss:$16 sps:$4 sm:$0xff]  }
  0x8a   :  { %2346 = vmatprep.subr.bf16.mxu0 %v7883_v1  ;;  %3118 = vmatprep.subr.bf16.mxu1 %v7934_v8  ;;  %v7991_v1 = vld [vmem:[#allocation5 + $0x3a4] ss:$16 sps:$4 sm:$0xff]  }
  0x8b   :  { %v7926_v8 = vld [vmem:[#allocation2 + $0x1c4] ss:$28 sps:$4 sm:$0xff]  }
  0x8c   :  { %2186 = vmatmul.mubr.bf16.vlgmr.msra.gmra.mrb[0].mxu0 %v7878_v2  ;;  %2958 = vmatmul.mubr.bf16.vlgmr.msra.gmra.mrb[0].mxu1 %v7878_v2  ;;  %v8006_v2 = vld [vmem:[#allocation5 + $0x38c] ss:$16 sps:$4 sm:$0xff]  }
  0x8d   :  { %2347 = vmatpush1.bf16.msra.mxu0 %v7881_v3  ;;  %2195 = vmatprep.mubr.bf16.mxu0 %v7884_v4  ;;  %v7989_v3 = vld [vmem:[#allocation5 + $0x3a0] ss:$16 sps:$4 sm:$0xff]  }
  0x8e   :  { %2967 = vmatprep.mubr.bf16.mxu1 %v7884_v4  ;;  %2348 = vmatprep.subr.bf16.mxu0 %v7889_v5  ;;  %v8004_v4 = vld [vmem:[#allocation5 + $0x388] ss:$16 sps:$4 sm:$0xff]   ;;  %v8003_v5 = vld [vmem:[#allocation5 + $0x3c4] ss:$16 sps:$4 sm:$0xff]  }
  0x8f   :  { %3119 = vmatpush1.bf16.msra.mxu1 %v7932_v7  ;;  %v7922_v7 = vld [vmem:[#allocation2 + $0x188] ss:$28 sps:$4 sm:$0xff]  }
  0x90   :  { %3120 = vmatprep.subr.bf16.mxu1 %v7937_v10  ;;  %v8007_v10 = vld [vmem:[#allocation5 + $0x3a8] ss:$16 sps:$4 sm:$0xff]  }
  0x91   :  { %2349 = vmatpush1.bf16.msra.mxu0 %v7887_v6  ;;  %v8009_v6 = vld [vmem:[#allocation5 + $0x3ac] ss:$16 sps:$4 sm:$0xff]  }
  0x92   :  { %2350 = vmatprep.subr.bf16.mxu0 %v7895_v9  ;;  %v8001_v9 = vld [vmem:[#allocation5 + $0x3c0] ss:$16 sps:$4 sm:$0xff]  }
  0x93   :  { %3121 = vmatpush1.bf16.msra.mxu1 %v7935_v14  ;;  %v8016_v14 = vld [vmem:[#allocation5 + $0x3c8] ss:$16 sps:$4 sm:$0xff]  }
  0x94   :  { %2196 = vmatmul.mubr.bf16.gmra.mrb[4].mxu0 %v7886_v11  ;;  %2968 = vmatmul.mubr.bf16.gmra.mrb[4].mxu1 %v7886_v11  ;;  %v8015_v11 = vld [vmem:[#allocation5 + $0x3e4] ss:$16 sps:$4 sm:$0xff]  }
  0x95   :  { %2205 = vmatprep.mubr.bf16.mxu0 %v7890_v12  ;;  %2977 = vmatprep.mubr.bf16.mxu1 %v7890_v12  ;;  %v8018_v12 = vld [vmem:[#allocation5 + $0x3cc] ss:$16 sps:$4 sm:$0xff]  }
  0x96   :  { %2351 = vmatpush1.bf16.msra.mxu0 %v7893_v13  ;;  %3122 = vmatprep.subr.bf16.mxu1 %v7946_v16  ;;  %v8013_v13 = vld [vmem:[#allocation5 + $0x3e0] ss:$16 sps:$4 sm:$0xff]   ;;  %v8027_v16 = vld [vmem:[#allocation5 + $0x404] ss:$16 sps:$4 sm:$0xff]  }
  0x97   :  { %2352 = vmatprep.subr.bf16.mxu0 %v7901_v15  ;;  %3123 = vmatpush1.bf16.msra.mxu1 %v7944_v18  ;;  %v8021_v15 = vld [vmem:[#allocation5 + $0x3ec] ss:$16 sps:$4 sm:$0xff]  }
  0x98   :  { %3124 = vmatprep.subr.bf16.mxu1 %v7949_v20  ;;  %v7938_v18 = vld [vmem:[#allocation2 + $0x1fc] ss:$28 sps:$4 sm:$0xff]  }
  0x99   :  { %v8078_v20 = vld [vmem:[#allocation5 + $0x40c] ss:$16 sps:$4 sm:$0xff]  }
  0x9a   :  { %2353 = vmatpush1.bf16.msra.mxu0 %v7899_v17  ;;  %v7928_v17 = vld [vmem:[#allocation2 + $0x1c0] ss:$28 sps:$4 sm:$0xff]  }
  0x9b   :  { %2354 = vmatprep.subr.bf16.mxu0 %v7907_v19  ;;  %3125 = vmatpush1.bf16.msra.mxu1 %v7947_v24  ;;  %v8019_v19 = vld [vmem:[#allocation5 + $0x3e8] ss:$16 sps:$4 sm:$0xff]  }
  0x9c   :  { %2206 = vmatmul.mubr.bf16.gmra.mrb[8].mxu0 %v7892_v21  ;;  %2978 = vmatmul.mubr.bf16.gmra.mrb[8].mxu1 %v7892_v21  ;;  %v7940_v21 = vld [vmem:[#allocation2 + $0x1f8] ss:$28 sps:$4 sm:$0xff]   ;;  %v7962_v24 = vld [vmem:[#allocation2 + $0x26c] ss:$28 sps:$4 sm:$0xff]  }
  0x9d   :  { %2215 = vmatprep.mubr.bf16.mxu0 %v7896_v22  ;;  %2987 = vmatprep.mubr.bf16.mxu1 %v7896_v22  ;;  %v7950_v22 = vld [vmem:[#allocation2 + $0x234] ss:$28 sps:$4 sm:$0xff]  }
  0x9e   :  { %2355 = vmatpush1.bf16.msra.mxu0 %v7905_v23  ;;  %3126 = vmatprep.subr.bf16.mxu1 %v7958_v26  ;;  %v7952_v23 = vld [vmem:[#allocation2 + $0x230] ss:$28 sps:$4 sm:$0xff]   ;;  %v7974_v26 = vld [vmem:[#allocation2 + $0x2a4] ss:$28 sps:$4 sm:$0xff]  }
  0x9f   :  { %2356 = vmatprep.subr.bf16.mxu0 %v7913_v25  ;;  %3127 = vmatpush1.bf16.msra.mxu1 %v7956_v28  ;;  %v7964_v25 = vld [vmem:[#allocation2 + $0x268] ss:$28 sps:$4 sm:$0xff]   ;;  %v7986_v28 = vld [vmem:[#allocation2 + $0x2dc] ss:$28 sps:$4 sm:$0xff]  }
  0xa0   :  { %3128 = vmatprep.subr.bf16.mxu1 %v7961_v30  ;;  %v7998_v30 = vld [vmem:[#allocation2 + $0x314] ss:$28 sps:$4 sm:$0xff]  }
  0xa2   :  { %2357 = vmatpush1.bf16.msra.mxu0 %v7911_v27  ;;  %v7976_v27 = vld [vmem:[#allocation2 + $0x2a0] ss:$28 sps:$4 sm:$0xff]  }
  0xa3   :  { %2358 = vmatprep.subr.bf16.mxu0 %v7919_v29  ;;  %3129 = vmatpush1.bf16.msra.mxu1 %v7959_v34  ;;  %v7988_v29 = vld [vmem:[#allocation2 + $0x2d8] ss:$28 sps:$4 sm:$0xff]   ;;  %v8024_v34 = vld [vmem:[#allocation2 + $0xc] ss:$28 sps:$4 sm:$0xff]  }
  0xa4   :  { %2216 = vmatmul.mubr.bf16.gmra.mrb[12].mxu0 %v7898_v31  ;;  %2988 = vmatmul.mubr.bf16.gmra.mrb[12].mxu1 %v7898_v31  ;;  %v8000_v31 = vld [vmem:[#allocation2 + $0x310] ss:$28 sps:$4 sm:$0xff]  }
  0xa5   :  { %2225 = vmatprep.mubr.bf16.mxu0 %v7902_v32  ;;  %2997 = vmatprep.mubr.bf16.mxu1 %v7902_v32  ;;  %v8010_v32 = vld [vmem:[#allocation2 + $0x34c] ss:$28 sps:$4 sm:$0xff]  }
  0xa6   :  { %2359 = vmatpush1.bf16.msra.mxu0 %v7917_v33  ;;  %3130 = vmatprep.subr.bf16.mxu1 %v7970_v36  ;;  %v8012_v33 = vld [vmem:[#allocation2 + $0x348] ss:$28 sps:$4 sm:$0xff]   ;;  %v8025_v36 = vld [vmem:[#allocation5 + $0x400] ss:$16 sps:$4 sm:$0xff]  }
  0xa7   :  { %2360 = vmatprep.subr.bf16.mxu0 %v7925_v35  ;;  %3131 = vmatpush1.bf16.msra.mxu1 %v7968_v38  ;;  %v8022_v35 = vld [vmem:[#allocation2 + $0x8] ss:$28 sps:$4 sm:$0xff]  }
  0xa8   :  { %3132 = vmatprep.subr.bf16.mxu1 %v7973_v40  ;;  %v8033_v38 = vld [vmem:[#allocation5 + $0x424] ss:$16 sps:$4 sm:$0xff]   ;;  %v8031_v40 = vld [vmem:[#allocation5 + $0x420] ss:$16 sps:$4 sm:$0xff]  }
  0xaa   :  { %2361 = vmatpush1.bf16.msra.mxu0 %v7923_v37  ;;  %v8028_v37 = vld [vmem:[#allocation2 + $0x44] ss:$28 sps:$4 sm:$0xff]  }
  0xab   :  { %2362 = vmatprep.subr.bf16.mxu0 %v7931_v39  ;;  %3133 = vmatpush1.bf16.msra.mxu1 %v7971_v44  ;;  %v8076_v39 = vld [vmem:[#allocation5 + $0x408] ss:$16 sps:$4 sm:$0xff]  }
  0xac   :  { %2226 = vmatmul.mubr.bf16.gmra.mrb[16].mxu0 %v7904_v41  ;;  %2998 = vmatmul.mubr.bf16.gmra.mrb[16].mxu1 %v7904_v41  ;;  %v8081_v41 = vld [vmem:[#allocation5 + $0x42c] ss:$16 sps:$4 sm:$0xff]   ;;  %v8079_v44 = vld [vmem:[#allocation5 + $0x428] ss:$16 sps:$4 sm:$0xff]  }
  0xad   :  { %2235 = vmatprep.mubr.bf16.mxu0 %v7908_v42  ;;  %3007 = vmatprep.mubr.bf16.mxu1 %v7908_v42  ;;  %v8039_v42 = vld [vmem:[#allocation5 + $0x444] ss:$16 sps:$4 sm:$0xff]  }
  0xae   :  { %2363 = vmatpush1.bf16.msra.mxu0 %v7929_v43  ;;  %3134 = vmatprep.subr.bf16.mxu1 %v7982_v46  ;;  %v8030_v43 = vld [vmem:[#allocation2 + $0x40] ss:$28 sps:$4 sm:$0xff]  }
  0xaf   :  { %2364 = vmatprep.subr.bf16.mxu0 %v7943_v45  ;;  %3135 = vmatpush1.bf16.msra.mxu1 %v7980_v48  ;;  %v8034_v45 = vld [vmem:[#allocation2 + $0x7c] ss:$28 sps:$4 sm:$0xff]   ;;  %v8037_v46 = vld [vmem:[#allocation5 + $0x440] ss:$16 sps:$4 sm:$0xff]   ;;  %v8045_v48 = vld [vmem:[#allocation5 + $0x464] ss:$16 sps:$4 sm:$0xff]  }
  0xb0   :  { %3136 = vmatprep.subr.bf16.mxu1 %v7985_v50  ;;  %v8043_v50 = vld [vmem:[#allocation5 + $0x460] ss:$16 sps:$4 sm:$0xff]  }
  0xb2   :  { %2365 = vmatpush1.bf16.msra.mxu0 %v7941_v47  ;;  %v8090_v47 = vld [vmem:[#allocation5 + $0x44c] ss:$16 sps:$4 sm:$0xff]  }
  0xb3   :  { %2366 = vmatprep.subr.bf16.mxu0 %v7955_v49  ;;  %3137 = vmatpush1.bf16.msra.mxu1 %v7983_v54  ;;  %v8088_v49 = vld [vmem:[#allocation5 + $0x448] ss:$16 sps:$4 sm:$0xff]  }
  0xb4   :  { %2236 = vmatmul.mubr.bf16.gmra.mrb[20].mxu0 %v7910_v51  ;;  %3008 = vmatmul.mubr.bf16.gmra.mrb[20].mxu1 %v7910_v51  ;;  %v8093_v51 = vld [vmem:[#allocation5 + $0x46c] ss:$16 sps:$4 sm:$0xff]   ;;  %v8036_v54 = vld [vmem:[#allocation2 + $0x78] ss:$28 sps:$4 sm:$0xff]  }
  0xb5   :  { %2245 = vmatprep.mubr.bf16.mxu0 %v7914_v52  ;;  %3017 = vmatprep.mubr.bf16.mxu1 %v7914_v52  ;;  %v8051_v52 = vld [vmem:[#allocation5 + $0x484] ss:$16 sps:$4 sm:$0xff]  }
  0xb6   :  { %2367 = vmatpush1.bf16.msra.mxu0 %v7953_v53  ;;  %3138 = vmatprep.subr.bf16.mxu1 %v7994_v56  ;;  %v8091_v53 = vld [vmem:[#allocation5 + $0x468] ss:$16 sps:$4 sm:$0xff]   ;;  %v8049_v56 = vld [vmem:[#allocation5 + $0x480] ss:$16 sps:$4 sm:$0xff]  }
  0xb7   :  { %2368 = vmatprep.subr.bf16.mxu0 %v7967_v55  ;;  %3139 = vmatpush1.bf16.msra.mxu1 %v7992_v58  ;;  %v8040_v55 = vld [vmem:[#allocation2 + $0xb4] ss:$28 sps:$4 sm:$0xff]  }
  0xb8   :  { %3140 = vmatprep.subr.bf16.mxu1 %v7997_v60  ;;  %v8057_v58 = vld [vmem:[#allocation5 + $0x4a4] ss:$16 sps:$4 sm:$0xff]   ;;  %v8055_v60 = vld [vmem:[#allocation5 + $0x4a0] ss:$16 sps:$4 sm:$0xff]  }
  0xba   :  { %2369 = vmatpush1.bf16.msra.mxu0 %v7965_v57  ;;  %v8102_v57 = vld [vmem:[#allocation5 + $0x48c] ss:$16 sps:$4 sm:$0xff]  }
  0xbb   :  { %2370 = vmatprep.subr.bf16.mxu0 %v7979_v59  ;;  %3141 = vmatpush1.bf16.msra.mxu1 %v7995_v0  ;;  %v8100_v59 = vld [vmem:[#allocation5 + $0x488] ss:$16 sps:$4 sm:$0xff]   ;;  %v8042_v0 = vld [vmem:[#allocation2 + $0xb0] ss:$28 sps:$4 sm:$0xff]  }
  0xbc   :  { %2246 = vmatmul.mubr.bf16.gmra.mrb[24].mxu0 %v7916_v61  ;;  %3018 = vmatmul.mubr.bf16.gmra.mrb[24].mxu1 %v7916_v61  ;;  %v8105_v61 = vld [vmem:[#allocation5 + $0x4ac] ss:$16 sps:$4 sm:$0xff]  }
  0xbd   :  { %2255 = vmatprep.mubr.bf16.mxu0 %v7920_v62  ;;  %3027 = vmatprep.mubr.bf16.mxu1 %v7920_v62  ;;  %v8063_v62 = vld [vmem:[#allocation5 + $0x4c4] ss:$16 sps:$4 sm:$0xff]  }
  0xbe   :  { %2371 = vmatpush1.bf16.msra.mxu0 %v7977_v63  ;;  %3142 = vmatprep.subr.bf16.mxu1 %v8006_v2  ;;  %v8103_v63 = vld [vmem:[#allocation5 + $0x4a8] ss:$16 sps:$4 sm:$0xff]   ;;  %v8061_v2 = vld [vmem:[#allocation5 + $0x4c0] ss:$16 sps:$4 sm:$0xff]  }
  0xbf   :  { %2372 = vmatprep.subr.bf16.mxu0 %v7991_v1  ;;  %3143 = vmatpush1.bf16.msra.mxu1 %v8004_v4  ;;  %v8046_v1 = vld [vmem:[#allocation2 + $0xec] ss:$28 sps:$4 sm:$0xff]   ;;  %v8069_v4 = vld [vmem:[#allocation5 + $0x4e4] ss:$16 sps:$4 sm:$0xff]  }
  0xc0   :  { %3144 = vmatprep.subr.bf16.mxu1 %v8009_v6  ;;  %v8067_v6 = vld [vmem:[#allocation5 + $0x4e0] ss:$16 sps:$4 sm:$0xff]  }
  0xc2   :  { %2373 = vmatpush1.bf16.msra.mxu0 %v7989_v3  ;;  %v8114_v3 = vld [vmem:[#allocation5 + $0x4cc] ss:$16 sps:$4 sm:$0xff]  }
  0xc3   :  { %2374 = vmatprep.subr.bf16.mxu0 %v8003_v5  ;;  %3145 = vmatpush1.bf16.msra.mxu1 %v8007_v10  ;;  %v8112_v5 = vld [vmem:[#allocation5 + $0x4c8] ss:$16 sps:$4 sm:$0xff]  }
  0xc4   :  { %2256 = vmatmul.mubr.bf16.gmra.mrb[28].mxu0 %v7922_v7  ;;  %3028 = vmatmul.mubr.bf16.gmra.mrb[28].mxu1 %v7922_v7  ;;  %v8117_v7 = vld [vmem:[#allocation5 + $0x4ec] ss:$16 sps:$4 sm:$0xff]   ;;  %v8048_v10 = vld [vmem:[#allocation2 + $0xe8] ss:$28 sps:$4 sm:$0xff]  }
  0xc5   :  { %2265 = vmatprep.mubr.bf16.mxu0 %v7926_v8  ;;  %3037 = vmatprep.mubr.bf16.mxu1 %v7926_v8  ;;  %v8075_v8 = vld [vmem:[#allocation5 + $0x504] ss:$16 sps:$4 sm:$0xff]  }
  0xc6   :  { %2375 = vmatpush1.bf16.msra.mxu0 %v8001_v9  ;;  %3146 = vmatprep.subr.bf16.mxu1 %v8018_v12  ;;  %v8115_v9 = vld [vmem:[#allocation5 + $0x4e8] ss:$16 sps:$4 sm:$0xff]   ;;  %v8073_v12 = vld [vmem:[#allocation5 + $0x500] ss:$16 sps:$4 sm:$0xff]  }
  0xc7   :  { %2376 = vmatprep.subr.bf16.mxu0 %v8015_v11  ;;  %3147 = vmatpush1.bf16.msra.mxu1 %v8016_v14  ;;  %v8052_v11 = vld [vmem:[#allocation2 + $0x124] ss:$28 sps:$4 sm:$0xff]  }
  0xc8   :  { %3148 = vmatprep.subr.bf16.mxu1 %v8021_v15  ;;  %v8087_v14 = vld [vmem:[#allocation5 + $0x524] ss:$16 sps:$4 sm:$0xff]   ;;  %v8124_v15 = vld [vmem:[#allocation5 + $0x508] ss:$16 sps:$4 sm:$0xff]  }
  0xca   :  { %2377 = vmatpush1.bf16.msra.mxu0 %v8013_v13  ;;  %v8126_v13 = vld [vmem:[#allocation5 + $0x50c] ss:$16 sps:$4 sm:$0xff]  }
  0xcb   :  { %2539 = vmatprep.subr.bf16.mxu0 %v8027_v16  ;;  %3149 = vmatpush1.bf16.msra.mxu1 %v8019_v19  ;;  %v8085_v16 = vld [vmem:[#allocation5 + $0x520] ss:$16 sps:$4 sm:$0xff]   ;;  %v8127_v19 = vld [vmem:[#allocation5 + $0x528] ss:$16 sps:$4 sm:$0xff]  }
  0xcc   :  { %2266 = vmatmul.mubr.bf16.gmra.mrb[32].mxu0 %v7928_v17  ;;  %3038 = vmatmul.mubr.bf16.gmra.mrb[32].mxu1 %v7928_v17  ;;  %v8129_v17 = vld [vmem:[#allocation5 + $0x52c] ss:$16 sps:$4 sm:$0xff]  }
  0xcd   :  { %2275 = vmatprep.mubr.bf16.mxu0 %v7938_v18  ;;  %3047 = vmatprep.mubr.bf16.mxu1 %v7938_v18  ;;  %v8099_v18 = vld [vmem:[#allocation5 + $0x544] ss:$16 sps:$4 sm:$0xff]  }
  0xce   :  { %3311 = vmatprep.subr.bf16.mxu1 %v8078_v20  ;;  %v8054_v20 = vld [vmem:[#allocation2 + $0x120] ss:$28 sps:$4 sm:$0xff]  }
  0xd4   :  { %2276 = vmatmul.mubr.bf16.gmra.mrb[36].mxu0 %v7940_v21  ;;  %3048 = vmatmul.mubr.bf16.gmra.mrb[36].mxu1 %v7940_v21  ;;  %v8058_v21 = vld [vmem:[#allocation2 + $0x15c] ss:$28 sps:$4 sm:$0xff]  }
  0xd5   :  { %2285 = vmatprep.mubr.bf16.mxu0 %v7950_v22  ;;  %3057 = vmatprep.mubr.bf16.mxu1 %v7950_v22  ;;  %v8097_v22 = vld [vmem:[#allocation5 + $0x540] ss:$16 sps:$4 sm:$0xff]  }
  0xdc   :  { %2286 = vmatmul.mubr.bf16.gmra.mrb[40].mxu0 %v7952_v23  ;;  %3058 = vmatmul.mubr.bf16.gmra.mrb[40].mxu1 %v7952_v23  ;;  %v8138_v23 = vld [vmem:[#allocation5 + $0x54c] ss:$16 sps:$4 sm:$0xff]  }
  0xdd   :  { %2295 = vmatprep.mubr.bf16.mxu0 %v7962_v24  ;;  %3067 = vmatprep.mubr.bf16.mxu1 %v7962_v24  ;;  %v8111_v24 = vld [vmem:[#allocation5 + $0x564] ss:$16 sps:$4 sm:$0xff]  }
  0xe4   :  { %2296 = vmatmul.mubr.bf16.gmra.mrb[44].mxu0 %v7964_v25  ;;  %3068 = vmatmul.mubr.bf16.gmra.mrb[44].mxu1 %v7964_v25  ;;  %v8136_v25 = vld [vmem:[#allocation5 + $0x548] ss:$16 sps:$4 sm:$0xff]  }
  0xe5   :  { %2305 = vmatprep.mubr.bf16.mxu0 %v7974_v26  ;;  %3077 = vmatprep.mubr.bf16.mxu1 %v7974_v26  ;;  %v8109_v26 = vld [vmem:[#allocation5 + $0x560] ss:$16 sps:$4 sm:$0xff]  }
  0xec   :  { %2306 = vmatmul.mubr.bf16.gmra.mrb[48].mxu0 %v7976_v27  ;;  %3078 = vmatmul.mubr.bf16.gmra.mrb[48].mxu1 %v7976_v27  ;;  %v8141_v27 = vld [vmem:[#allocation5 + $0x56c] ss:$16 sps:$4 sm:$0xff]  }
  0xed   :  { %2315 = vmatprep.mubr.bf16.mxu0 %v7986_v28  ;;  %3087 = vmatprep.mubr.bf16.mxu1 %v7986_v28  ;;  %v8123_v28 = vld [vmem:[#allocation5 + $0x584] ss:$16 sps:$4 sm:$0xff]  }
  0xf4   :  { %2316 = vmatmul.mubr.bf16.gmra.mrb[52].mxu0 %v7988_v29  ;;  %3088 = vmatmul.mubr.bf16.gmra.mrb[52].mxu1 %v7988_v29  ;;  %v8139_v29 = vld [vmem:[#allocation5 + $0x568] ss:$16 sps:$4 sm:$0xff]  }
  0xf5   :  { %2325 = vmatprep.mubr.bf16.mxu0 %v7998_v30  ;;  %3097 = vmatprep.mubr.bf16.mxu1 %v7998_v30  ;;  %v8060_v30 = vld [vmem:[#allocation2 + $0x158] ss:$28 sps:$4 sm:$0xff]  }
  0xfc   :  { %2326 = vmatmul.mubr.bf16.gmra.mrb[56].mxu0 %v8000_v31  ;;  %3098 = vmatmul.mubr.bf16.gmra.mrb[56].mxu1 %v8000_v31  ;;  %v8064_v31 = vld [vmem:[#allocation2 + $0x194] ss:$28 sps:$4 sm:$0xff]  }
  0xfd   :  { %2335 = vmatprep.mubr.bf16.mxu0 %v8010_v32  ;;  %3107 = vmatprep.mubr.bf16.mxu1 %v8010_v32  ;;  %v8121_v32 = vld [vmem:[#allocation5 + $0x580] ss:$16 sps:$4 sm:$0xff]  }
 0x104   :  { %2336 = vmatmul.mubr.bf16.gmra.mrb[60].mxu0 %v8012_v33  ;;  %3108 = vmatmul.mubr.bf16.gmra.mrb[60].mxu1 %v8012_v33  ;;  %v8150_v33 = vld [vmem:[#allocation5 + $0x58c] ss:$16 sps:$4 sm:$0xff]  }
 0x105   :  { %2378 = vmatprep.mubr.bf16.mxu0 %v8024_v34  ;;  %3150 = vmatprep.mubr.bf16.mxu1 %v8024_v34  ;;  %v8135_v34 = vld [vmem:[#allocation5 + $0x5a4] ss:$16 sps:$4 sm:$0xff]  }
 0x10c   :  { %2379 = vmatmul.mubr.bf16.vlgmr.msra.gmra.mrb[0].mxu0 %v8022_v35  ;;  %3151 = vmatmul.mubr.bf16.vlgmr.msra.gmra.mrb[0].mxu1 %v8022_v35  ;;  %v8148_v35 = vld [vmem:[#allocation5 + $0x588] ss:$16 sps:$4 sm:$0xff]  }
 0x10d   :  { %2540 = vmatpush1.bf16.msra.mxu0 %v8025_v36  ;;  %2388 = vmatprep.mubr.bf16.mxu0 %v8028_v37  ;;  %v8133_v36 = vld [vmem:[#allocation5 + $0x5a0] ss:$16 sps:$4 sm:$0xff]  }
 0x10e   :  { %3160 = vmatprep.mubr.bf16.mxu1 %v8028_v37  ;;  %2541 = vmatprep.subr.bf16.mxu0 %v8033_v38  ;;  %v8153_v37 = vld [vmem:[#allocation5 + $0x5ac] ss:$16 sps:$4 sm:$0xff]   ;;  %v8147_v38 = vld [vmem:[#allocation5 + $0x5c4] ss:$16 sps:$4 sm:$0xff]  }
 0x10f   :  { %3312 = vmatpush1.bf16.msra.mxu1 %v8076_v39  ;;  %v8151_v39 = vld [vmem:[#allocation5 + $0x5a8] ss:$16 sps:$4 sm:$0xff]  }
 0x110   :  { %3313 = vmatprep.subr.bf16.mxu1 %v8081_v41  ;;  %v8070_v41 = vld [vmem:[#allocation2 + $0x1cc] ss:$28 sps:$4 sm:$0xff]  }
 0x111   :  { %2542 = vmatpush1.bf16.msra.mxu0 %v8031_v40  ;;  %v8066_v40 = vld [vmem:[#allocation2 + $0x190] ss:$28 sps:$4 sm:$0xff]  }
 0x112   :  { %2543 = vmatprep.subr.bf16.mxu0 %v8039_v42  ;;  %v8145_v42 = vld [vmem:[#allocation5 + $0x5c0] ss:$16 sps:$4 sm:$0xff]  }
 0x113   :  { %3314 = vmatpush1.bf16.msra.mxu1 %v8079_v44  ;;  %v8159_v44 = vld [vmem:[#allocation5 + $0x5e4] ss:$16 sps:$4 sm:$0xff]  }
 0x114   :  { %2389 = vmatmul.mubr.bf16.gmra.mrb[4].mxu0 %v8030_v43  ;;  %3161 = vmatmul.mubr.bf16.gmra.mrb[4].mxu1 %v8030_v43  ;;  %v8162_v43 = vld [vmem:[#allocation5 + $0x5cc] ss:$16 sps:$4 sm:$0xff]  }
 0x115   :  { %2398 = vmatprep.mubr.bf16.mxu0 %v8034_v45  ;;  %3170 = vmatprep.mubr.bf16.mxu1 %v8034_v45  ;;  %v8160_v45 = vld [vmem:[#allocation5 + $0x5c8] ss:$16 sps:$4 sm:$0xff]  }
 0x116   :  { %2544 = vmatpush1.bf16.msra.mxu0 %v8037_v46  ;;  %3315 = vmatprep.subr.bf16.mxu1 %v8090_v47  ;;  %v8157_v46 = vld [vmem:[#allocation5 + $0x5e0] ss:$16 sps:$4 sm:$0xff]   ;;  %v8165_v47 = vld [vmem:[#allocation5 + $0x5ec] ss:$16 sps:$4 sm:$0xff]  }
 0x117   :  { %2545 = vmatprep.subr.bf16.mxu0 %v8045_v48  ;;  %3316 = vmatpush1.bf16.msra.mxu1 %v8088_v49  ;;  %v8163_v48 = vld [vmem:[#allocation5 + $0x5e8] ss:$16 sps:$4 sm:$0xff]   ;;  %v8171_v49 = vld [vmem:[#allocation5 + $0x604] ss:$16 sps:$4 sm:$0xff]  }
 0x118   :  { %3317 = vmatprep.subr.bf16.mxu1 %v8093_v51  ;;  %v8082_v51 = vld [vmem:[#allocation2 + $0x204] ss:$28 sps:$4 sm:$0xff]  }
 0x11a   :  { %2546 = vmatpush1.bf16.msra.mxu0 %v8043_v50  ;;  %v8072_v50 = vld [vmem:[#allocation2 + $0x1c8] ss:$28 sps:$4 sm:$0xff]  }
 0x11b   :  { %2547 = vmatprep.subr.bf16.mxu0 %v8051_v52  ;;  %3318 = vmatpush1.bf16.msra.mxu1 %v8091_v53  ;;  %v8084_v52 = vld [vmem:[#allocation2 + $0x200] ss:$28 sps:$4 sm:$0xff]  }
 0x11c   :  { %2399 = vmatmul.mubr.bf16.gmra.mrb[8].mxu0 %v8036_v54  ;;  %3171 = vmatmul.mubr.bf16.gmra.mrb[8].mxu1 %v8036_v54  ;;  %v8094_v53 = vld [vmem:[#allocation2 + $0x23c] ss:$28 sps:$4 sm:$0xff]  }
 0x11d   :  { %2408 = vmatprep.mubr.bf16.mxu0 %v8040_v55  ;;  %3180 = vmatprep.mubr.bf16.mxu1 %v8040_v55  ;;  %v8096_v54 = vld [vmem:[#allocation2 + $0x238] ss:$28 sps:$4 sm:$0xff]  }
 0x11e   :  { %2548 = vmatpush1.bf16.msra.mxu0 %v8049_v56  ;;  %3319 = vmatprep.subr.bf16.mxu1 %v8102_v57  ;;  %v8106_v55 = vld [vmem:[#allocation2 + $0x274] ss:$28 sps:$4 sm:$0xff]   ;;  %v8118_v57 = vld [vmem:[#allocation2 + $0x2ac] ss:$28 sps:$4 sm:$0xff]  }
 0x11f   :  { %2549 = vmatprep.subr.bf16.mxu0 %v8057_v58  ;;  %3320 = vmatpush1.bf16.msra.mxu1 %v8100_v59  ;;  %v8108_v56 = vld [vmem:[#allocation2 + $0x270] ss:$28 sps:$4 sm:$0xff]   ;;  %v8120_v58 = vld [vmem:[#allocation2 + $0x2a8] ss:$28 sps:$4 sm:$0xff]  }
 0x120   :  { %3321 = vmatprep.subr.bf16.mxu1 %v8105_v61  ;;  %v8130_v59 = vld [vmem:[#allocation2 + $0x2e4] ss:$28 sps:$4 sm:$0xff]  }
 0x121   :  { %v8132_v61 = vld [vmem:[#allocation2 + $0x2e0] ss:$28 sps:$4 sm:$0xff]  }
 0x122   :  { %2550 = vmatpush1.bf16.msra.mxu0 %v8055_v60  ;;  %v8228_v60 = vld [vmem:[#allocation5 + $0x60c] ss:$16 sps:$4 sm:$0xff]  }
 0x123   :  { %2551 = vmatprep.subr.bf16.mxu0 %v8063_v62  ;;  %3322 = vmatpush1.bf16.msra.mxu1 %v8103_v63  ;;  %v8142_v62 = vld [vmem:[#allocation2 + $0x31c] ss:$28 sps:$4 sm:$0xff]  }
 0x124   :  { %2409 = vmatmul.mubr.bf16.gmra.mrb[12].mxu0 %v8042_v0  ;;  %3181 = vmatmul.mubr.bf16.gmra.mrb[12].mxu1 %v8042_v0  ;;  %v8144_v63 = vld [vmem:[#allocation2 + $0x318] ss:$28 sps:$4 sm:$0xff]  }
 0x125   :  { %2418 = vmatprep.mubr.bf16.mxu0 %v8046_v1  ;;  %3190 = vmatprep.mubr.bf16.mxu1 %v8046_v1  ;;  %v8154_v0 = vld [vmem:[#allocation2 + $0x354] ss:$28 sps:$4 sm:$0xff]  }
 0x126   :  { %2552 = vmatpush1.bf16.msra.mxu0 %v8061_v2  ;;  %3323 = vmatprep.subr.bf16.mxu1 %v8114_v3  ;;  %v8156_v1 = vld [vmem:[#allocation2 + $0x350] ss:$28 sps:$4 sm:$0xff]  }
 0x127   :  { %2553 = vmatprep.subr.bf16.mxu0 %v8069_v4  ;;  %3324 = vmatpush1.bf16.msra.mxu1 %v8112_v5  ;;  %v8168_v2 = vld [vmem:[#allocation2 + $0x14] ss:$28 sps:$4 sm:$0xff]   ;;  %v8172_v5 = vld [vmem:[#allocation2 + $0x4c] ss:$28 sps:$4 sm:$0xff]  }
 0x128   :  { %3325 = vmatprep.subr.bf16.mxu1 %v8117_v7  ;;  %v8166_v3 = vld [vmem:[#allocation2 + $0x10] ss:$28 sps:$4 sm:$0xff]   ;;  %v8226_v7 = vld [vmem:[#allocation5 + $0x608] ss:$16 sps:$4 sm:$0xff]  }
 0x129   :  { %v8169_v4 = vld [vmem:[#allocation5 + $0x600] ss:$16 sps:$4 sm:$0xff]  }
 0x12a   :  { %2554 = vmatpush1.bf16.msra.mxu0 %v8067_v6  ;;  %v8180_v6 = vld [vmem:[#allocation5 + $0x624] ss:$16 sps:$4 sm:$0xff]  }
 0x12b   :  { %2555 = vmatprep.subr.bf16.mxu0 %v8075_v8  ;;  %3326 = vmatpush1.bf16.msra.mxu1 %v8115_v9  ;;  %v8231_v8 = vld [vmem:[#allocation5 + $0x62c] ss:$16 sps:$4 sm:$0xff]   ;;  %v8178_v9 = vld [vmem:[#allocation5 + $0x620] ss:$16 sps:$4 sm:$0xff]  }
 0x12c   :  { %2419 = vmatmul.mubr.bf16.gmra.mrb[16].mxu0 %v8048_v10  ;;  %3191 = vmatmul.mubr.bf16.gmra.mrb[16].mxu1 %v8048_v10  ;;  %v8189_v10 = vld [vmem:[#allocation5 + $0x644] ss:$16 sps:$4 sm:$0xff]  }
 0x12d   :  { %2428 = vmatprep.mubr.bf16.mxu0 %v8052_v11  ;;  %3200 = vmatprep.mubr.bf16.mxu1 %v8052_v11  ;;  %v8229_v11 = vld [vmem:[#allocation5 + $0x628] ss:$16 sps:$4 sm:$0xff]  }
 0x12e   :  { %2556 = vmatpush1.bf16.msra.mxu0 %v8073_v12  ;;  %3327 = vmatprep.subr.bf16.mxu1 %v8126_v13  ;;  %v8174_v12 = vld [vmem:[#allocation2 + $0x48] ss:$28 sps:$4 sm:$0xff]  }
 0x12f   :  { %2557 = vmatprep.subr.bf16.mxu0 %v8087_v14  ;;  %3328 = vmatpush1.bf16.msra.mxu1 %v8124_v15  ;;  %v8175_v13 = vld [vmem:[#allocation2 + $0x84] ss:$28 sps:$4 sm:$0xff]   ;;  %v8237_v15 = vld [vmem:[#allocation5 + $0x64c] ss:$16 sps:$4 sm:$0xff]  }
 0x130   :  { %3329 = vmatprep.subr.bf16.mxu1 %v8129_v17  ;;  %v8187_v14 = vld [vmem:[#allocation5 + $0x640] ss:$16 sps:$4 sm:$0xff]   ;;  %v8235_v17 = vld [vmem:[#allocation5 + $0x648] ss:$16 sps:$4 sm:$0xff]  }
 0x132   :  { %2558 = vmatpush1.bf16.msra.mxu0 %v8085_v16  ;;  %v8198_v16 = vld [vmem:[#allocation5 + $0x664] ss:$16 sps:$4 sm:$0xff]  }
 0x133   :  { %2559 = vmatprep.subr.bf16.mxu0 %v8099_v18  ;;  %3330 = vmatpush1.bf16.msra.mxu1 %v8127_v19  ;;  %v8240_v18 = vld [vmem:[#allocation5 + $0x66c] ss:$16 sps:$4 sm:$0xff]   ;;  %v8196_v19 = vld [vmem:[#allocation5 + $0x660] ss:$16 sps:$4 sm:$0xff]  }
 0x134   :  { %2429 = vmatmul.mubr.bf16.gmra.mrb[20].mxu0 %v8054_v20  ;;  %3201 = vmatmul.mubr.bf16.gmra.mrb[20].mxu1 %v8054_v20  ;;  %v8207_v20 = vld [vmem:[#allocation5 + $0x684] ss:$16 sps:$4 sm:$0xff]  }
 0x135   :  { %2438 = vmatprep.mubr.bf16.mxu0 %v8058_v21  ;;  %3210 = vmatprep.mubr.bf16.mxu1 %v8058_v21  ;;  %v8238_v21 = vld [vmem:[#allocation5 + $0x668] ss:$16 sps:$4 sm:$0xff]  }
 0x136   :  { %2560 = vmatpush1.bf16.msra.mxu0 %v8097_v22  ;;  %3331 = vmatprep.subr.bf16.mxu1 %v8138_v23  ;;  %v8177_v22 = vld [vmem:[#allocation2 + $0x80] ss:$28 sps:$4 sm:$0xff]  }
 0x137   :  { %2561 = vmatprep.subr.bf16.mxu0 %v8111_v24  ;;  %3332 = vmatpush1.bf16.msra.mxu1 %v8136_v25  ;;  %v8181_v23 = vld [vmem:[#allocation2 + $0xbc] ss:$28 sps:$4 sm:$0xff]   ;;  %v8205_v24 = vld [vmem:[#allocation5 + $0x680] ss:$16 sps:$4 sm:$0xff]  }
 0x138   :  { %3333 = vmatprep.subr.bf16.mxu1 %v8141_v27  ;;  %v8249_v25 = vld [vmem:[#allocation5 + $0x68c] ss:$16 sps:$4 sm:$0xff]   ;;  %v8247_v27 = vld [vmem:[#allocation5 + $0x688] ss:$16 sps:$4 sm:$0xff]  }
 0x13a   :  { %2562 = vmatpush1.bf16.msra.mxu0 %v8109_v26  ;;  %v8216_v26 = vld [vmem:[#allocation5 + $0x6a4] ss:$16 sps:$4 sm:$0xff]  }
 0x13b   :  { %2563 = vmatprep.subr.bf16.mxu0 %v8123_v28  ;;  %3334 = vmatpush1.bf16.msra.mxu1 %v8139_v29  ;;  %v8252_v28 = vld [vmem:[#allocation5 + $0x6ac] ss:$16 sps:$4 sm:$0xff]   ;;  %v8214_v29 = vld [vmem:[#allocation5 + $0x6a0] ss:$16 sps:$4 sm:$0xff]  }
 0x13c   :  { %2439 = vmatmul.mubr.bf16.gmra.mrb[24].mxu0 %v8060_v30  ;;  %3211 = vmatmul.mubr.bf16.gmra.mrb[24].mxu1 %v8060_v30  ;;  %v8225_v30 = vld [vmem:[#allocation5 + $0x6c4] ss:$16 sps:$4 sm:$0xff]  }
 0x13d   :  { %2448 = vmatprep.mubr.bf16.mxu0 %v8064_v31  ;;  %3220 = vmatprep.mubr.bf16.mxu1 %v8064_v31  ;;  %v8250_v31 = vld [vmem:[#allocation5 + $0x6a8] ss:$16 sps:$4 sm:$0xff]  }
 0x13e   :  { %2564 = vmatpush1.bf16.msra.mxu0 %v8121_v32  ;;  %3335 = vmatprep.subr.bf16.mxu1 %v8150_v33  ;;  %v8183_v32 = vld [vmem:[#allocation2 + $0xb8] ss:$28 sps:$4 sm:$0xff]  }
 0x13f   :  { %2565 = vmatprep.subr.bf16.mxu0 %v8135_v34  ;;  %3336 = vmatpush1.bf16.msra.mxu1 %v8148_v35  ;;  %v8184_v33 = vld [vmem:[#allocation2 + $0xf4] ss:$28 sps:$4 sm:$0xff]   ;;  %v8258_v35 = vld [vmem:[#allocation5 + $0x6cc] ss:$16 sps:$4 sm:$0xff]  }
 0x140   :  { %3337 = vmatprep.subr.bf16.mxu1 %v8153_v37  ;;  %v8223_v34 = vld [vmem:[#allocation5 + $0x6c0] ss:$16 sps:$4 sm:$0xff]   ;;  %v8256_v37 = vld [vmem:[#allocation5 + $0x6c8] ss:$16 sps:$4 sm:$0xff]  }
 0x142   :  { %2566 = vmatpush1.bf16.msra.mxu0 %v8133_v36  ;;  %v8246_v36 = vld [vmem:[#allocation5 + $0x6e4] ss:$16 sps:$4 sm:$0xff]  }
 0x143   :  { %2567 = vmatprep.subr.bf16.mxu0 %v8147_v38  ;;  %3338 = vmatpush1.bf16.msra.mxu1 %v8151_v39  ;;  %v8261_v38 = vld [vmem:[#allocation5 + $0x6ec] ss:$16 sps:$4 sm:$0xff]   ;;  %v8244_v39 = vld [vmem:[#allocation5 + $0x6e0] ss:$16 sps:$4 sm:$0xff]  }
 0x144   :  { %2449 = vmatmul.mubr.bf16.gmra.mrb[28].mxu0 %v8066_v40  ;;  %3221 = vmatmul.mubr.bf16.gmra.mrb[28].mxu1 %v8066_v40  ;;  %v8259_v40 = vld [vmem:[#allocation5 + $0x6e8] ss:$16 sps:$4 sm:$0xff]  }
 0x145   :  { %2458 = vmatprep.mubr.bf16.mxu0 %v8070_v41  ;;  %3230 = vmatprep.mubr.bf16.mxu1 %v8070_v41  ;;  %v8186_v41 = vld [vmem:[#allocation2 + $0xf0] ss:$28 sps:$4 sm:$0xff]  }
 0x146   :  { %2568 = vmatpush1.bf16.msra.mxu0 %v8145_v42  ;;  %3339 = vmatprep.subr.bf16.mxu1 %v8162_v43  ;;  %v8190_v42 = vld [vmem:[#allocation2 + $0x12c] ss:$28 sps:$4 sm:$0xff]  }
 0x147   :  { %2569 = vmatprep.subr.bf16.mxu0 %v8159_v44  ;;  %3340 = vmatpush1.bf16.msra.mxu1 %v8160_v45  ;;  %v8192_v43 = vld [vmem:[#allocation2 + $0x128] ss:$28 sps:$4 sm:$0xff]   ;;  %v8195_v45 = vld [vmem:[#allocation2 + $0x160] ss:$28 sps:$4 sm:$0xff]  }
 0x148   :  { %3341 = vmatprep.subr.bf16.mxu1 %v8165_v47  ;;  %v8193_v44 = vld [vmem:[#allocation2 + $0x164] ss:$28 sps:$4 sm:$0xff]   ;;  %v8201_v47 = vld [vmem:[#allocation2 + $0x198] ss:$28 sps:$4 sm:$0xff]  }
 0x14a   :  { %2570 = vmatpush1.bf16.msra.mxu0 %v8157_v46  ;;  %v8199_v46 = vld [vmem:[#allocation2 + $0x19c] ss:$28 sps:$4 sm:$0xff]  }
 0x14b   :  { %3342 = vmatpush1.bf16.msra.mxu1 %v8163_v48  ;;  %2732 = vmatprep.subr.bf16.mxu0 %v8171_v49  ;;  %v8202_v48 = vld [vmem:[#allocation2 + $0x1d4] ss:$28 sps:$4 sm:$0xff]  }
 0x14c   :  { %2459 = vmatmul.mubr.bf16.gmra.mrb[32].mxu0 %v8072_v50  ;;  %3231 = vmatmul.mubr.bf16.gmra.mrb[32].mxu1 %v8072_v50  ;;  %v8204_v49 = vld [vmem:[#allocation2 + $0x1d0] ss:$28 sps:$4 sm:$0xff]  }
 0x14d   :  { %2468 = vmatprep.mubr.bf16.mxu0 %v8082_v51  ;;  %3240 = vmatprep.mubr.bf16.mxu1 %v8082_v51  ;;  %v8208_v50 = vld [vmem:[#allocation2 + $0x20c] ss:$28 sps:$4 sm:$0xff]  }
 0x14e   :  { %3504 = vmatprep.subr.bf16.mxu1 %v8228_v60  ;;  %v8210_v51 = vld [vmem:[#allocation2 + $0x208] ss:$28 sps:$4 sm:$0xff]   ;;  %v8280_v60 = vld [vmem:[#allocation7 + $0xc] ss:$16 sps:$4 sm:$0xff]  }
 0x154   :  { %2469 = vmatmul.mubr.bf16.gmra.mrb[36].mxu0 %v8084_v52  ;;  %3241 = vmatmul.mubr.bf16.gmra.mrb[36].mxu1 %v8084_v52  ;;  %v8211_v52 = vld [vmem:[#allocation2 + $0x244] ss:$28 sps:$4 sm:$0xff]  }
 0x155   :  { %2478 = vmatprep.mubr.bf16.mxu0 %v8094_v53  ;;  %3250 = vmatprep.mubr.bf16.mxu1 %v8094_v53  ;;  %v8213_v53 = vld [vmem:[#allocation2 + $0x240] ss:$28 sps:$4 sm:$0xff]  }
 0x15c   :  { %2479 = vmatmul.mubr.bf16.gmra.mrb[40].mxu0 %v8096_v54  ;;  %3251 = vmatmul.mubr.bf16.gmra.mrb[40].mxu1 %v8096_v54  ;;  %v8217_v54 = vld [vmem:[#allocation2 + $0x27c] ss:$28 sps:$4 sm:$0xff]  }
 0x15d   :  { %2488 = vmatprep.mubr.bf16.mxu0 %v8106_v55  ;;  %3260 = vmatprep.mubr.bf16.mxu1 %v8106_v55  ;;  %v8219_v55 = vld [vmem:[#allocation2 + $0x278] ss:$28 sps:$4 sm:$0xff]  }
 0x164   :  { %2489 = vmatmul.mubr.bf16.gmra.mrb[44].mxu0 %v8108_v56  ;;  %3261 = vmatmul.mubr.bf16.gmra.mrb[44].mxu1 %v8108_v56  ;;  %v8220_v56 = vld [vmem:[#allocation2 + $0x2b4] ss:$28 sps:$4 sm:$0xff]  }
 0x165   :  { %2498 = vmatprep.mubr.bf16.mxu0 %v8118_v57  ;;  %3270 = vmatprep.mubr.bf16.mxu1 %v8118_v57  ;;  %v8276_v57 = vld [vmem:[#allocation7 + $0x4] ss:$16 sps:$4 sm:$0xff]  }
 0x16c   :  { %2499 = vmatmul.mubr.bf16.gmra.mrb[48].mxu0 %v8120_v58  ;;  %3271 = vmatmul.mubr.bf16.gmra.mrb[48].mxu1 %v8120_v58  ;;  %v8222_v58 = vld [vmem:[#allocation2 + $0x2b0] ss:$28 sps:$4 sm:$0xff]  }
 0x16d   :  { %2508 = vmatprep.mubr.bf16.mxu0 %v8130_v59  ;;  %3280 = vmatprep.mubr.bf16.mxu1 %v8130_v59  ;;  %v8232_v59 = vld [vmem:[#allocation2 + $0x2ec] ss:$28 sps:$4 sm:$0xff]  }
 0x174   :  { %2509 = vmatmul.mubr.bf16.gmra.mrb[52].mxu0 %v8132_v61  ;;  %3281 = vmatmul.mubr.bf16.gmra.mrb[52].mxu1 %v8132_v61  ;;  %v8234_v61 = vld [vmem:[#allocation2 + $0x2e8] ss:$28 sps:$4 sm:$0xff]  }
 0x175   :  { %2518 = vmatprep.mubr.bf16.mxu0 %v8142_v62  ;;  %3290 = vmatprep.mubr.bf16.mxu1 %v8142_v62  ;;  %v8241_v62 = vld [vmem:[#allocation2 + $0x324] ss:$28 sps:$4 sm:$0xff]  }
 0x17c   :  { %2519 = vmatmul.mubr.bf16.gmra.mrb[56].mxu0 %v8144_v63  ;;  %3291 = vmatmul.mubr.bf16.gmra.mrb[56].mxu1 %v8144_v63  ;;  %v8243_v63 = vld [vmem:[#allocation2 + $0x320] ss:$28 sps:$4 sm:$0xff]  }
 0x17d   :  { %2528 = vmatprep.mubr.bf16.mxu0 %v8154_v0  ;;  %3300 = vmatprep.mubr.bf16.mxu1 %v8154_v0  ;;  %v8253_v0 = vld [vmem:[#allocation2 + $0x35c] ss:$28 sps:$4 sm:$0xff]  }
 0x184   :  { %2529 = vmatmul.mubr.bf16.gmra.mrb[60].mxu0 %v8156_v1  ;;  %3301 = vmatmul.mubr.bf16.gmra.mrb[60].mxu1 %v8156_v1  ;;  %v8255_v1 = vld [vmem:[#allocation2 + $0x358] ss:$28 sps:$4 sm:$0xff]  }
 0x185   :  { %2571 = vmatprep.mubr.bf16.mxu0 %v8168_v2  ;;  %3343 = vmatprep.mubr.bf16.mxu1 %v8168_v2  ;;  %v8630_v2 = vmov 0  }
 0x18c   :  { %2572 = vmatmul.mubr.bf16.vlgmr.msra.gmra.mrb[0].mxu0 %v8166_v3  ;;  %3344 = vmatmul.mubr.bf16.vlgmr.msra.gmra.mrb[0].mxu1 %v8166_v3  ;;  %v8262_v3 = vld [vmem:[#allocation2 + $0x18] ss:$28 sps:$4 sm:$0xff]  }
 0x18d   :  { %2733 = vmatpush1.bf16.msra.mxu0 %v8169_v4  ;;  %2581 = vmatprep.mubr.bf16.mxu0 %v8172_v5  ;;  %v8274_v4 = vld [vmem:[#allocation7] ss:$16 sps:$4 sm:$0xff]  }
 0x18e   :  { %3353 = vmatprep.mubr.bf16.mxu1 %v8172_v5  ;;  %2734 = vmatprep.subr.bf16.mxu0 %v8180_v6  ;;  %v8278_v5 = vld [vmem:[#allocation7 + $0x8] ss:$16 sps:$4 sm:$0xff]   ;;  %v8283_v6 = vld [vmem:[#allocation7 + $0x24] ss:$16 sps:$4 sm:$0xff]  }
 0x18f   :  { %3505 = vmatpush1.bf16.msra.mxu1 %v8226_v7  ;;  %v8287_v7 = vld [vmem:[#allocation7 + $0x2c] ss:$16 sps:$4 sm:$0xff]  }
 0x190   :  { %3506 = vmatprep.subr.bf16.mxu1 %v8231_v8  ;;  %v8281_v8 = vld [vmem:[#allocation7 + $0x20] ss:$16 sps:$4 sm:$0xff]  }
 0x191   :  { %2735 = vmatpush1.bf16.msra.mxu0 %v8178_v9  ;;  %v8285_v9 = vld [vmem:[#allocation7 + $0x28] ss:$16 sps:$4 sm:$0xff]  }
 0x192   :  { %2736 = vmatprep.subr.bf16.mxu0 %v8189_v10  ;;  %v8290_v10 = vld [vmem:[#allocation7 + $0x44] ss:$16 sps:$4 sm:$0xff]  }
 0x193   :  { %3507 = vmatpush1.bf16.msra.mxu1 %v8229_v11  ;;  %v8294_v11 = vld [vmem:[#allocation7 + $0x4c] ss:$16 sps:$4 sm:$0xff]  }
 0x194   :  { %2582 = vmatmul.mubr.bf16.gmra.mrb[4].mxu0 %v8174_v12  ;;  %3354 = vmatmul.mubr.bf16.gmra.mrb[4].mxu1 %v8174_v12  ;;  %v8263_v12 = vld [vmem:[#allocation2 + $0x50] ss:$28 sps:$4 sm:$0xff]  }
 0x195   :  { %2591 = vmatprep.mubr.bf16.mxu0 %v8175_v13  ;;  %3363 = vmatprep.mubr.bf16.mxu1 %v8175_v13  ;;  %v8288_v13 = vld [vmem:[#allocation7 + $0x40] ss:$16 sps:$4 sm:$0xff]  }
 0x196   :  { %2737 = vmatpush1.bf16.msra.mxu0 %v8187_v14  ;;  %3508 = vmatprep.subr.bf16.mxu1 %v8237_v15  ;;  %v8292_v14 = vld [vmem:[#allocation7 + $0x48] ss:$16 sps:$4 sm:$0xff]   ;;  %v8297_v15 = vld [vmem:[#allocation7 + $0x64] ss:$16 sps:$4 sm:$0xff]  }
 0x197   :  { %2738 = vmatprep.subr.bf16.mxu0 %v8198_v16  ;;  %3509 = vmatpush1.bf16.msra.mxu1 %v8235_v17  ;;  %v8301_v16 = vld [vmem:[#allocation7 + $0x6c] ss:$16 sps:$4 sm:$0xff]   ;;  %v8295_v17 = vld [vmem:[#allocation7 + $0x60] ss:$16 sps:$4 sm:$0xff]  }
 0x198   :  { %3510 = vmatprep.subr.bf16.mxu1 %v8240_v18  ;;  %v8299_v18 = vld [vmem:[#allocation7 + $0x68] ss:$16 sps:$4 sm:$0xff]  }
 0x19a   :  { %2739 = vmatpush1.bf16.msra.mxu0 %v8196_v19  ;;  %v8304_v19 = vld [vmem:[#allocation7 + $0x84] ss:$16 sps:$4 sm:$0xff]  }
 0x19b   :  { %2740 = vmatprep.subr.bf16.mxu0 %v8207_v20  ;;  %3511 = vmatpush1.bf16.msra.mxu1 %v8238_v21  ;;  %v8307_v20 = vld [vmem:[#allocation7 + $0x8c] ss:$16 sps:$4 sm:$0xff]   ;;  %v8264_v21 = vld [vmem:[#allocation2 + $0x88] ss:$28 sps:$4 sm:$0xff]  }
 0x19c   :  { %2592 = vmatmul.mubr.bf16.gmra.mrb[8].mxu0 %v8177_v22  ;;  %3364 = vmatmul.mubr.bf16.gmra.mrb[8].mxu1 %v8177_v22  ;;  %v8302_v22 = vld [vmem:[#allocation7 + $0x80] ss:$16 sps:$4 sm:$0xff]  }
 0x19d   :  { %2601 = vmatprep.mubr.bf16.mxu0 %v8181_v23  ;;  %3373 = vmatprep.mubr.bf16.mxu1 %v8181_v23  ;;  %v8305_v23 = vld [vmem:[#allocation7 + $0x88] ss:$16 sps:$4 sm:$0xff]  }
 0x19e   :  { %2741 = vmatpush1.bf16.msra.mxu0 %v8205_v24  ;;  %3512 = vmatprep.subr.bf16.mxu1 %v8249_v25  ;;  %v8310_v24 = vld [vmem:[#allocation7 + $0xa4] ss:$16 sps:$4 sm:$0xff]   ;;  %v8313_v25 = vld [vmem:[#allocation7 + $0xac] ss:$16 sps:$4 sm:$0xff]  }
 0x19f   :  { %2742 = vmatprep.subr.bf16.mxu0 %v8216_v26  ;;  %3513 = vmatpush1.bf16.msra.mxu1 %v8247_v27  ;;  %v8308_v26 = vld [vmem:[#allocation7 + $0xa0] ss:$16 sps:$4 sm:$0xff]   ;;  %v8311_v27 = vld [vmem:[#allocation7 + $0xa8] ss:$16 sps:$4 sm:$0xff]  }
 0x1a0   :  { %3514 = vmatprep.subr.bf16.mxu1 %v8252_v28  ;;  %v8316_v28 = vld [vmem:[#allocation7 + $0xc4] ss:$16 sps:$4 sm:$0xff]  }
 0x1a2   :  { %2743 = vmatpush1.bf16.msra.mxu0 %v8214_v29  ;;  %v8319_v29 = vld [vmem:[#allocation7 + $0xcc] ss:$16 sps:$4 sm:$0xff]  }
 0x1a3   :  { %2744 = vmatprep.subr.bf16.mxu0 %v8225_v30  ;;  %3515 = vmatpush1.bf16.msra.mxu1 %v8250_v31  ;;  %v8265_v30 = vld [vmem:[#allocation2 + $0xc0] ss:$28 sps:$4 sm:$0xff]  }
 0x1a4   :  { %2602 = vmatmul.mubr.bf16.gmra.mrb[12].mxu0 %v8183_v32  ;;  %3374 = vmatmul.mubr.bf16.gmra.mrb[12].mxu1 %v8183_v32  ;;  %v8314_v31 = vld [vmem:[#allocation7 + $0xc0] ss:$16 sps:$4 sm:$0xff]   ;;  %v8317_v32 = vld [vmem:[#allocation7 + $0xc8] ss:$16 sps:$4 sm:$0xff]  }
 0x1a5   :  { %2611 = vmatprep.mubr.bf16.mxu0 %v8184_v33  ;;  %3383 = vmatprep.mubr.bf16.mxu1 %v8184_v33  ;;  %v8322_v33 = vld [vmem:[#allocation7 + $0xe4] ss:$16 sps:$4 sm:$0xff]  }
 0x1a6   :  { %2745 = vmatpush1.bf16.msra.mxu0 %v8223_v34  ;;  %3516 = vmatprep.subr.bf16.mxu1 %v8258_v35  ;;  %v8325_v34 = vld [vmem:[#allocation7 + $0xec] ss:$16 sps:$4 sm:$0xff]   ;;  %v8320_v35 = vld [vmem:[#allocation7 + $0xe0] ss:$16 sps:$4 sm:$0xff]  }
 0x1a7   :  { %2746 = vmatprep.subr.bf16.mxu0 %v8246_v36  ;;  %3517 = vmatpush1.bf16.msra.mxu1 %v8256_v37  ;;  %v8323_v36 = vld [vmem:[#allocation7 + $0xe8] ss:$16 sps:$4 sm:$0xff]   ;;  %v8328_v37 = vld [vmem:[#allocation7 + $0x104] ss:$16 sps:$4 sm:$0xff]  }
 0x1a8   :  { %3518 = vmatprep.subr.bf16.mxu1 %v8261_v38  ;;  %v8331_v38 = vld [vmem:[#allocation7 + $0x10c] ss:$16 sps:$4 sm:$0xff]  }
 0x1aa   :  { %2747 = vmatpush1.bf16.msra.mxu0 %v8244_v39  ;;  %v8266_v39 = vld [vmem:[#allocation2 + $0xf8] ss:$28 sps:$4 sm:$0xff]  }
 0x1ab   :  { %3519 = vmatpush1.bf16.msra.mxu1 %v8259_v40  ;;  %4679 = vmatprep.subr.bf16.mxu0 %v8276_v57  ;;  %v8326_v40 = vld [vmem:[#allocation7 + $0x100] ss:$16 sps:$4 sm:$0xff]   ;;  %v8268_v57 = vld [vmem:[#allocation2 + $0x168] ss:$28 sps:$4 sm:$0xff]  }
 0x1ac   :  { %2612 = vmatmul.mubr.bf16.gmra.mrb[16].mxu0 %v8186_v41  ;;  %3384 = vmatmul.mubr.bf16.gmra.mrb[16].mxu1 %v8186_v41  ;;  %v8329_v41 = vld [vmem:[#allocation7 + $0x108] ss:$16 sps:$4 sm:$0xff]  }
 0x1ad   :  { %2621 = vmatprep.mubr.bf16.mxu0 %v8190_v42  ;;  %3393 = vmatprep.mubr.bf16.mxu1 %v8190_v42  ;;  %v8334_v42 = vld [vmem:[#allocation7 + $0x124] ss:$16 sps:$4 sm:$0xff]  }
 0x1ae   :  { %5065 = vmatprep.subr.bf16.mxu1 %v8280_v60  ;;  %v8358_v60 = vld [vmem:[#allocation7 + $0x1a4] ss:$16 sps:$4 sm:$0xff]  }
 0x1b4   :  { %2622 = vmatmul.mubr.bf16.gmra.mrb[20].mxu0 %v8192_v43  ;;  %3394 = vmatmul.mubr.bf16.gmra.mrb[20].mxu1 %v8192_v43  ;;  %v8337_v43 = vld [vmem:[#allocation7 + $0x12c] ss:$16 sps:$4 sm:$0xff]  }
 0x1b5   :  { %2631 = vmatprep.mubr.bf16.mxu0 %v8193_v44  ;;  %3403 = vmatprep.mubr.bf16.mxu1 %v8193_v44  ;;  %v8332_v44 = vld [vmem:[#allocation7 + $0x120] ss:$16 sps:$4 sm:$0xff]  }
 0x1bc   :  { %2632 = vmatmul.mubr.bf16.gmra.mrb[24].mxu0 %v8195_v45  ;;  %3404 = vmatmul.mubr.bf16.gmra.mrb[24].mxu1 %v8195_v45  ;;  %v8335_v45 = vld [vmem:[#allocation7 + $0x128] ss:$16 sps:$4 sm:$0xff]  }
 0x1bd   :  { %2641 = vmatprep.mubr.bf16.mxu0 %v8199_v46  ;;  %3413 = vmatprep.mubr.bf16.mxu1 %v8199_v46  ;;  %v8340_v46 = vld [vmem:[#allocation7 + $0x144] ss:$16 sps:$4 sm:$0xff]  }
 0x1c4   :  { %2642 = vmatmul.mubr.bf16.gmra.mrb[28].mxu0 %v8201_v47  ;;  %3414 = vmatmul.mubr.bf16.gmra.mrb[28].mxu1 %v8201_v47  ;;  %v8343_v47 = vld [vmem:[#allocation7 + $0x14c] ss:$16 sps:$4 sm:$0xff]  }
 0x1c5   :  { %2651 = vmatprep.mubr.bf16.mxu0 %v8202_v48  ;;  %3423 = vmatprep.mubr.bf16.mxu1 %v8202_v48  ;;  %v8267_v48 = vld [vmem:[#allocation2 + $0x130] ss:$28 sps:$4 sm:$0xff]  }
 0x1cc   :  { %2652 = vmatmul.mubr.bf16.gmra.mrb[32].mxu0 %v8204_v49  ;;  %3424 = vmatmul.mubr.bf16.gmra.mrb[32].mxu1 %v8204_v49  ;;  %v8338_v49 = vld [vmem:[#allocation7 + $0x140] ss:$16 sps:$4 sm:$0xff]  }
 0x1cd   :  { %2661 = vmatprep.mubr.bf16.mxu0 %v8208_v50  ;;  %3433 = vmatprep.mubr.bf16.mxu1 %v8208_v50  ;;  %v8341_v50 = vld [vmem:[#allocation7 + $0x148] ss:$16 sps:$4 sm:$0xff]  }
 0x1d4   :  { %2662 = vmatmul.mubr.bf16.gmra.mrb[36].mxu0 %v8210_v51  ;;  %3434 = vmatmul.mubr.bf16.gmra.mrb[36].mxu1 %v8210_v51  ;;  %v8346_v51 = vld [vmem:[#allocation7 + $0x164] ss:$16 sps:$4 sm:$0xff]  }
 0x1d5   :  { %2671 = vmatprep.mubr.bf16.mxu0 %v8211_v52  ;;  %3443 = vmatprep.mubr.bf16.mxu1 %v8211_v52  ;;  %v8349_v52 = vld [vmem:[#allocation7 + $0x16c] ss:$16 sps:$4 sm:$0xff]  }
 0x1dc   :  { %2672 = vmatmul.mubr.bf16.gmra.mrb[40].mxu0 %v8213_v53  ;;  %3444 = vmatmul.mubr.bf16.gmra.mrb[40].mxu1 %v8213_v53  ;;  %v8344_v53 = vld [vmem:[#allocation7 + $0x160] ss:$16 sps:$4 sm:$0xff]  }
 0x1dd   :  { %2681 = vmatprep.mubr.bf16.mxu0 %v8217_v54  ;;  %3453 = vmatprep.mubr.bf16.mxu1 %v8217_v54  ;;  %v8347_v54 = vld [vmem:[#allocation7 + $0x168] ss:$16 sps:$4 sm:$0xff]  }
 0x1e4   :  { %2682 = vmatmul.mubr.bf16.gmra.mrb[44].mxu0 %v8219_v55  ;;  %3454 = vmatmul.mubr.bf16.gmra.mrb[44].mxu1 %v8219_v55  ;;  %v8352_v55 = vld [vmem:[#allocation7 + $0x184] ss:$16 sps:$4 sm:$0xff]  }
 0x1e5   :  { %2691 = vmatprep.mubr.bf16.mxu0 %v8220_v56  ;;  %3463 = vmatprep.mubr.bf16.mxu1 %v8220_v56  ;;  %v8355_v56 = vld [vmem:[#allocation7 + $0x18c] ss:$16 sps:$4 sm:$0xff]  }
 0x1ec   :  { %2692 = vmatmul.mubr.bf16.gmra.mrb[48].mxu0 %v8222_v58  ;;  %3464 = vmatmul.mubr.bf16.gmra.mrb[48].mxu1 %v8222_v58  ;;  %v8350_v58 = vld [vmem:[#allocation7 + $0x180] ss:$16 sps:$4 sm:$0xff]  }
 0x1ed   :  { %2701 = vmatprep.mubr.bf16.mxu0 %v8232_v59  ;;  %3473 = vmatprep.mubr.bf16.mxu1 %v8232_v59  ;;  %v8353_v59 = vld [vmem:[#allocation7 + $0x188] ss:$16 sps:$4 sm:$0xff]  }
 0x1f4   :  { %2702 = vmatmul.mubr.bf16.gmra.mrb[52].mxu0 %v8234_v61  ;;  %3474 = vmatmul.mubr.bf16.gmra.mrb[52].mxu1 %v8234_v61  ;;  %v8361_v61 = vld [vmem:[#allocation7 + $0x1ac] ss:$16 sps:$4 sm:$0xff]  }
 0x1f5   :  { %2711 = vmatprep.mubr.bf16.mxu0 %v8241_v62  ;;  %3483 = vmatprep.mubr.bf16.mxu1 %v8241_v62  ;;  %v8356_v62 = vld [vmem:[#allocation7 + $0x1a0] ss:$16 sps:$4 sm:$0xff]  }
 0x1fc   :  { %2712 = vmatmul.mubr.bf16.gmra.mrb[56].mxu0 %v8243_v63  ;;  %3484 = vmatmul.mubr.bf16.gmra.mrb[56].mxu1 %v8243_v63  ;;  %v8359_v63 = vld [vmem:[#allocation7 + $0x1a8] ss:$16 sps:$4 sm:$0xff]  }
 0x1fd   :  { %2721 = vmatprep.mubr.bf16.mxu0 %v8253_v0  ;;  %3493 = vmatprep.mubr.bf16.mxu1 %v8253_v0  ;;  %v8364_v0 = vld [vmem:[#allocation7 + $0x1c4] ss:$16 sps:$4 sm:$0xff]  }
 0x204   :  { %2722 = vmatmul.mubr.bf16.gmra.mrb[60].mxu0 %v8255_v1  ;;  %3494 = vmatmul.mubr.bf16.gmra.mrb[60].mxu1 %v8255_v1  ;;  %v8367_v1 = vld [vmem:[#allocation7 + $0x1cc] ss:$16 sps:$4 sm:$0xff]  }
 0x205   :  { %2764 = vmatprep.mubr.bf16.mxu0 %v8630_v2  ;;  %3536 = vmatprep.mubr.bf16.mxu1 %v8630_v2 }
 0x20c   :  { %2765 = vmatmul.mubr.bf16.vlgmr.msra.gmra.mrb[0].mxu0 %v8262_v3  ;;  %3537 = vmatmul.mubr.bf16.vlgmr.msra.gmra.mrb[0].mxu1 %v8262_v3  ;;  %v8269_v3 = vld [vmem:[#allocation2 + $0x1a0] ss:$28 sps:$4 sm:$0xff]  }
 0x20d   :  { %2774 = vmatprep.mubr.bf16.mxu0 %v8630_v2  ;;  %3546 = vmatprep.mubr.bf16.mxu1 %v8630_v2 }
 0x20e   :  { %4680 = vmatpush1.bf16.msra.mxu0 %v8274_v4  ;;  %5066 = vmatpush1.bf16.msra.mxu1 %v8278_v5  ;;  %v8362_v4 = vld [vmem:[#allocation7 + $0x1c0] ss:$16 sps:$4 sm:$0xff]   ;;  %v8365_v5 = vld [vmem:[#allocation7 + $0x1c8] ss:$16 sps:$4 sm:$0xff]  }
 0x20f   :  { %4681 = vmatprep.subr.bf16.mxu0 %v8283_v6  ;;  %5067 = vmatprep.subr.bf16.mxu1 %v8287_v7  ;;  %v8270_v6 = vld [vmem:[#allocation2 + $0x1d8] ss:$28 sps:$4 sm:$0xff]   ;;  %v8271_v7 = vld [vmem:[#allocation2 + $0x210] ss:$28 sps:$4 sm:$0xff]  }
 0x212   :  { %4682 = vmatpush1.bf16.msra.mxu0 %v8281_v8  ;;  %5068 = vmatpush1.bf16.msra.mxu1 %v8285_v9  ;;  %v8272_v8 = vld [vmem:[#allocation2 + $0x248] ss:$28 sps:$4 sm:$0xff]   ;;  %v8273_v9 = vld [vmem:[#allocation2 + $0x280] ss:$28 sps:$4 sm:$0xff]  }
 0x213   :  { %4683 = vmatprep.subr.bf16.mxu0 %v8290_v10  ;;  %5069 = vmatprep.subr.bf16.mxu1 %v8294_v11  ;;  %v8370_v10 = vld [vmem:[#allocation7 + $0x1e4] ss:$16 sps:$4 sm:$0xff]   ;;  %v8373_v11 = vld [vmem:[#allocation7 + $0x1ec] ss:$16 sps:$4 sm:$0xff]  }
 0x214   :  { %2775 = vmatmul.mubr.bf16.gmra.mrb[4].mxu0 %v8263_v12  ;;  %3547 = vmatmul.mubr.bf16.gmra.mrb[4].mxu1 %v8263_v12  ;;  %v8368_v12 = vld [vmem:[#allocation7 + $0x1e0] ss:$16 sps:$4 sm:$0xff]  }
 0x215   :  { %2784 = vmatprep.mubr.bf16.mxu0 %v8630_v2  ;;  %3556 = vmatprep.mubr.bf16.mxu1 %v8630_v2 }
 0x216   :  { %4684 = vmatpush1.bf16.msra.mxu0 %v8288_v13  ;;  %5070 = vmatpush1.bf16.msra.mxu1 %v8292_v14  ;;  %v8371_v13 = vld [vmem:[#allocation7 + $0x1e8] ss:$16 sps:$4 sm:$0xff]  }
 0x217   :  { %4685 = vmatprep.subr.bf16.mxu0 %v8297_v15  ;;  %5071 = vmatprep.subr.bf16.mxu1 %v8301_v16  ;;  %v8277_v14 = vld [vmem:[#allocation2 + $0x2b8] ss:$28 sps:$4 sm:$0xff]   ;;  %v8284_v16 = vld [vmem:[#allocation2 + $0x2f0] ss:$28 sps:$4 sm:$0xff]  }
 0x218   :  { %v8376_v15 = vld [vmem:[#allocation7 + $0x204] ss:$16 sps:$4 sm:$0xff]  }
 0x21a   :  { %4686 = vmatpush1.bf16.msra.mxu0 %v8295_v17  ;;  %5072 = vmatpush1.bf16.msra.mxu1 %v8299_v18  ;;  %v8379_v17 = vld [vmem:[#allocation7 + $0x20c] ss:$16 sps:$4 sm:$0xff]   ;;  %v8291_v18 = vld [vmem:[#allocation2 + $0x328] ss:$28 sps:$4 sm:$0xff]  }
 0x21b   :  { %4687 = vmatprep.subr.bf16.mxu0 %v8304_v19  ;;  %5073 = vmatprep.subr.bf16.mxu1 %v8307_v20  ;;  %v8298_v19 = vld [vmem:[#allocation2 + $0x360] ss:$28 sps:$4 sm:$0xff]   ;;  %v437_v20 = vlaneseq }
 0x21c   :  { %2785 = vmatmul.mubr.bf16.gmra.mrb[8].mxu0 %v8264_v21  ;;  %3557 = vmatmul.mubr.bf16.gmra.mrb[8].mxu1 %v8264_v21 }
 0x21d   :  { %2794 = vmatprep.mubr.bf16.mxu0 %v8630_v2  ;;  %3566 = vmatprep.mubr.bf16.mxu1 %v8630_v2  ;;  %v8767_v21 = vshrl.u32 %v437_v20, 7 }
 0x21e   :  { %4688 = vmatpush1.bf16.msra.mxu0 %v8302_v22  ;;  %5074 = vmatpush1.bf16.msra.mxu1 %v8305_v23 }
 0x21f   :  { %4689 = vmatprep.subr.bf16.mxu0 %v8310_v24  ;;  %5075 = vmatprep.subr.bf16.mxu1 %v8313_v25  ;;  %v439_v22 = vsub.s32 0, %v8767_v21  ;;  %v447_v23 = vsub.s32 2, %v8767_v21  ;;  %v435_v24 = vld [vmem:[%s9246_s2] sm:$0xf]  ;;  %v443_v25 = vsub.s32 1, %v8767_v21 }
 0x222   :  { %4690 = vmatpush1.bf16.msra.mxu0 %v8308_v26  ;;  %5076 = vmatpush1.bf16.msra.mxu1 %v8311_v27  ;;  %v451_v26 = vsub.s32 3, %v8767_v21  ;;  %v8782_v27 = vrot.slane %v435_v24, %v447_v23 }
 0x223   :  { %4691 = vmatprep.subr.bf16.mxu0 %v8316_v28  ;;  %5077 = vmatprep.subr.bf16.mxu1 %v8319_v29  ;;  %v8786_v28 = vrot.slane %v435_v24, %v443_v25 }
 0x224   :  { %2795 = vmatmul.mubr.bf16.gmra.mrb[12].mxu0 %v8265_v30  ;;  %3567 = vmatmul.mubr.bf16.gmra.mrb[12].mxu1 %v8265_v30  ;;  %v8790_v29 = vrot.slane %v435_v24, %v451_v26 }
 0x225   :  { %2804 = vmatprep.mubr.bf16.mxu0 %v8630_v2  ;;  %3576 = vmatprep.mubr.bf16.mxu1 %v8630_v2 }
 0x226   :  { %4692 = vmatpush1.bf16.msra.mxu0 %v8314_v31  ;;  %5078 = vmatpush1.bf16.msra.mxu1 %v8317_v32 }
 0x227   :  { %4693 = vmatprep.subr.bf16.mxu0 %v8322_v33  ;;  %5079 = vmatprep.subr.bf16.mxu1 %v8325_v34 }
 0x22a   :  { %4694 = vmatpush1.bf16.msra.mxu0 %v8320_v35  ;;  %5080 = vmatpush1.bf16.msra.mxu1 %v8323_v36 }
 0x22b   :  { %4695 = vmatprep.subr.bf16.mxu0 %v8328_v37  ;;  %5081 = vmatprep.subr.bf16.mxu1 %v8331_v38 }
 0x22c   :  { %2805 = vmatmul.mubr.bf16.gmra.mrb[16].mxu0 %v8266_v39  ;;  %3577 = vmatmul.mubr.bf16.gmra.mrb[16].mxu1 %v8266_v39 }
 0x22d   :  { %2814 = vmatprep.mubr.bf16.mxu0 %v8630_v2  ;;  %3586 = vmatprep.mubr.bf16.mxu1 %v8630_v2 }
 0x22e   :  { %4696 = vmatpush1.bf16.msra.mxu0 %v8326_v40  ;;  %5082 = vmatpush1.bf16.msra.mxu1 %v8329_v41 }
 0x22f   :  { %4697 = vmatprep.subr.bf16.mxu0 %v8334_v42  ;;  %5083 = vmatprep.subr.bf16.mxu1 %v8337_v43 }
 0x232   :  { %4698 = vmatpush1.bf16.msra.mxu0 %v8332_v44  ;;  %5084 = vmatpush1.bf16.msra.mxu1 %v8335_v45 }
 0x233   :  { %4699 = vmatprep.subr.bf16.mxu0 %v8340_v46  ;;  %5085 = vmatprep.subr.bf16.mxu1 %v8343_v47 }
 0x234   :  { %2815 = vmatmul.mubr.bf16.gmra.mrb[20].mxu0 %v8267_v48  ;;  %3587 = vmatmul.mubr.bf16.gmra.mrb[20].mxu1 %v8267_v48 }
 0x235   :  { %2824 = vmatprep.mubr.bf16.mxu0 %v8630_v2  ;;  %3596 = vmatprep.mubr.bf16.mxu1 %v8630_v2 }
 0x236   :  { %4700 = vmatpush1.bf16.msra.mxu0 %v8338_v49  ;;  %5086 = vmatpush1.bf16.msra.mxu1 %v8341_v50 }
 0x237   :  { %4701 = vmatprep.subr.bf16.mxu0 %v8346_v51  ;;  %5087 = vmatprep.subr.bf16.mxu1 %v8349_v52 }
 0x23a   :  { %4702 = vmatpush1.bf16.msra.mxu0 %v8344_v53  ;;  %5088 = vmatpush1.bf16.msra.mxu1 %v8347_v54 }
 0x23b   :  { %4703 = vmatprep.subr.bf16.mxu0 %v8352_v55  ;;  %5089 = vmatprep.subr.bf16.mxu1 %v8355_v56 }
 0x23c   :  { %2825 = vmatmul.mubr.bf16.gmra.mrb[24].mxu0 %v8268_v57  ;;  %3597 = vmatmul.mubr.bf16.gmra.mrb[24].mxu1 %v8268_v57 }
 0x23d   :  { %2834 = vmatprep.mubr.bf16.mxu0 %v8630_v2  ;;  %3606 = vmatprep.mubr.bf16.mxu1 %v8630_v2 }
 0x23e   :  { %4704 = vmatpush1.bf16.msra.mxu0 %v8350_v58  ;;  %5090 = vmatpush1.bf16.msra.mxu1 %v8353_v59 }
 0x23f   :  { %4705 = vmatprep.subr.bf16.mxu0 %v8358_v60  ;;  %5091 = vmatprep.subr.bf16.mxu1 %v8361_v61  ;;  %v8374_v60 = vld [vmem:[#allocation7 + $0x200] ss:$16 sps:$4 sm:$0xff]   ;;  %v8377_v61 = vld [vmem:[#allocation7 + $0x208] ss:$16 sps:$4 sm:$0xff]  }
 0x242   :  { %4706 = vmatpush1.bf16.msra.mxu0 %v8356_v62  ;;  %5092 = vmatpush1.bf16.msra.mxu1 %v8359_v63 }
 0x243   :  { %4707 = vmatprep.subr.bf16.mxu0 %v8364_v0  ;;  %5093 = vmatprep.subr.bf16.mxu1 %v8367_v1 }
 0x244   :  { %2835 = vmatmul.mubr.bf16.gmra.mrb[28].mxu0 %v8269_v3  ;;  %3607 = vmatmul.mubr.bf16.gmra.mrb[28].mxu1 %v8269_v3  ;;  %v8382_v3 = vld [vmem:[#allocation7 + $0x224] ss:$16 sps:$4 sm:$0xff]  }
 0x245   :  { %2844 = vmatprep.mubr.bf16.mxu0 %v8630_v2  ;;  %3616 = vmatprep.mubr.bf16.mxu1 %v8630_v2 }
 0x246   :  { %4708 = vmatpush1.bf16.msra.mxu0 %v8362_v4  ;;  %5094 = vmatpush1.bf16.msra.mxu1 %v8365_v5  ;;  %v8385_v4 = vld [vmem:[#allocation7 + $0x22c] ss:$16 sps:$4 sm:$0xff]  }
 0x247   :  { %4709 = vmatprep.subr.bf16.mxu0 %v8370_v10  ;;  %5095 = vmatprep.subr.bf16.mxu1 %v8373_v11 }
 0x24a   :  { %4710 = vmatpush1.bf16.msra.mxu0 %v8368_v12  ;;  %5096 = vmatpush1.bf16.msra.mxu1 %v8371_v13 }
 0x24b   :  { %4872 = vmatprep.subr.bf16.mxu0 %v8376_v15  ;;  %5258 = vmatprep.subr.bf16.mxu1 %v8379_v17  ;;  %v8380_v15 = vld [vmem:[#allocation7 + $0x220] ss:$16 sps:$4 sm:$0xff]   ;;  %v8388_v17 = vld [vmem:[#allocation7 + $0x244] ss:$16 sps:$4 sm:$0xff]  }
 0x24c   :  { %2845 = vmatmul.mubr.bf16.gmra.mrb[32].mxu0 %v8270_v6  ;;  %3617 = vmatmul.mubr.bf16.gmra.mrb[32].mxu1 %v8270_v6 }
 0x24d   :  { %2854 = vmatprep.mubr.bf16.mxu0 %v8630_v2  ;;  %3626 = vmatprep.mubr.bf16.mxu1 %v8630_v2 }
 0x254   :  { %2855 = vmatmul.mubr.bf16.gmra.mrb[36].mxu0 %v8271_v7  ;;  %3627 = vmatmul.mubr.bf16.gmra.mrb[36].mxu1 %v8271_v7 }
 0x255   :  { %2864 = vmatprep.mubr.bf16.mxu0 %v8630_v2  ;;  %3636 = vmatprep.mubr.bf16.mxu1 %v8630_v2 }
 0x25c   :  { %2865 = vmatmul.mubr.bf16.gmra.mrb[40].mxu0 %v8272_v8  ;;  %3637 = vmatmul.mubr.bf16.gmra.mrb[40].mxu1 %v8272_v8 }
 0x25d   :  { %2874 = vmatprep.mubr.bf16.mxu0 %v8630_v2  ;;  %3646 = vmatprep.mubr.bf16.mxu1 %v8630_v2 }
 0x264   :  { %2875 = vmatmul.mubr.bf16.gmra.mrb[44].mxu0 %v8273_v9  ;;  %3647 = vmatmul.mubr.bf16.gmra.mrb[44].mxu1 %v8273_v9 }
 0x265   :  { %2884 = vmatprep.mubr.bf16.mxu0 %v8630_v2  ;;  %3656 = vmatprep.mubr.bf16.mxu1 %v8630_v2 }
 0x26c   :  { %2885 = vmatmul.mubr.bf16.gmra.mrb[48].mxu0 %v8277_v14  ;;  %3657 = vmatmul.mubr.bf16.gmra.mrb[48].mxu1 %v8277_v14 }
 0x26d   :  { %2894 = vmatprep.mubr.bf16.mxu0 %v8630_v2  ;;  %3666 = vmatprep.mubr.bf16.mxu1 %v8630_v2 }
 0x274   :  { %2895 = vmatmul.mubr.bf16.gmra.mrb[52].mxu0 %v8284_v16  ;;  %3667 = vmatmul.mubr.bf16.gmra.mrb[52].mxu1 %v8284_v16  ;;  %v8383_v16 = vld [vmem:[#allocation7 + $0x228] ss:$16 sps:$4 sm:$0xff]  }
 0x275   :  { %2904 = vmatprep.mubr.bf16.mxu0 %v8630_v2  ;;  %3676 = vmatprep.mubr.bf16.mxu1 %v8630_v2 }
 0x27c   :  { %2905 = vmatmul.mubr.bf16.gmra.mrb[56].mxu0 %v8291_v18  ;;  %3677 = vmatmul.mubr.bf16.gmra.mrb[56].mxu1 %v8291_v18 }
 0x27d   :  { %2914 = vmatprep.mubr.bf16.mxu0 %v8630_v2  ;;  %3686 = vmatprep.mubr.bf16.mxu1 %v8630_v2  ;;  %v8778_v2 = vrot.slane %v435_v24, %v439_v22 }
 0x284   :  { %2915 = vmatmul.mubr.bf16.gmra.mrb[60].mxu0 %v8298_v19  ;;  %3687 = vmatmul.mubr.bf16.gmra.mrb[60].mxu1 %v8298_v19 }
 0x2df   :  { %v2766_v30 = vpop.f32.mrb[0].mxu0  ;;  %v3538_v31 = vpop.f32.mrb[0].mxu1 }
 0x2e0   :  { %v7000_v32 = vadd.f32 %v2766_v30, %v8778_v2  ;;  %v7064_v33 = vadd.f32 %v3538_v31, %v8782_v27  ;;  %v2768_v34 = vpop.f32.mrb[1].mxu0  ;;  %v3540_v35 = vpop.f32.mrb[1].mxu1  ;;  %v8391_v30 = vld [vmem:[#allocation7 + $0x24c] ss:$16 sps:$4 sm:$0xff]  }
 0x2e1   :  { %v7001_v36 = vadd.f32 %v2768_v34, %v8786_v28  ;;  %v7065_v37 = vadd.f32 %v3540_v35, %v8790_v29  ;;  %v2770_v38 = vpop.f32.mrb[2].mxu0  ;;  %v3542_v39 = vpop.f32.mrb[2].mxu1 }
 0x2e2   :  { %v7002_v40 = vadd.f32 %v2770_v38, %v8778_v2  ;;  %v7066_v41 = vadd.f32 %v3542_v39, %v8782_v27  ;;  %v2772_v42 = vpop.f32.mrb[3].mxu0  ;;  %v3544_v43 = vpop.f32.mrb[3].mxu1  ;;  %v3697_v46 = vmax.f32 %v7000_v32, 0.0  ;;  %v3699_v47 = vmax.f32 %v7064_v33, 0.0 }
 0x2e3   :  { %v7003_v44 = vadd.f32 %v2772_v42, %v8786_v28  ;;  %v7067_v45 = vadd.f32 %v3544_v43, %v8790_v29  ;;  %v3698_v50 = vmax.f32 %v7001_v36, 0.0  ;;  %v3700_v51 = vmax.f32 %v7065_v37, 0.0  ;;  %v8389_v42 = vld [vmem:[#allocation7 + $0x248] ss:$16 sps:$4 sm:$0xff]  }
 0x2e4   :  { %v3701_v48 = vmax.f32 %v7002_v40, 0.0  ;;  %v3703_v49 = vmax.f32 %v7066_v41, 0.0  ;;  %v8386_v41 = vld [vmem:[#allocation7 + $0x240] ss:$16 sps:$4 sm:$0xff]  }
 0x2e5   :  { %v3702_v52 = vmax.f32 %v7003_v44, 0.0  ;;  %v3704_v53 = vmax.f32 %v7067_v45, 0.0 }
 0x2e6   :  { %v3825_v54 = vpack.c.bf16 %v3701_v48, %v3697_v46  ;;  %v8800_v55 = vpack.c.bf16 %v3703_v49, %v3699_v47  ;;  %v8394_v47 = vld [vmem:[#allocation7 + $0x264] ss:$16 sps:$4 sm:$0xff]   ;;  %v8397_v48 = vld [vmem:[#allocation7 + $0x26c] ss:$16 sps:$4 sm:$0xff]  }
 0x2e7   :  { %v3826_v56 = vpack.c.bf16 %v3702_v52, %v3698_v50  ;;  %v8802_v57 = vpack.c.bf16 %v3704_v53, %v3700_v51  ;;  %v2776_v58 = vpop.f32.mrb[4].mxu0  ;;  %v3548_v59 = vpop.f32.mrb[4].mxu1 }
 0x2e8   :  { %v7004_v62 = vadd.f32 %v2776_v58, %v8778_v2  ;;  %v7068_v63 = vadd.f32 %v3548_v59, %v8782_v27  ;;  %v2778_v0 = vpop.f32.mrb[5].mxu0  ;;  %v3550_v1 = vpop.f32.mrb[5].mxu1 }
 0x2e9   :  { %v7005_v5 = vadd.f32 %v2778_v0, %v8786_v28  ;;  %v7069_v6 = vadd.f32 %v3550_v1, %v8790_v29  ;;  %v2780_v7 = vpop.f32.mrb[6].mxu0  ;;  %v3552_v8 = vpop.f32.mrb[6].mxu1  ;;  %4711 = vmatprep.mubr.bf16.mxu0 %v3826_v56  ;;  %5097 = vmatprep.mubr.bf16.mxu1 %v3826_v56 }
 0x2ea   :  { %v7006_v9 = vadd.f32 %v2780_v7, %v8778_v2  ;;  %v7070_v10 = vadd.f32 %v3552_v8, %v8782_v27  ;;  %v2782_v11 = vpop.f32.mrb[7].mxu0  ;;  %v3554_v12 = vpop.f32.mrb[7].mxu1  ;;  %4712 = vmatmul.mubr.bf16.vlgmr.msra.gmra.mrb[64].mxu0 %v3825_v54  ;;  %5098 = vmatmul.mubr.bf16.vlgmr.msra.gmra.mrb[64].mxu1 %v3825_v54  ;;  %v3705_v18 = vmax.f32 %v7004_v62, 0.0  ;;  %v3707_v19 = vmax.f32 %v7068_v63, 0.0  ;;  %v8395_v62 = vld [vmem:[#allocation7 + $0x268] ss:$16 sps:$4 sm:$0xff]  }
 0x2eb   :  { %v7007_v13 = vadd.f32 %v2782_v11, %v8786_v28  ;;  %v7071_v14 = vadd.f32 %v3554_v12, %v8790_v29  ;;  %4873 = vmatpush1.bf16.msra.mxu0 %v8374_v60  ;;  %5259 = vmatpush1.bf16.msra.mxu1 %v8377_v61  ;;  %v3706_v31 = vmax.f32 %v7005_v5, 0.0  ;;  %v3708_v32 = vmax.f32 %v7069_v6, 0.0  ;;  %v8392_v61 = vld [vmem:[#allocation7 + $0x260] ss:$16 sps:$4 sm:$0xff]   ;;  %v8400_v63 = vld [vmem:[#allocation7 + $0x284] ss:$16 sps:$4 sm:$0xff]  }
 0x2ec   :  { %v3709_v20 = vmax.f32 %v7006_v9, 0.0  ;;  %v3711_v24 = vmax.f32 %v7070_v10, 0.0  ;;  %4874 = vmatprep.subr.bf16.mxu0 %v8382_v3  ;;  %5260 = vmatprep.subr.bf16.mxu1 %v8385_v4  ;;  %v8403_v5 = vld [vmem:[#allocation7 + $0x28c] ss:$16 sps:$4 sm:$0xff]  }
 0x2ed   :  { %v3710_v33 = vmax.f32 %v7007_v13, 0.0  ;;  %v3712_v34 = vmax.f32 %v7071_v14, 0.0 }
 0x2ee   :  { %v3829_v35 = vpack.c.bf16 %v3709_v20, %v3705_v18  ;;  %v8812_v36 = vpack.c.bf16 %v3711_v24, %v3707_v19 }
 0x2ef   :  { %v3830_v37 = vpack.c.bf16 %v3710_v33, %v3706_v31  ;;  %v8814_v38 = vpack.c.bf16 %v3712_v34, %v3708_v32  ;;  %v2786_v39 = vpop.f32.mrb[8].mxu0  ;;  %v3558_v40 = vpop.f32.mrb[8].mxu1  ;;  %4875 = vmatpush1.bf16.msra.mxu0 %v8380_v15  ;;  %5261 = vmatpush1.bf16.msra.mxu1 %v8383_v16  ;;  %v8398_v16 = vld [vmem:[#allocation7 + $0x280] ss:$16 sps:$4 sm:$0xff]   ;;  %v8409_v31 = vld [vmem:[#allocation7 + $0x2ac] ss:$16 sps:$4 sm:$0xff]  }
 0x2f0   :  { %v7008_v43 = vadd.f32 %v2786_v39, %v8778_v2  ;;  %v7072_v44 = vadd.f32 %v3558_v40, %v8782_v27  ;;  %v2788_v45 = vpop.f32.mrb[9].mxu0  ;;  %v3560_v46 = vpop.f32.mrb[9].mxu1  ;;  %4876 = vmatprep.subr.bf16.mxu0 %v8388_v17  ;;  %5262 = vmatprep.subr.bf16.mxu1 %v8391_v30  ;;  %v8401_v17 = vld [vmem:[#allocation7 + $0x288] ss:$16 sps:$4 sm:$0xff]   ;;  %v8406_v30 = vld [vmem:[#allocation7 + $0x2a4] ss:$16 sps:$4 sm:$0xff]  }
 0x2f1   :  { %v7009_v49 = vadd.f32 %v2788_v45, %v8786_v28  ;;  %v7073_v50 = vadd.f32 %v3560_v46, %v8790_v29  ;;  %v2790_v51 = vpop.f32.mrb[10].mxu0  ;;  %v3562_v52 = vpop.f32.mrb[10].mxu1  ;;  %4721 = vmatprep.mubr.bf16.mxu0 %v3830_v37  ;;  %5107 = vmatprep.mubr.bf16.mxu1 %v3830_v37  ;;  %v8407_v45 = vld [vmem:[#allocation7 + $0x2a8] ss:$16 sps:$4 sm:$0xff]   ;;  %v8412_v46 = vld [vmem:[#allocation7 + $0x2c4] ss:$16 sps:$4 sm:$0xff]  }
 0x2f2   :  { %v7010_v53 = vadd.f32 %v2790_v51, %v8778_v2  ;;  %v7074_v54 = vadd.f32 %v3562_v52, %v8782_v27  ;;  %v2792_v56 = vpop.f32.mrb[11].mxu0  ;;  %v3564_v58 = vpop.f32.mrb[11].mxu1  ;;  %4722 = vmatmul.mubr.bf16.gmra.mrb[68].mxu0 %v3829_v35  ;;  %5108 = vmatmul.mubr.bf16.gmra.mrb[68].mxu1 %v3829_v35  ;;  %v3713_v0 = vmax.f32 %v7008_v43, 0.0  ;;  %v3715_v1 = vmax.f32 %v7072_v44, 0.0  ;;  %v8404_v44 = vld [vmem:[#allocation7 + $0x2a0] ss:$16 sps:$4 sm:$0xff]  }
 0x2f3   :  { %v7011_v59 = vadd.f32 %v2792_v56, %v8786_v28  ;;  %v7075_v60 = vadd.f32 %v3564_v58, %v8790_v29  ;;  %4877 = vmatpush1.bf16.msra.mxu0 %v8386_v41  ;;  %5263 = vmatpush1.bf16.msra.mxu1 %v8389_v42  ;;  %v3714_v6 = vmax.f32 %v7009_v49, 0.0  ;;  %v3716_v7 = vmax.f32 %v7073_v50, 0.0  ;;  %v8415_v51 = vld [vmem:[#allocation7 + $0x2cc] ss:$16 sps:$4 sm:$0xff]  }
 0x2f4   :  { %v3717_v3 = vmax.f32 %v7010_v53, 0.0  ;;  %v3719_v4 = vmax.f32 %v7074_v54, 0.0  ;;  %4878 = vmatprep.subr.bf16.mxu0 %v8394_v47  ;;  %5264 = vmatprep.subr.bf16.mxu1 %v8397_v48 }
 0x2f5   :  { %v3718_v8 = vmax.f32 %v7011_v59, 0.0  ;;  %v3720_v9 = vmax.f32 %v7075_v60, 0.0 }
 0x2f6   :  { %v3833_v10 = vpack.c.bf16 %v3717_v3, %v3713_v0  ;;  %v8824_v11 = vpack.c.bf16 %v3719_v4, %v3715_v1  ;;  %v8410_v0 = vld [vmem:[#allocation7 + $0x2c0] ss:$16 sps:$4 sm:$0xff]   ;;  %v8413_v1 = vld [vmem:[#allocation7 + $0x2c8] ss:$16 sps:$4 sm:$0xff]  }
 0x2f7   :  { %v3834_v12 = vpack.c.bf16 %v3718_v8, %v3714_v6  ;;  %v8826_v13 = vpack.c.bf16 %v3720_v9, %v3716_v7  ;;  %v2796_v14 = vpop.f32.mrb[12].mxu0  ;;  %v3568_v15 = vpop.f32.mrb[12].mxu1  ;;  %4879 = vmatpush1.bf16.msra.mxu0 %v8392_v61  ;;  %5265 = vmatpush1.bf16.msra.mxu1 %v8395_v62  ;;  %v8418_v7 = vld [vmem:[#allocation7 + $0x2e4] ss:$16 sps:$4 sm:$0xff]   ;;  %v8421_v8 = vld [vmem:[#allocation7 + $0x2ec] ss:$16 sps:$4 sm:$0xff]  }
 0x2f8   :  { %v7012_v18 = vadd.f32 %v2796_v14, %v8778_v2  ;;  %v7076_v19 = vadd.f32 %v3568_v15, %v8782_v27  ;;  %v2798_v20 = vpop.f32.mrb[13].mxu0  ;;  %v3570_v24 = vpop.f32.mrb[13].mxu1  ;;  %4880 = vmatprep.subr.bf16.mxu0 %v8400_v63  ;;  %5266 = vmatprep.subr.bf16.mxu1 %v8403_v5 }
 0x2f9   :  { %v7013_v32 = vadd.f32 %v2798_v20, %v8786_v28  ;;  %v7077_v33 = vadd.f32 %v3570_v24, %v8790_v29  ;;  %v2800_v34 = vpop.f32.mrb[14].mxu0  ;;  %v3572_v35 = vpop.f32.mrb[14].mxu1  ;;  %4731 = vmatprep.mubr.bf16.mxu0 %v3834_v12  ;;  %5117 = vmatprep.mubr.bf16.mxu1 %v3834_v12  ;;  %v8416_v24 = vld [vmem:[#allocation7 + $0x2e0] ss:$16 sps:$4 sm:$0xff]  }
 0x2fa   :  { %v7014_v37 = vadd.f32 %v2800_v34, %v8778_v2  ;;  %v7078_v39 = vadd.f32 %v3572_v35, %v8782_v27  ;;  %v2802_v40 = vpop.f32.mrb[15].mxu0  ;;  %v3574_v41 = vpop.f32.mrb[15].mxu1  ;;  %4732 = vmatmul.mubr.bf16.gmra.mrb[72].mxu0 %v3833_v10  ;;  %5118 = vmatmul.mubr.bf16.gmra.mrb[72].mxu1 %v3833_v10  ;;  %v3721_v47 = vmax.f32 %v7012_v18, 0.0  ;;  %v3723_v48 = vmax.f32 %v7076_v19, 0.0 }
 0x2fb   :  { %v7015_v42 = vadd.f32 %v2802_v40, %v8786_v28  ;;  %v7079_v43 = vadd.f32 %v3574_v41, %v8790_v29  ;;  %4881 = vmatpush1.bf16.msra.mxu0 %v8398_v16  ;;  %5267 = vmatpush1.bf16.msra.mxu1 %v8401_v17  ;;  %v3722_v52 = vmax.f32 %v7013_v32, 0.0  ;;  %v3724_v53 = vmax.f32 %v7077_v33, 0.0 }
 0x2fc   :  { %v3725_v49 = vmax.f32 %v7014_v37, 0.0  ;;  %v3727_v50 = vmax.f32 %v7078_v39, 0.0  ;;  %4882 = vmatprep.subr.bf16.mxu0 %v8406_v30  ;;  %5268 = vmatprep.subr.bf16.mxu1 %v8409_v31  ;;  %v8419_v30 = vld [vmem:[#allocation7 + $0x2e8] ss:$16 sps:$4 sm:$0xff]   ;;  %v8424_v31 = vld [vmem:[#allocation7 + $0x304] ss:$16 sps:$4 sm:$0xff]  }
 0x2fd   :  { %v3726_v54 = vmax.f32 %v7015_v42, 0.0  ;;  %v3728_v56 = vmax.f32 %v7079_v43, 0.0  ;;  %v8427_v37 = vld [vmem:[#allocation7 + $0x30c] ss:$16 sps:$4 sm:$0xff]  }
 0x2fe   :  { %v3837_v58 = vpack.c.bf16 %v3725_v49, %v3721_v47  ;;  %v8836_v59 = vpack.c.bf16 %v3727_v50, %v3723_v48  ;;  %v8422_v49 = vld [vmem:[#allocation7 + $0x300] ss:$16 sps:$4 sm:$0xff]   ;;  %v8425_v50 = vld [vmem:[#allocation7 + $0x308] ss:$16 sps:$4 sm:$0xff]  }
 0x2ff   :  { %v3838_v60 = vpack.c.bf16 %v3726_v54, %v3722_v52  ;;  %v8838_v61 = vpack.c.bf16 %v3728_v56, %v3724_v53  ;;  %v2806_v62 = vpop.f32.mrb[16].mxu0  ;;  %v3578_v63 = vpop.f32.mrb[16].mxu1  ;;  %4883 = vmatpush1.bf16.msra.mxu0 %v8404_v44  ;;  %5269 = vmatpush1.bf16.msra.mxu1 %v8407_v45  ;;  %v8430_v56 = vld [vmem:[#allocation7 + $0x324] ss:$16 sps:$4 sm:$0xff]  }
 0x300   :  { %v7016_v3 = vadd.f32 %v2806_v62, %v8778_v2  ;;  %v7080_v4 = vadd.f32 %v3578_v63, %v8782_v27  ;;  %v2808_v5 = vpop.f32.mrb[17].mxu0  ;;  %v3580_v6 = vpop.f32.mrb[17].mxu1  ;;  %4884 = vmatprep.subr.bf16.mxu0 %v8412_v46  ;;  %5270 = vmatprep.subr.bf16.mxu1 %v8415_v51 }
 0x301   :  { %v7017_v9 = vadd.f32 %v2808_v5, %v8786_v28  ;;  %v7081_v10 = vadd.f32 %v3580_v6, %v8790_v29  ;;  %v2810_v12 = vpop.f32.mrb[18].mxu0  ;;  %v3582_v14 = vpop.f32.mrb[18].mxu1  ;;  %4741 = vmatprep.mubr.bf16.mxu0 %v3838_v60  ;;  %5127 = vmatprep.mubr.bf16.mxu1 %v3838_v60 }
 0x302   :  { %v7018_v15 = vadd.f32 %v2810_v12, %v8778_v2  ;;  %v7082_v16 = vadd.f32 %v3582_v14, %v8782_v27  ;;  %v2812_v17 = vpop.f32.mrb[19].mxu0  ;;  %v3584_v18 = vpop.f32.mrb[19].mxu1  ;;  %4742 = vmatmul.mubr.bf16.gmra.mrb[76].mxu0 %v3837_v58  ;;  %5128 = vmatmul.mubr.bf16.gmra.mrb[76].mxu1 %v3837_v58  ;;  %v3729_v32 = vmax.f32 %v7016_v3, 0.0  ;;  %v3731_v33 = vmax.f32 %v7080_v4, 0.0  ;;  %v8433_v58 = vld [vmem:[#allocation7 + $0x32c] ss:$16 sps:$4 sm:$0xff]  }
 0x303   :  { %v7019_v19 = vadd.f32 %v2812_v17, %v8786_v28  ;;  %v7083_v20 = vadd.f32 %v3584_v18, %v8790_v29  ;;  %4885 = vmatpush1.bf16.msra.mxu0 %v8410_v0  ;;  %5271 = vmatpush1.bf16.msra.mxu1 %v8413_v1  ;;  %v3730_v39 = vmax.f32 %v7017_v9, 0.0  ;;  %v3732_v40 = vmax.f32 %v7081_v10, 0.0  ;;  %v8431_v9 = vld [vmem:[#allocation7 + $0x328] ss:$16 sps:$4 sm:$0xff]   ;;  %v8436_v10 = vld [vmem:[#allocation7 + $0x344] ss:$16 sps:$4 sm:$0xff]  }
 0x304   :  { %v3733_v34 = vmax.f32 %v7018_v15, 0.0  ;;  %v3735_v35 = vmax.f32 %v7082_v16, 0.0  ;;  %4886 = vmatprep.subr.bf16.mxu0 %v8418_v7  ;;  %5272 = vmatprep.subr.bf16.mxu1 %v8421_v8  ;;  %v8428_v8 = vld [vmem:[#allocation7 + $0x320] ss:$16 sps:$4 sm:$0xff]   ;;  %v8439_v17 = vld [vmem:[#allocation7 + $0x34c] ss:$16 sps:$4 sm:$0xff]  }
 0x305   :  { %v3734_v41 = vmax.f32 %v7019_v19, 0.0  ;;  %v3736_v42 = vmax.f32 %v7083_v20, 0.0 }
 0x306   :  { %v3841_v43 = vpack.c.bf16 %v3733_v34, %v3729_v32  ;;  %v8848_v44 = vpack.c.bf16 %v3735_v35, %v3731_v33 }
 0x307   :  { %v3842_v45 = vpack.c.bf16 %v3734_v41, %v3730_v39  ;;  %v8850_v46 = vpack.c.bf16 %v3736_v42, %v3732_v40  ;;  %v2816_v47 = vpop.f32.mrb[20].mxu0  ;;  %v3588_v48 = vpop.f32.mrb[20].mxu1  ;;  %4887 = vmatpush1.bf16.msra.mxu0 %v8416_v24  ;;  %5273 = vmatpush1.bf16.msra.mxu1 %v8419_v30  ;;  %v8437_v39 = vld [vmem:[#allocation7 + $0x348] ss:$16 sps:$4 sm:$0xff]  }
 0x308   :  { %v7020_v51 = vadd.f32 %v2816_v47, %v8778_v2  ;;  %v7084_v52 = vadd.f32 %v3588_v48, %v8782_v27  ;;  %v2818_v53 = vpop.f32.mrb[21].mxu0  ;;  %v3590_v54 = vpop.f32.mrb[21].mxu1  ;;  %4888 = vmatprep.subr.bf16.mxu0 %v8424_v31  ;;  %5274 = vmatprep.subr.bf16.mxu1 %v8427_v37  ;;  %v8434_v37 = vld [vmem:[#allocation7 + $0x340] ss:$16 sps:$4 sm:$0xff]   ;;  %v8445_v47 = vld [vmem:[#allocation7 + $0x36c] ss:$16 sps:$4 sm:$0xff]  }
 0x309   :  { %v7021_v60 = vadd.f32 %v2818_v53, %v8786_v28  ;;  %v7085_v62 = vadd.f32 %v3590_v54, %v8790_v29  ;;  %v2820_v63 = vpop.f32.mrb[22].mxu0  ;;  %v3592_v0 = vpop.f32.mrb[22].mxu1  ;;  %4751 = vmatprep.mubr.bf16.mxu0 %v3842_v45  ;;  %5137 = vmatprep.mubr.bf16.mxu1 %v3842_v45  ;;  %v8442_v45 = vld [vmem:[#allocation7 + $0x364] ss:$16 sps:$4 sm:$0xff]  }
 0x30a   :  { %v7022_v1 = vadd.f32 %v2820_v63, %v8778_v2  ;;  %v7086_v3 = vadd.f32 %v3592_v0, %v8782_v27  ;;  %v2822_v4 = vpop.f32.mrb[23].mxu0  ;;  %v3594_v5 = vpop.f32.mrb[23].mxu1  ;;  %4752 = vmatmul.mubr.bf16.gmra.mrb[80].mxu0 %v3841_v43  ;;  %5138 = vmatmul.mubr.bf16.gmra.mrb[80].mxu1 %v3841_v43  ;;  %v3737_v12 = vmax.f32 %v7020_v51, 0.0  ;;  %v3739_v14 = vmax.f32 %v7084_v52, 0.0  ;;  %v8443_v63 = vld [vmem:[#allocation7 + $0x368] ss:$16 sps:$4 sm:$0xff]  }
 0x30b   :  { %v7023_v6 = vadd.f32 %v2822_v4, %v8786_v28  ;;  %v7087_v7 = vadd.f32 %v3594_v5, %v8790_v29  ;;  %4889 = vmatpush1.bf16.msra.mxu0 %v8422_v49  ;;  %5275 = vmatpush1.bf16.msra.mxu1 %v8425_v50  ;;  %v3738_v18 = vmax.f32 %v7021_v60, 0.0  ;;  %v3740_v19 = vmax.f32 %v7085_v62, 0.0  ;;  %v8440_v62 = vld [vmem:[#allocation7 + $0x360] ss:$16 sps:$4 sm:$0xff]   ;;  %v8448_v0 = vld [vmem:[#allocation7 + $0x384] ss:$16 sps:$4 sm:$0xff]  }
 0x30c   :  { %v3741_v15 = vmax.f32 %v7022_v1, 0.0  ;;  %v3743_v16 = vmax.f32 %v7086_v3, 0.0  ;;  %4890 = vmatprep.subr.bf16.mxu0 %v8430_v56  ;;  %5276 = vmatprep.subr.bf16.mxu1 %v8433_v58 }
 0x30d   :  { %v3742_v20 = vmax.f32 %v7023_v6, 0.0  ;;  %v3744_v24 = vmax.f32 %v7087_v7, 0.0  ;;  %v8451_v6 = vld [vmem:[#allocation7 + $0x38c] ss:$16 sps:$4 sm:$0xff]  }
 0x30e   :  { %v3845_v30 = vpack.c.bf16 %v3741_v15, %v3737_v12  ;;  %v8860_v31 = vpack.c.bf16 %v3743_v16, %v3739_v14 }
 0x30f   :  { %v3846_v32 = vpack.c.bf16 %v3742_v20, %v3738_v18  ;;  %v8862_v33 = vpack.c.bf16 %v3744_v24, %v3740_v19  ;;  %v2826_v34 = vpop.f32.mrb[24].mxu0  ;;  %v3598_v35 = vpop.f32.mrb[24].mxu1  ;;  %4891 = vmatpush1.bf16.msra.mxu0 %v8428_v8  ;;  %5277 = vmatpush1.bf16.msra.mxu1 %v8431_v9  ;;  %v8446_v19 = vld [vmem:[#allocation7 + $0x380] ss:$16 sps:$4 sm:$0xff]   ;;  %v8449_v20 = vld [vmem:[#allocation7 + $0x388] ss:$16 sps:$4 sm:$0xff]  }
 0x310   :  { %v7024_v40 = vadd.f32 %v2826_v34, %v8778_v2  ;;  %v7088_v41 = vadd.f32 %v3598_v35, %v8782_v27  ;;  %v2828_v42 = vpop.f32.mrb[25].mxu0  ;;  %v3600_v43 = vpop.f32.mrb[25].mxu1  ;;  %4892 = vmatprep.subr.bf16.mxu0 %v8436_v10  ;;  %5278 = vmatprep.subr.bf16.mxu1 %v8439_v17  ;;  %v8454_v35 = vld [vmem:[#allocation7 + $0x3a4] ss:$16 sps:$4 sm:$0xff]  }
 0x311   :  { %v7025_v48 = vadd.f32 %v2828_v42, %v8786_v28  ;;  %v7089_v49 = vadd.f32 %v3600_v43, %v8790_v29  ;;  %v2830_v50 = vpop.f32.mrb[26].mxu0  ;;  %v3602_v51 = vpop.f32.mrb[26].mxu1  ;;  %4761 = vmatprep.mubr.bf16.mxu0 %v3846_v32  ;;  %5147 = vmatprep.mubr.bf16.mxu1 %v3846_v32 }
 0x312   :  { %v7026_v52 = vadd.f32 %v2830_v50, %v8778_v2  ;;  %v7090_v53 = vadd.f32 %v3602_v51, %v8782_v27  ;;  %v2832_v54 = vpop.f32.mrb[27].mxu0  ;;  %v3604_v56 = vpop.f32.mrb[27].mxu1  ;;  %4762 = vmatmul.mubr.bf16.gmra.mrb[84].mxu0 %v3845_v30  ;;  %5148 = vmatmul.mubr.bf16.gmra.mrb[84].mxu1 %v3845_v30  ;;  %v3745_v1 = vmax.f32 %v7024_v40, 0.0  ;;  %v3747_v3 = vmax.f32 %v7088_v41, 0.0  ;;  %v8452_v51 = vld [vmem:[#allocation7 + $0x3a0] ss:$16 sps:$4 sm:$0xff]  }
 0x313   :  { %v7027_v58 = vadd.f32 %v2832_v54, %v8786_v28  ;;  %v7091_v60 = vadd.f32 %v3604_v56, %v8790_v29  ;;  %4893 = vmatpush1.bf16.msra.mxu0 %v8434_v37  ;;  %5279 = vmatpush1.bf16.msra.mxu1 %v8437_v39  ;;  %v3746_v7 = vmax.f32 %v7025_v48, 0.0  ;;  %v3748_v8 = vmax.f32 %v7089_v49, 0.0  ;;  %v8457_v37 = vld [vmem:[#allocation7 + $0x3ac] ss:$16 sps:$4 sm:$0xff]  }
 0x314   :  { %v3749_v4 = vmax.f32 %v7026_v52, 0.0  ;;  %v3751_v5 = vmax.f32 %v7090_v53, 0.0  ;;  %4894 = vmatprep.subr.bf16.mxu0 %v8442_v45  ;;  %5280 = vmatprep.subr.bf16.mxu1 %v8445_v47  ;;  %v8455_v52 = vld [vmem:[#allocation7 + $0x3a8] ss:$16 sps:$4 sm:$0xff]   ;;  %v8460_v53 = vld [vmem:[#allocation7 + $0x3c4] ss:$16 sps:$4 sm:$0xff]  }
 0x315   :  { %v3750_v9 = vmax.f32 %v7027_v58, 0.0  ;;  %v3752_v10 = vmax.f32 %v7091_v60, 0.0 }
 0x316   :  { %v3849_v12 = vpack.c.bf16 %v3749_v4, %v3745_v1  ;;  %v8872_v14 = vpack.c.bf16 %v3751_v5, %v3747_v3 }
 0x317   :  { %v3850_v15 = vpack.c.bf16 %v3750_v9, %v3746_v7  ;;  %v8874_v16 = vpack.c.bf16 %v3752_v10, %v3748_v8  ;;  %v2836_v17 = vpop.f32.mrb[28].mxu0  ;;  %v3608_v18 = vpop.f32.mrb[28].mxu1  ;;  %4895 = vmatpush1.bf16.msra.mxu0 %v8440_v62  ;;  %5281 = vmatpush1.bf16.msra.mxu1 %v8443_v63  ;;  %v8463_v62 = vld [vmem:[#allocation7 + $0x3cc] ss:$16 sps:$4 sm:$0xff]   ;;  %v8458_v10 = vld [vmem:[#allocation7 + $0x3c0] ss:$16 sps:$4 sm:$0xff]  }
 0x318   :  { %v7028_v24 = vadd.f32 %v2836_v17, %v8778_v2  ;;  %v7092_v30 = vadd.f32 %v3608_v18, %v8782_v27  ;;  %v2838_v32 = vpop.f32.mrb[29].mxu0  ;;  %v3610_v34 = vpop.f32.mrb[29].mxu1  ;;  %4896 = vmatprep.subr.bf16.mxu0 %v8448_v0  ;;  %5282 = vmatprep.subr.bf16.mxu1 %v8451_v6 }
 0x319   :  { %v7029_v39 = vadd.f32 %v2838_v32, %v8786_v28  ;;  %v7093_v40 = vadd.f32 %v3610_v34, %v8790_v29  ;;  %v2840_v41 = vpop.f32.mrb[30].mxu0  ;;  %v3612_v42 = vpop.f32.mrb[30].mxu1  ;;  %4771 = vmatprep.mubr.bf16.mxu0 %v3850_v15  ;;  %5157 = vmatprep.mubr.bf16.mxu1 %v3850_v15 }
 0x31a   :  { %v7030_v43 = vadd.f32 %v2840_v41, %v8778_v2  ;;  %v7094_v45 = vadd.f32 %v3612_v42, %v8782_v27  ;;  %v2842_v47 = vpop.f32.mrb[31].mxu0  ;;  %v3614_v48 = vpop.f32.mrb[31].mxu1  ;;  %4772 = vmatmul.mubr.bf16.gmra.mrb[88].mxu0 %v3849_v12  ;;  %5158 = vmatmul.mubr.bf16.gmra.mrb[88].mxu1 %v3849_v12  ;;  %v3753_v54 = vmax.f32 %v7028_v24, 0.0  ;;  %v3755_v56 = vmax.f32 %v7092_v30, 0.0  ;;  %v8461_v12 = vld [vmem:[#allocation7 + $0x3c8] ss:$16 sps:$4 sm:$0xff]  }
 0x31b   :  { %v7031_v49 = vadd.f32 %v2842_v47, %v8786_v28  ;;  %v7095_v50 = vadd.f32 %v3614_v48, %v8790_v29  ;;  %4897 = vmatpush1.bf16.msra.mxu0 %v8446_v19  ;;  %5283 = vmatpush1.bf16.msra.mxu1 %v8449_v20  ;;  %v3754_v63 = vmax.f32 %v7029_v39, 0.0  ;;  %v3756_v0 = vmax.f32 %v7093_v40, 0.0  ;;  %v8466_v20 = vld [vmem:[#allocation7 + $0x3e4] ss:$16 sps:$4 sm:$0xff]   ;;  %v8469_v24 = vld [vmem:[#allocation7 + $0x3ec] ss:$16 sps:$4 sm:$0xff]  }
 0x31c   :  { %v3757_v58 = vmax.f32 %v7030_v43, 0.0  ;;  %v3759_v60 = vmax.f32 %v7094_v45, 0.0  ;;  %4898 = vmatprep.subr.bf16.mxu0 %v8454_v35  ;;  %5284 = vmatprep.subr.bf16.mxu1 %v8457_v37  ;;  %v8464_v45 = vld [vmem:[#allocation7 + $0x3e0] ss:$16 sps:$4 sm:$0xff]   ;;  %v8467_v47 = vld [vmem:[#allocation7 + $0x3e8] ss:$16 sps:$4 sm:$0xff]  }
 0x31d   :  { %v3758_v1 = vmax.f32 %v7031_v49, 0.0  ;;  %v3760_v3 = vmax.f32 %v7095_v50, 0.0 }
 0x31e   :  { %v3853_v4 = vpack.c.bf16 %v3757_v58, %v3753_v54  ;;  %v8884_v5 = vpack.c.bf16 %v3759_v60, %v3755_v56 }
 0x31f   :  { %v3854_v6 = vpack.c.bf16 %v3758_v1, %v3754_v63  ;;  %v8886_v7 = vpack.c.bf16 %v3760_v3, %v3756_v0  ;;  %v2846_v8 = vpop.f32.mrb[32].mxu0  ;;  %v3618_v9 = vpop.f32.mrb[32].mxu1  ;;  %4899 = vmatpush1.bf16.msra.mxu0 %v8452_v51  ;;  %5285 = vmatpush1.bf16.msra.mxu1 %v8455_v52 }
 0x320   :  { %v7032_v15 = vadd.f32 %v2846_v8, %v8778_v2  ;;  %v7096_v17 = vadd.f32 %v3618_v9, %v8782_v27  ;;  %v2848_v18 = vpop.f32.mrb[33].mxu0  ;;  %v3620_v19 = vpop.f32.mrb[33].mxu1  ;;  %4900 = vmatprep.subr.bf16.mxu0 %v8460_v53  ;;  %5286 = vmatprep.subr.bf16.mxu1 %v8463_v62 }
 0x321   :  { %v7033_v30 = vadd.f32 %v2848_v18, %v8786_v28  ;;  %v7097_v32 = vadd.f32 %v3620_v19, %v8790_v29  ;;  %v2850_v34 = vpop.f32.mrb[34].mxu0  ;;  %v3622_v35 = vpop.f32.mrb[34].mxu1  ;;  %4781 = vmatprep.mubr.bf16.mxu0 %v3854_v6  ;;  %5167 = vmatprep.mubr.bf16.mxu1 %v3854_v6 }
 0x322   :  { %v7034_v37 = vadd.f32 %v2850_v34, %v8778_v2  ;;  %v7098_v39 = vadd.f32 %v3622_v35, %v8782_v27  ;;  %v2852_v40 = vpop.f32.mrb[35].mxu0  ;;  %v3624_v41 = vpop.f32.mrb[35].mxu1  ;;  %4782 = vmatmul.mubr.bf16.gmra.mrb[92].mxu0 %v3853_v4  ;;  %5168 = vmatmul.mubr.bf16.gmra.mrb[92].mxu1 %v3853_v4  ;;  %v3761_v48 = vmax.f32 %v7032_v15, 0.0  ;;  %v3763_v49 = vmax.f32 %v7096_v17, 0.0 }
 0x323   :  { %v7035_v42 = vadd.f32 %v2852_v40, %v8786_v28  ;;  %v7099_v43 = vadd.f32 %v3624_v41, %v8790_v29  ;;  %4901 = vmatpush1.bf16.msra.mxu0 %v8458_v10  ;;  %5287 = vmatpush1.bf16.msra.mxu1 %v8461_v12  ;;  %v3762_v52 = vmax.f32 %v7033_v30, 0.0  ;;  %v3764_v53 = vmax.f32 %v7097_v32, 0.0 }
 0x324   :  { %v3765_v50 = vmax.f32 %v7034_v37, 0.0  ;;  %v3767_v51 = vmax.f32 %v7098_v39, 0.0  ;;  %4902 = vmatprep.subr.bf16.mxu0 %v8466_v20  ;;  %5288 = vmatprep.subr.bf16.mxu1 %v8469_v24 }
 0x325   :  { %v3766_v54 = vmax.f32 %v7035_v42, 0.0  ;;  %v3768_v56 = vmax.f32 %v7099_v43, 0.0 }
 0x326   :  { %v3857_v58 = vpack.c.bf16 %v3765_v50, %v3761_v48  ;;  %v8896_v60 = vpack.c.bf16 %v3767_v51, %v3763_v49 }
 0x327   :  { %v3858_v62 = vpack.c.bf16 %v3766_v54, %v3762_v52  ;;  %v8898_v63 = vpack.c.bf16 %v3768_v56, %v3764_v53  ;;  %v2856_v0 = vpop.f32.mrb[36].mxu0  ;;  %v3628_v1 = vpop.f32.mrb[36].mxu1  ;;  %4903 = vmatpush1.bf16.msra.mxu0 %v8464_v45  ;;  %5289 = vmatpush1.bf16.msra.mxu1 %v8467_v47 }
 0x328   :  { %v7036_v3 = vadd.f32 %v2856_v0, %v8778_v2  ;;  %v7100_v4 = vadd.f32 %v3628_v1, %v8782_v27  ;;  %v2858_v6 = vpop.f32.mrb[37].mxu0  ;;  %v3630_v8 = vpop.f32.mrb[37].mxu1 }
 0x329   :  { %v7037_v9 = vadd.f32 %v2858_v6, %v8786_v28  ;;  %v7101_v10 = vadd.f32 %v3630_v8, %v8790_v29  ;;  %v2860_v12 = vpop.f32.mrb[38].mxu0  ;;  %v3632_v15 = vpop.f32.mrb[38].mxu1  ;;  %4791 = vmatprep.mubr.bf16.mxu0 %v3858_v62  ;;  %5177 = vmatprep.mubr.bf16.mxu1 %v3858_v62 }
 0x32a   :  { %v7038_v17 = vadd.f32 %v2860_v12, %v8778_v2  ;;  %v7102_v18 = vadd.f32 %v3632_v15, %v8782_v27  ;;  %v2862_v19 = vpop.f32.mrb[39].mxu0  ;;  %v3634_v20 = vpop.f32.mrb[39].mxu1  ;;  %4792 = vmatmul.mubr.bf16.gmra.mrb[96].mxu0 %v3857_v58  ;;  %5178 = vmatmul.mubr.bf16.gmra.mrb[96].mxu1 %v3857_v58  ;;  %v3769_v32 = vmax.f32 %v7036_v3, 0.0  ;;  %v3771_v34 = vmax.f32 %v7100_v4, 0.0 }
 0x32b   :  { %v7039_v24 = vadd.f32 %v2862_v19, %v8786_v28  ;;  %v7103_v30 = vadd.f32 %v3634_v20, %v8790_v29  ;;  %v3770_v39 = vmax.f32 %v7037_v9, 0.0  ;;  %v3772_v40 = vmax.f32 %v7101_v10, 0.0 }
 0x32c   :  { %v3773_v35 = vmax.f32 %v7038_v17, 0.0  ;;  %v3775_v37 = vmax.f32 %v7102_v18, 0.0 }
 0x32d   :  { %v3774_v41 = vmax.f32 %v7039_v24, 0.0  ;;  %v3776_v42 = vmax.f32 %v7103_v30, 0.0 }
 0x32e   :  { %v3861_v43 = vpack.c.bf16 %v3773_v35, %v3769_v32  ;;  %v8908_v45 = vpack.c.bf16 %v3775_v37, %v3771_v34 }
 0x32f   :  { %v3862_v47 = vpack.c.bf16 %v3774_v41, %v3770_v39  ;;  %v8910_v48 = vpack.c.bf16 %v3776_v42, %v3772_v40  ;;  %v2866_v49 = vpop.f32.mrb[40].mxu0  ;;  %v3638_v50 = vpop.f32.mrb[40].mxu1 }
 0x330   :  { %v7040_v51 = vadd.f32 %v2866_v49, %v8778_v2  ;;  %v7104_v52 = vadd.f32 %v3638_v50, %v8782_v27  ;;  %v2868_v53 = vpop.f32.mrb[41].mxu0  ;;  %v3640_v54 = vpop.f32.mrb[41].mxu1 }
 0x331   :  { %v7041_v56 = vadd.f32 %v2868_v53, %v8786_v28  ;;  %v7105_v58 = vadd.f32 %v3640_v54, %v8790_v29  ;;  %v2870_v62 = vpop.f32.mrb[42].mxu0  ;;  %v3642_v0 = vpop.f32.mrb[42].mxu1  ;;  %4801 = vmatprep.mubr.bf16.mxu0 %v3862_v47  ;;  %5187 = vmatprep.mubr.bf16.mxu1 %v3862_v47 }
 0x332   :  { %v7042_v1 = vadd.f32 %v2870_v62, %v8778_v2  ;;  %v7106_v3 = vadd.f32 %v3642_v0, %v8782_v27  ;;  %v2872_v4 = vpop.f32.mrb[43].mxu0  ;;  %v3644_v6 = vpop.f32.mrb[43].mxu1  ;;  %4802 = vmatmul.mubr.bf16.gmra.mrb[100].mxu0 %v3861_v43  ;;  %5188 = vmatmul.mubr.bf16.gmra.mrb[100].mxu1 %v3861_v43  ;;  %v3777_v10 = vmax.f32 %v7040_v51, 0.0  ;;  %v3779_v12 = vmax.f32 %v7104_v52, 0.0 }
 0x333   :  { %v7043_v8 = vadd.f32 %v2872_v4, %v8786_v28  ;;  %v7107_v9 = vadd.f32 %v3644_v6, %v8790_v29  ;;  %v3778_v18 = vmax.f32 %v7041_v56, 0.0  ;;  %v3780_v19 = vmax.f32 %v7105_v58, 0.0 }
 0x334   :  { %v3781_v15 = vmax.f32 %v7042_v1, 0.0  ;;  %v3783_v17 = vmax.f32 %v7106_v3, 0.0 }
 0x335   :  { %v3782_v20 = vmax.f32 %v7043_v8, 0.0  ;;  %v3784_v24 = vmax.f32 %v7107_v9, 0.0 }
 0x336   :  { %v3865_v30 = vpack.c.bf16 %v3781_v15, %v3777_v10  ;;  %v8920_v32 = vpack.c.bf16 %v3783_v17, %v3779_v12 }
 0x337   :  { %v3866_v34 = vpack.c.bf16 %v3782_v20, %v3778_v18  ;;  %v8922_v35 = vpack.c.bf16 %v3784_v24, %v3780_v19  ;;  %v2876_v37 = vpop.f32.mrb[44].mxu0  ;;  %v3648_v39 = vpop.f32.mrb[44].mxu1 }
 0x338   :  { %v7044_v40 = vadd.f32 %v2876_v37, %v8778_v2  ;;  %v7108_v41 = vadd.f32 %v3648_v39, %v8782_v27  ;;  %v2878_v42 = vpop.f32.mrb[45].mxu0  ;;  %v3650_v43 = vpop.f32.mrb[45].mxu1 }
 0x339   :  { %v7045_v47 = vadd.f32 %v2878_v42, %v8786_v28  ;;  %v7109_v49 = vadd.f32 %v3650_v43, %v8790_v29  ;;  %v2880_v50 = vpop.f32.mrb[46].mxu0  ;;  %v3652_v51 = vpop.f32.mrb[46].mxu1  ;;  %4811 = vmatprep.mubr.bf16.mxu0 %v3866_v34  ;;  %5197 = vmatprep.mubr.bf16.mxu1 %v3866_v34 }
 0x33a   :  { %v7046_v52 = vadd.f32 %v2880_v50, %v8778_v2  ;;  %v7110_v53 = vadd.f32 %v3652_v51, %v8782_v27  ;;  %v2882_v54 = vpop.f32.mrb[47].mxu0  ;;  %v3654_v56 = vpop.f32.mrb[47].mxu1  ;;  %4812 = vmatmul.mubr.bf16.gmra.mrb[104].mxu0 %v3865_v30  ;;  %5198 = vmatmul.mubr.bf16.gmra.mrb[104].mxu1 %v3865_v30  ;;  %v3785_v0 = vmax.f32 %v7044_v40, 0.0  ;;  %v3787_v1 = vmax.f32 %v7108_v41, 0.0 }
 0x33b   :  { %v7047_v58 = vadd.f32 %v2882_v54, %v8786_v28  ;;  %v7111_v62 = vadd.f32 %v3654_v56, %v8790_v29  ;;  %v3786_v6 = vmax.f32 %v7045_v47, 0.0  ;;  %v3788_v8 = vmax.f32 %v7109_v49, 0.0 }
 0x33c   :  { %v3789_v3 = vmax.f32 %v7046_v52, 0.0  ;;  %v3791_v4 = vmax.f32 %v7110_v53, 0.0  ;;  %v8470_v53 = vld [vmem:[#allocation8 + $0x40] sm:$0xff]  }
 0x33d   :  { %v3790_v9 = vmax.f32 %v7047_v58, 0.0  ;;  %v3792_v10 = vmax.f32 %v7111_v62, 0.0  ;;  %6776 = vmatprep.subr.bf16.mxu0 %v8470_v53 }
 0x33e   :  { %v3869_v12 = vpack.c.bf16 %v3789_v3, %v3785_v0  ;;  %v8932_v15 = vpack.c.bf16 %v3791_v4, %v3787_v1 }
 0x33f   :  { %v3870_v17 = vpack.c.bf16 %v3790_v9, %v3786_v6  ;;  %v8934_v18 = vpack.c.bf16 %v3792_v10, %v3788_v8  ;;  %v2886_v19 = vpop.f32.mrb[48].mxu0  ;;  %v3658_v20 = vpop.f32.mrb[48].mxu1 }
 0x340   :  { %v7048_v24 = vadd.f32 %v2886_v19, %v8778_v2  ;;  %v7112_v30 = vadd.f32 %v3658_v20, %v8782_v27  ;;  %v2888_v34 = vpop.f32.mrb[49].mxu0  ;;  %v3660_v37 = vpop.f32.mrb[49].mxu1 }
 0x341   :  { %v7049_v39 = vadd.f32 %v2888_v34, %v8786_v28  ;;  %v7113_v40 = vadd.f32 %v3660_v37, %v8790_v29  ;;  %v2890_v41 = vpop.f32.mrb[50].mxu0  ;;  %v3662_v42 = vpop.f32.mrb[50].mxu1  ;;  %4821 = vmatprep.mubr.bf16.mxu0 %v3870_v17  ;;  %5207 = vmatprep.mubr.bf16.mxu1 %v3870_v17 }
 0x342   :  { %v7050_v43 = vadd.f32 %v2890_v41, %v8778_v2  ;;  %v7114_v47 = vadd.f32 %v3662_v42, %v8782_v27  ;;  %v2892_v49 = vpop.f32.mrb[51].mxu0  ;;  %v3664_v50 = vpop.f32.mrb[51].mxu1  ;;  %4822 = vmatmul.mubr.bf16.gmra.mrb[108].mxu0 %v3869_v12  ;;  %5208 = vmatmul.mubr.bf16.gmra.mrb[108].mxu1 %v3869_v12  ;;  %v3793_v54 = vmax.f32 %v7048_v24, 0.0  ;;  %v3795_v56 = vmax.f32 %v7112_v30, 0.0 }
 0x343   :  { %v7051_v51 = vadd.f32 %v2892_v49, %v8786_v28  ;;  %v7115_v52 = vadd.f32 %v3664_v50, %v8790_v29  ;;  %v3794_v0 = vmax.f32 %v7049_v39, 0.0  ;;  %v3796_v1 = vmax.f32 %v7113_v40, 0.0  ;;  %v8472_v49 = vld [vmem:[#allocation8 + $0xc0] sm:$0xff]  }
 0x344   :  { %v3797_v58 = vmax.f32 %v7050_v43, 0.0  ;;  %v3799_v62 = vmax.f32 %v7114_v47, 0.0  ;;  %6888 = vmatprep.subr.bf16.mxu1 %v8472_v49 }
 0x345   :  { %v3798_v3 = vmax.f32 %v7051_v51, 0.0  ;;  %v3800_v4 = vmax.f32 %v7115_v52, 0.0 }
 0x346   :  { %v3873_v6 = vpack.c.bf16 %v3797_v58, %v3793_v54  ;;  %v8944_v8 = vpack.c.bf16 %v3799_v62, %v3795_v56 }
 0x347   :  { %v3874_v9 = vpack.c.bf16 %v3798_v3, %v3794_v0  ;;  %v8946_v10 = vpack.c.bf16 %v3800_v4, %v3796_v1  ;;  %v2896_v12 = vpop.f32.mrb[52].mxu0  ;;  %v3668_v17 = vpop.f32.mrb[52].mxu1 }
 0x348   :  { %v7052_v19 = vadd.f32 %v2896_v12, %v8778_v2  ;;  %v7116_v20 = vadd.f32 %v3668_v17, %v8782_v27  ;;  %v2898_v24 = vpop.f32.mrb[53].mxu0  ;;  %v3670_v30 = vpop.f32.mrb[53].mxu1 }
 0x349   :  { %v7053_v34 = vadd.f32 %v2898_v24, %v8786_v28  ;;  %v7117_v37 = vadd.f32 %v3670_v30, %v8790_v29  ;;  %v2900_v39 = vpop.f32.mrb[54].mxu0  ;;  %v3672_v40 = vpop.f32.mrb[54].mxu1  ;;  %4831 = vmatprep.mubr.bf16.mxu0 %v3874_v9  ;;  %5217 = vmatprep.mubr.bf16.mxu1 %v3874_v9 }
 0x34a   :  { %v7054_v41 = vadd.f32 %v2900_v39, %v8778_v2  ;;  %v7118_v42 = vadd.f32 %v3672_v40, %v8782_v27  ;;  %v2902_v43 = vpop.f32.mrb[55].mxu0  ;;  %v3674_v47 = vpop.f32.mrb[55].mxu1  ;;  %4832 = vmatmul.mubr.bf16.gmra.mrb[112].mxu0 %v3873_v6  ;;  %5218 = vmatmul.mubr.bf16.gmra.mrb[112].mxu1 %v3873_v6  ;;  %v3801_v52 = vmax.f32 %v7052_v19, 0.0  ;;  %v3803_v53 = vmax.f32 %v7116_v20, 0.0 }
 0x34b   :  { %v7055_v50 = vadd.f32 %v2902_v43, %v8786_v28  ;;  %v7119_v51 = vadd.f32 %v3674_v47, %v8790_v29  ;;  %v3802_v58 = vmax.f32 %v7053_v34, 0.0  ;;  %v3804_v62 = vmax.f32 %v7117_v37, 0.0 }
 0x34c   :  { %v3805_v54 = vmax.f32 %v7054_v41, 0.0  ;;  %v3807_v56 = vmax.f32 %v7118_v42, 0.0 }
 0x34d   :  { %v3806_v0 = vmax.f32 %v7055_v50, 0.0  ;;  %v3808_v1 = vmax.f32 %v7119_v51, 0.0 }
 0x34e   :  { %v3877_v3 = vpack.c.bf16 %v3805_v54, %v3801_v52  ;;  %v8956_v4 = vpack.c.bf16 %v3807_v56, %v3803_v53 }
 0x34f   :  { %v3878_v9 = vpack.c.bf16 %v3806_v0, %v3802_v58  ;;  %v8958_v12 = vpack.c.bf16 %v3808_v1, %v3804_v62  ;;  %v2906_v6 = vpop.f32.mrb[56].mxu0  ;;  %v3678_v17 = vpop.f32.mrb[56].mxu1 }
 0x350   :  { %v7056_v24 = vadd.f32 %v2906_v6, %v8778_v2  ;;  %v7120_v19 = vadd.f32 %v3678_v17, %v8782_v27  ;;  %v2908_v20 = vpop.f32.mrb[57].mxu0  ;;  %v3680_v30 = vpop.f32.mrb[57].mxu1 }
 0x351   :  { %v7057_v39 = vadd.f32 %v2908_v20, %v8786_v28  ;;  %v7121_v34 = vadd.f32 %v3680_v30, %v8790_v29  ;;  %v2910_v37 = vpop.f32.mrb[58].mxu0  ;;  %v3682_v40 = vpop.f32.mrb[58].mxu1  ;;  %4841 = vmatprep.mubr.bf16.mxu0 %v3878_v9  ;;  %5227 = vmatprep.mubr.bf16.mxu1 %v3878_v9 }
 0x352   :  { %v7058_v41 = vadd.f32 %v2910_v37, %v8778_v2  ;;  %v7122_v42 = vadd.f32 %v3682_v40, %v8782_v27  ;;  %v2912_v43 = vpop.f32.mrb[59].mxu0  ;;  %v3684_v47 = vpop.f32.mrb[59].mxu1  ;;  %4842 = vmatmul.mubr.bf16.gmra.mrb[116].mxu0 %v3877_v3  ;;  %5228 = vmatmul.mubr.bf16.gmra.mrb[116].mxu1 %v3877_v3  ;;  %v3809_v51 = vmax.f32 %v7056_v24, 0.0  ;;  %v3811_v52 = vmax.f32 %v7120_v19, 0.0 }
 0x353   :  { %v7059_v49 = vadd.f32 %v2912_v43, %v8786_v28  ;;  %v7123_v50 = vadd.f32 %v3684_v47, %v8790_v29  ;;  %v3810_v56 = vmax.f32 %v7057_v39, 0.0  ;;  %v3812_v58 = vmax.f32 %v7121_v34, 0.0 }
 0x354   :  { %v3813_v53 = vmax.f32 %v7058_v41, 0.0  ;;  %v3815_v54 = vmax.f32 %v7122_v42, 0.0 }
 0x355   :  { %v3814_v62 = vmax.f32 %v7059_v49, 0.0  ;;  %v3816_v0 = vmax.f32 %v7123_v50, 0.0 }
 0x356   :  { %v3881_v1 = vpack.c.bf16 %v3813_v53, %v3809_v51  ;;  %v8968_v9 = vpack.c.bf16 %v3815_v54, %v3811_v52 }
 0x357   :  { %v3882_v6 = vpack.c.bf16 %v3814_v62, %v3810_v56  ;;  %v8970_v17 = vpack.c.bf16 %v3816_v0, %v3812_v58  ;;  %v2916_v20 = vpop.f32.mrb[60].mxu0  ;;  %v3688_v3 = vpop.f32.mrb[60].mxu1 }
 0x358   :  { %v7060_v30 = vadd.f32 %v2916_v20, %v8778_v2  ;;  %v7124_v37 = vadd.f32 %v3688_v3, %v8782_v27  ;;  %v2918_v24 = vpop.f32.mrb[61].mxu0  ;;  %v3690_v19 = vpop.f32.mrb[61].mxu1 }
 0x359   :  { %v7061_v40 = vadd.f32 %v2918_v24, %v8786_v28  ;;  %v7125_v39 = vadd.f32 %v3690_v19, %v8790_v29  ;;  %v2920_v34 = vpop.f32.mrb[62].mxu0  ;;  %v3692_v41 = vpop.f32.mrb[62].mxu1  ;;  %4851 = vmatprep.mubr.bf16.mxu0 %v3882_v6  ;;  %5237 = vmatprep.mubr.bf16.mxu1 %v3882_v6  ;;  %v8477_v24 = vld [vmem:[#allocation8 + $0x88] sm:$0xff]   ;;  %v8478_v19 = vld [vmem:[#allocation8 + $0x50] sm:$0xff]  }
 0x35a   :  { %v7062_v42 = vadd.f32 %v2920_v34, %v8778_v2  ;;  %v7126_v43 = vadd.f32 %v3692_v41, %v8782_v27  ;;  %v2922_v47 = vpop.f32.mrb[63].mxu0  ;;  %v3694_v49 = vpop.f32.mrb[63].mxu1  ;;  %4852 = vmatmul.mubr.bf16.gmra.mrb[120].mxu0 %v3881_v1  ;;  %5238 = vmatmul.mubr.bf16.gmra.mrb[120].mxu1 %v3881_v1  ;;  %v3817_v52 = vmax.f32 %v7060_v30, 0.0  ;;  %v3819_v53 = vmax.f32 %v7124_v37, 0.0  ;;  %v8474_v1 = vld [vmem:[#allocation8 + $0x48] sm:$0xff]   ;;  %v8482_v34 = vld [vmem:[#allocation8 + $0x58] sm:$0xff]  }
 0x35b   :  { %v7063_v50 = vadd.f32 %v2922_v47, %v8786_v28  ;;  %v7127_v51 = vadd.f32 %v3694_v49, %v8790_v29  ;;  %v3818_v58 = vmax.f32 %v7061_v40, 0.0  ;;  %v3820_v62 = vmax.f32 %v7125_v39, 0.0  ;;  %v8471_v28 = vld [vmem:[#allocation8] sm:$0xff]   ;;  %v8476_v30 = vld [vmem:[#allocation8 + $0xc8] sm:$0xff]   ;;  %v8479_v40 = vld [vmem:[#allocation8 + $0x10] sm:$0xff]  }
 0x35c   :  { %v3821_v54 = vmax.f32 %v7062_v42, 0.0  ;;  %v3823_v56 = vmax.f32 %v7126_v43, 0.0  ;;  %v8473_v29 = vld [vmem:[#allocation8 + $0x80] sm:$0xff]   ;;  %v8475_v37 = vld [vmem:[#allocation8 + $0x8] sm:$0xff]   ;;  %v8481_v39 = vld [vmem:[#allocation8 + $0x90] sm:$0xff]  }
 0x35d   :  { %v3822_v0 = vmax.f32 %v7063_v50, 0.0  ;;  %v3824_v6 = vmax.f32 %v7127_v51, 0.0  ;;  %v8485_v41 = vld [vmem:[#allocation8 + $0x98] sm:$0xff]   ;;  %v8486_v42 = vld [vmem:[#allocation8 + $0x60] sm:$0xff]   ;;  %v8490_v50 = vld [vmem:[#allocation8 + $0x68] sm:$0xff]  }
 0x35e   :  { %v3885_v20 = vpack.c.bf16 %v3821_v54, %v3817_v52  ;;  %v8980_v2 = vpack.c.bf16 %v3823_v56, %v3819_v53  ;;  %v8488_v43 = vld [vmem:[#allocation8 + $0xe0] sm:$0xff]   ;;  %v8493_v51 = vld [vmem:[#allocation8 + $0xa8] sm:$0xff]   ;;  %v8494_v52 = vld [vmem:[#allocation8 + $0x70] sm:$0xff]  }
 0x35f   :  { %v3886_v27 = vpack.c.bf16 %v3822_v0, %v3818_v58  ;;  %v8982_v3 = vpack.c.bf16 %v3824_v6, %v3820_v62  ;;  %v8487_v47 = vld [vmem:[#allocation8 + $0x20] sm:$0xff]   ;;  %v8496_v53 = vld [vmem:[#allocation8 + $0xf0] sm:$0xff]   ;;  %v8498_v58 = vld [vmem:[#allocation8 + $0x78] sm:$0xff]  }
 0x360   :  { %v8489_v49 = vld [vmem:[#allocation8 + $0xa0] sm:$0xff]   ;;  %v8495_v54 = vld [vmem:[#allocation8 + $0x30] sm:$0xff]   ;;  %v8501_v62 = vld [vmem:[#allocation8 + $0xb8] sm:$0xff]  }
 0x361   :  { %4861 = vmatprep.mubr.bf16.mxu0 %v3886_v27  ;;  %5247 = vmatprep.mubr.bf16.mxu1 %v3886_v27  ;;  %v8497_v56 = vld [vmem:[#allocation8 + $0xb0] sm:$0xff]  }
 0x362   :  { %4862 = vmatmul.mubr.bf16.gmra.mrb[124].mxu0 %v3885_v20  ;;  %5248 = vmatmul.mubr.bf16.gmra.mrb[124].mxu1 %v3885_v20 }
 0x363   :  { %4904 = vmatprep.mubr.bf16.mxu0 %v8802_v57  ;;  %5290 = vmatprep.mubr.bf16.mxu1 %v8802_v57  ;;  %v8480_v57 = vld [vmem:[#allocation8 + $0xd0] sm:$0xff]  }
 0x36a   :  { %4905 = vmatmul.mubr.bf16.vlgmr.msra.gmra.mrb[64].mxu0 %v8800_v55  ;;  %5291 = vmatmul.mubr.bf16.vlgmr.msra.gmra.mrb[64].mxu1 %v8800_v55  ;;  %v8484_v55 = vld [vmem:[#allocation8 + $0xd8] sm:$0xff]  }
 0x36b   :  { %4914 = vmatprep.mubr.bf16.mxu0 %v8814_v38  ;;  %5300 = vmatprep.mubr.bf16.mxu1 %v8814_v38  ;;  %v8483_v38 = vld [vmem:[#allocation8 + $0x18] sm:$0xff]  }
 0x36c   :  { %6777 = vmatpush3.bf16.msra.mxu0 %v8471_v28  ;;  %6889 = vmatpush3.bf16.msra.mxu1 %v8473_v29 }
 0x36d   :  { %6778 = vmatprep.subr.bf16.mxu0 %v8474_v1  ;;  %6890 = vmatprep.subr.bf16.mxu1 %v8476_v30 }
 0x370   :  { %6779 = vmatpush3.bf16.msra.mxu0 %v8475_v37  ;;  %6891 = vmatpush3.bf16.msra.mxu1 %v8477_v24 }
 0x371   :  { %6780 = vmatprep.subr.bf16.mxu0 %v8478_v19  ;;  %6892 = vmatprep.subr.bf16.mxu1 %v8480_v57 }
 0x372   :  { %4915 = vmatmul.mubr.bf16.gmra.mrb[68].mxu0 %v8812_v36  ;;  %5301 = vmatmul.mubr.bf16.gmra.mrb[68].mxu1 %v8812_v36  ;;  %v8492_v36 = vld [vmem:[#allocation8 + $0xe8] sm:$0xff]  }
 0x373   :  { %4924 = vmatprep.mubr.bf16.mxu0 %v8826_v13  ;;  %5310 = vmatprep.mubr.bf16.mxu1 %v8826_v13  ;;  %v8491_v13 = vld [vmem:[#allocation8 + $0x28] sm:$0xff]  }
 0x374   :  { %6781 = vmatpush3.bf16.msra.mxu0 %v8479_v40  ;;  %6893 = vmatpush3.bf16.msra.mxu1 %v8481_v39 }
 0x375   :  { %6782 = vmatprep.subr.bf16.mxu0 %v8482_v34  ;;  %6894 = vmatprep.subr.bf16.mxu1 %v8484_v55 }
 0x378   :  { %6783 = vmatpush3.bf16.msra.mxu0 %v8483_v38  ;;  %6895 = vmatpush3.bf16.msra.mxu1 %v8485_v41 }
 0x379   :  { %6784 = vmatprep.subr.bf16.mxu0 %v8486_v42  ;;  %6896 = vmatprep.subr.bf16.mxu1 %v8488_v43 }
 0x37a   :  { %4925 = vmatmul.mubr.bf16.gmra.mrb[72].mxu0 %v8824_v11  ;;  %5311 = vmatmul.mubr.bf16.gmra.mrb[72].mxu1 %v8824_v11  ;;  %v8500_v11 = vld [vmem:[#allocation8 + $0xf8] sm:$0xff]  }
 0x37b   :  { %4934 = vmatprep.mubr.bf16.mxu0 %v8838_v61  ;;  %5320 = vmatprep.mubr.bf16.mxu1 %v8838_v61  ;;  %v8499_v61 = vld [vmem:[#allocation8 + $0x38] sm:$0xff]  }
 0x37c   :  { %6785 = vmatpush3.bf16.msra.mxu0 %v8487_v47  ;;  %6897 = vmatpush3.bf16.msra.mxu1 %v8489_v49 }
 0x37d   :  { %6786 = vmatprep.subr.bf16.mxu0 %v8490_v50  ;;  %6898 = vmatprep.subr.bf16.mxu1 %v8492_v36 }
 0x380   :  { %6787 = vmatpush3.bf16.msra.mxu0 %v8491_v13  ;;  %6899 = vmatpush3.bf16.msra.mxu1 %v8493_v51 }
 0x381   :  { %6788 = vmatprep.subr.bf16.mxu0 %v8494_v52  ;;  %6900 = vmatprep.subr.bf16.mxu1 %v8496_v53 }
 0x382   :  { %4935 = vmatmul.mubr.bf16.gmra.mrb[76].mxu0 %v8836_v59  ;;  %5321 = vmatmul.mubr.bf16.gmra.mrb[76].mxu1 %v8836_v59  ;;  %v4017_v59 = vld [vmem:[%s9248_s4] sm:$0xf] }
 0x383   :  { %4944 = vmatprep.mubr.bf16.mxu0 %v8850_v46  ;;  %5330 = vmatprep.mubr.bf16.mxu1 %v8850_v46  ;;  %v9057_v46 = vrot.slane %v4017_v59, %v447_v23 }
 0x384   :  { %6789 = vmatpush3.bf16.msra.mxu0 %v8495_v54  ;;  %6901 = vmatpush3.bf16.msra.mxu1 %v8497_v56 }
 0x385   :  { %6790 = vmatprep.subr.bf16.mxu0 %v8498_v58  ;;  %6902 = vmatprep.subr.bf16.mxu1 %v8500_v11 }
 0x388   :  { %6791 = vmatpush3.bf16.msra.mxu0 %v8499_v61  ;;  %6903 = vmatpush3.bf16.msra.mxu1 %v8501_v62 }
 0x38a   :  { %4945 = vmatmul.mubr.bf16.gmra.mrb[80].mxu0 %v8848_v44  ;;  %5331 = vmatmul.mubr.bf16.gmra.mrb[80].mxu1 %v8848_v44  ;;  %v9053_v44 = vrot.slane %v4017_v59, %v439_v22 }
 0x38b   :  { %4954 = vmatprep.mubr.bf16.mxu0 %v8862_v33  ;;  %5340 = vmatprep.mubr.bf16.mxu1 %v8862_v33  ;;  %v9065_v33 = vrot.slane %v4017_v59, %v451_v26 }
 0x392   :  { %4955 = vmatmul.mubr.bf16.gmra.mrb[84].mxu0 %v8860_v31  ;;  %5341 = vmatmul.mubr.bf16.gmra.mrb[84].mxu1 %v8860_v31  ;;  %v9061_v31 = vrot.slane %v4017_v59, %v443_v25 }
 0x393   :  { %4964 = vmatprep.mubr.bf16.mxu0 %v8874_v16  ;;  %5350 = vmatprep.mubr.bf16.mxu1 %v8874_v16 }
 0x39a   :  { %4965 = vmatmul.mubr.bf16.gmra.mrb[88].mxu0 %v8872_v14  ;;  %5351 = vmatmul.mubr.bf16.gmra.mrb[88].mxu1 %v8872_v14 }
 0x39b   :  { %4974 = vmatprep.mubr.bf16.mxu0 %v8886_v7  ;;  %5360 = vmatprep.mubr.bf16.mxu1 %v8886_v7 }
 0x3a2   :  { %4975 = vmatmul.mubr.bf16.gmra.mrb[92].mxu0 %v8884_v5  ;;  %5361 = vmatmul.mubr.bf16.gmra.mrb[92].mxu1 %v8884_v5 }
 0x3a3   :  { %4984 = vmatprep.mubr.bf16.mxu0 %v8898_v63  ;;  %5370 = vmatprep.mubr.bf16.mxu1 %v8898_v63 }
 0x3aa   :  { %4985 = vmatmul.mubr.bf16.gmra.mrb[96].mxu0 %v8896_v60  ;;  %5371 = vmatmul.mubr.bf16.gmra.mrb[96].mxu1 %v8896_v60 }
 0x3ab   :  { %4994 = vmatprep.mubr.bf16.mxu0 %v8910_v48  ;;  %5380 = vmatprep.mubr.bf16.mxu1 %v8910_v48 }
 0x3b2   :  { %4995 = vmatmul.mubr.bf16.gmra.mrb[100].mxu0 %v8908_v45  ;;  %5381 = vmatmul.mubr.bf16.gmra.mrb[100].mxu1 %v8908_v45 }
 0x3b3   :  { %5004 = vmatprep.mubr.bf16.mxu0 %v8922_v35  ;;  %5390 = vmatprep.mubr.bf16.mxu1 %v8922_v35 }
 0x3ba   :  { %5005 = vmatmul.mubr.bf16.gmra.mrb[104].mxu0 %v8920_v32  ;;  %5391 = vmatmul.mubr.bf16.gmra.mrb[104].mxu1 %v8920_v32 }
 0x3bb   :  { %5014 = vmatprep.mubr.bf16.mxu0 %v8934_v18  ;;  %5400 = vmatprep.mubr.bf16.mxu1 %v8934_v18 }
 0x3c2   :  { %5015 = vmatmul.mubr.bf16.gmra.mrb[108].mxu0 %v8932_v15  ;;  %5401 = vmatmul.mubr.bf16.gmra.mrb[108].mxu1 %v8932_v15 }
 0x3c3   :  { %5024 = vmatprep.mubr.bf16.mxu0 %v8946_v10  ;;  %5410 = vmatprep.mubr.bf16.mxu1 %v8946_v10 }
 0x3ca   :  { %5025 = vmatmul.mubr.bf16.gmra.mrb[112].mxu0 %v8944_v8  ;;  %5411 = vmatmul.mubr.bf16.gmra.mrb[112].mxu1 %v8944_v8 }
 0x3cb   :  { %5034 = vmatprep.mubr.bf16.mxu0 %v8958_v12  ;;  %5420 = vmatprep.mubr.bf16.mxu1 %v8958_v12 }
 0x3d2   :  { %5035 = vmatmul.mubr.bf16.gmra.mrb[116].mxu0 %v8956_v4  ;;  %5421 = vmatmul.mubr.bf16.gmra.mrb[116].mxu1 %v8956_v4 }
 0x3d3   :  { %5044 = vmatprep.mubr.bf16.mxu0 %v8970_v17  ;;  %5430 = vmatprep.mubr.bf16.mxu1 %v8970_v17 }
 0x3da   :  { %5045 = vmatmul.mubr.bf16.gmra.mrb[120].mxu0 %v8968_v9  ;;  %5431 = vmatmul.mubr.bf16.gmra.mrb[120].mxu1 %v8968_v9 }
 0x3db   :  { %5054 = vmatprep.mubr.bf16.mxu0 %v8982_v3  ;;  %5440 = vmatprep.mubr.bf16.mxu1 %v8982_v3 }
 0x3e2   :  { %5055 = vmatmul.mubr.bf16.gmra.mrb[124].mxu0 %v8980_v2  ;;  %5441 = vmatmul.mubr.bf16.gmra.mrb[124].mxu1 %v8980_v2 }
 0x43d   :  { %v4906_v14 = vpop.f32.mrb[64].mxu0  ;;  %v5292_v16 = vpop.f32.mrb[64].mxu1 }
 0x43e   :  { %v7128_v5 = vadd.f32 %v4906_v14, %v9053_v44  ;;  %v7192_v7 = vadd.f32 %v5292_v16, %v9057_v46  ;;  %v4908_v22 = vpop.f32.mrb[65].mxu0  ;;  %v5294_v60 = vpop.f32.mrb[65].mxu1 }
 0x43f   :  { %v7129_v63 = vadd.f32 %v4908_v22, %v9061_v31  ;;  %v7193_v23 = vadd.f32 %v5294_v60, %v9065_v33  ;;  %v4910_v45 = vpop.f32.mrb[66].mxu0  ;;  %v5296_v48 = vpop.f32.mrb[66].mxu1 }
 0x440   :  { %v7130_v25 = vadd.f32 %v4910_v45, %v9053_v44  ;;  %v7194_v21 = vadd.f32 %v5296_v48, %v9057_v46  ;;  %v4912_v26 = vpop.f32.mrb[67].mxu0  ;;  %v5298_v32 = vpop.f32.mrb[67].mxu1  ;;  %v5451_v18 = vmax.f32 %v7128_v5, 0.0  ;;  %v5453_v8 = vmax.f32 %v7192_v7, 0.0 }
 0x441   :  { %v7131_v35 = vadd.f32 %v4912_v26, %v9061_v31  ;;  %v7195_v15 = vadd.f32 %v5298_v32, %v9065_v33  ;;  %v5452_v12 = vmax.f32 %v7129_v63, 0.0  ;;  %v5454_v9 = vmax.f32 %v7193_v23, 0.0 }
 0x442   :  { %v5455_v10 = vmax.f32 %v7130_v25, 0.0  ;;  %v5457_v4 = vmax.f32 %v7194_v21, 0.0 }
 0x443   :  { %v5456_v17 = vmax.f32 %v7131_v35, 0.0  ;;  %v5458_v0 = vmax.f32 %v7195_v15, 0.0 }
 0x444   :  { %v5579_v6 = vpack.c.bf16 %v5455_v10, %v5451_v18  ;;  %v5581_v20 = vpack.c.bf16 %v5457_v4, %v5453_v8 }
 0x445   :  { %v5580_v2 = vpack.c.bf16 %v5456_v17, %v5452_v12  ;;  %v5582_v27 = vpack.c.bf16 %v5458_v0, %v5454_v9  ;;  %v4916_v3 = vpop.f32.mrb[68].mxu0  ;;  %v5302_v28 = vpop.f32.mrb[68].mxu1 }
 0x446   :  { %v7132_v29 = vadd.f32 %v4916_v3, %v9053_v44  ;;  %v7196_v1 = vadd.f32 %v5302_v28, %v9057_v46  ;;  %v4918_v30 = vpop.f32.mrb[69].mxu0  ;;  %v5304_v37 = vpop.f32.mrb[69].mxu1 }
 0x447   :  { %v7133_v24 = vadd.f32 %v4918_v30, %v9061_v31  ;;  %v7197_v19 = vadd.f32 %v5304_v37, %v9065_v33  ;;  %v4920_v57 = vpop.f32.mrb[70].mxu0  ;;  %v5306_v40 = vpop.f32.mrb[70].mxu1  ;;  %5938 = vmatprep.mubr.bf16.mxu0 %v5580_v2  ;;  %6099 = vmatprep.mubr.bf16.mxu1 %v5582_v27 }
 0x448   :  { %v7134_v39 = vadd.f32 %v4920_v57, %v9053_v44  ;;  %v7198_v34 = vadd.f32 %v5306_v40, %v9057_v46  ;;  %v4922_v55 = vpop.f32.mrb[71].mxu0  ;;  %v5308_v38 = vpop.f32.mrb[71].mxu1  ;;  %5939 = vmatmul.mubr.bf16.vlgmr.msra.gmra.mrb[128].mxu0 %v5579_v6  ;;  %6100 = vmatmul.mubr.bf16.vlgmr.msra.gmra.mrb[128].mxu1 %v5581_v20  ;;  %v5459_v43 = vmax.f32 %v7132_v29, 0.0  ;;  %v5461_v47 = vmax.f32 %v7196_v1, 0.0 }
 0x449   :  { %v7135_v41 = vadd.f32 %v4922_v55, %v9061_v31  ;;  %v7199_v42 = vadd.f32 %v5308_v38, %v9065_v33  ;;  %v5460_v36 = vmax.f32 %v7133_v24, 0.0  ;;  %v5462_v13 = vmax.f32 %v7197_v19, 0.0 }
 0x44a   :  { %v5463_v49 = vmax.f32 %v7134_v39, 0.0  ;;  %v5465_v50 = vmax.f32 %v7198_v34, 0.0 }
 0x44b   :  { %v5464_v51 = vmax.f32 %v7135_v41, 0.0  ;;  %v5466_v52 = vmax.f32 %v7199_v42, 0.0 }
 0x44c   :  { %v5583_v53 = vpack.c.bf16 %v5463_v49, %v5459_v43  ;;  %v5585_v54 = vpack.c.bf16 %v5465_v50, %v5461_v47 }
 0x44d   :  { %v5584_v56 = vpack.c.bf16 %v5464_v51, %v5460_v36  ;;  %v5586_v58 = vpack.c.bf16 %v5466_v52, %v5462_v13  ;;  %v4926_v11 = vpop.f32.mrb[72].mxu0  ;;  %v5312_v61 = vpop.f32.mrb[72].mxu1 }
 0x44e   :  { %v7136_v62 = vadd.f32 %v4926_v11, %v9053_v44  ;;  %v7200_v59 = vadd.f32 %v5312_v61, %v9057_v46  ;;  %v4928_v14 = vpop.f32.mrb[73].mxu0  ;;  %v5314_v16 = vpop.f32.mrb[73].mxu1 }
 0x44f   :  { %v7137_v5 = vadd.f32 %v4928_v14, %v9061_v31  ;;  %v7201_v7 = vadd.f32 %v5314_v16, %v9065_v33  ;;  %v4930_v22 = vpop.f32.mrb[74].mxu0  ;;  %v5316_v60 = vpop.f32.mrb[74].mxu1  ;;  %5946 = vmatprep.mubr.bf16.mxu0 %v5584_v56  ;;  %6107 = vmatprep.mubr.bf16.mxu1 %v5586_v58 }
 0x450   :  { %v7138_v63 = vadd.f32 %v4930_v22, %v9053_v44  ;;  %v7202_v23 = vadd.f32 %v5316_v60, %v9057_v46  ;;  %v4932_v45 = vpop.f32.mrb[75].mxu0  ;;  %v5318_v48 = vpop.f32.mrb[75].mxu1  ;;  %5947 = vmatmul.mubr.bf16.gmra.mrb[132].mxu0 %v5583_v53  ;;  %6108 = vmatmul.mubr.bf16.gmra.mrb[132].mxu1 %v5585_v54  ;;  %v5467_v26 = vmax.f32 %v7136_v62, 0.0  ;;  %v5469_v32 = vmax.f32 %v7200_v59, 0.0 }
 0x451   :  { %v7139_v25 = vadd.f32 %v4932_v45, %v9061_v31  ;;  %v7203_v21 = vadd.f32 %v5318_v48, %v9065_v33  ;;  %v5468_v18 = vmax.f32 %v7137_v5, 0.0  ;;  %v5470_v8 = vmax.f32 %v7201_v7, 0.0 }
 0x452   :  { %v5471_v35 = vmax.f32 %v7138_v63, 0.0  ;;  %v5473_v15 = vmax.f32 %v7202_v23, 0.0 }
 0x453   :  { %v5472_v10 = vmax.f32 %v7139_v25, 0.0  ;;  %v5474_v4 = vmax.f32 %v7203_v21, 0.0 }
 0x454   :  { %v5587_v12 = vpack.c.bf16 %v5471_v35, %v5467_v26  ;;  %v5589_v9 = vpack.c.bf16 %v5473_v15, %v5469_v32 }
 0x455   :  { %v5588_v17 = vpack.c.bf16 %v5472_v10, %v5468_v18  ;;  %v5590_v0 = vpack.c.bf16 %v5474_v4, %v5470_v8  ;;  %v4936_v6 = vpop.f32.mrb[76].mxu0  ;;  %v5322_v20 = vpop.f32.mrb[76].mxu1 }
 0x456   :  { %v7140_v2 = vadd.f32 %v4936_v6, %v9053_v44  ;;  %v7204_v27 = vadd.f32 %v5322_v20, %v9057_v46  ;;  %v4938_v3 = vpop.f32.mrb[77].mxu0  ;;  %v5324_v28 = vpop.f32.mrb[77].mxu1 }
 0x457   :  { %v7141_v29 = vadd.f32 %v4938_v3, %v9061_v31  ;;  %v7205_v1 = vadd.f32 %v5324_v28, %v9065_v33  ;;  %v4940_v30 = vpop.f32.mrb[78].mxu0  ;;  %v5326_v37 = vpop.f32.mrb[78].mxu1  ;;  %5954 = vmatprep.mubr.bf16.mxu0 %v5588_v17  ;;  %6115 = vmatprep.mubr.bf16.mxu1 %v5590_v0 }
 0x458   :  { %v7142_v24 = vadd.f32 %v4940_v30, %v9053_v44  ;;  %v7206_v19 = vadd.f32 %v5326_v37, %v9057_v46  ;;  %v4942_v57 = vpop.f32.mrb[79].mxu0  ;;  %v5328_v40 = vpop.f32.mrb[79].mxu1  ;;  %5955 = vmatmul.mubr.bf16.gmra.mrb[136].mxu0 %v5587_v12  ;;  %6116 = vmatmul.mubr.bf16.gmra.mrb[136].mxu1 %v5589_v9  ;;  %v5475_v55 = vmax.f32 %v7140_v2, 0.0  ;;  %v5477_v38 = vmax.f32 %v7204_v27, 0.0 }
 0x459   :  { %v7143_v39 = vadd.f32 %v4942_v57, %v9061_v31  ;;  %v7207_v34 = vadd.f32 %v5328_v40, %v9065_v33  ;;  %v5476_v43 = vmax.f32 %v7141_v29, 0.0  ;;  %v5478_v47 = vmax.f32 %v7205_v1, 0.0 }
 0x45a   :  { %v5479_v41 = vmax.f32 %v7142_v24, 0.0  ;;  %v5481_v42 = vmax.f32 %v7206_v19, 0.0 }
 0x45b   :  { %v5480_v49 = vmax.f32 %v7143_v39, 0.0  ;;  %v5482_v50 = vmax.f32 %v7207_v34, 0.0 }
 0x45c   :  { %v5591_v36 = vpack.c.bf16 %v5479_v41, %v5475_v55  ;;  %v5593_v13 = vpack.c.bf16 %v5481_v42, %v5477_v38 }
 0x45d   :  { %v5592_v51 = vpack.c.bf16 %v5480_v49, %v5476_v43  ;;  %v5594_v52 = vpack.c.bf16 %v5482_v50, %v5478_v47  ;;  %v4946_v53 = vpop.f32.mrb[80].mxu0  ;;  %v5332_v54 = vpop.f32.mrb[80].mxu1 }
 0x45e   :  { %v7144_v56 = vadd.f32 %v4946_v53, %v9053_v44  ;;  %v7208_v58 = vadd.f32 %v5332_v54, %v9057_v46  ;;  %v4948_v11 = vpop.f32.mrb[81].mxu0  ;;  %v5334_v61 = vpop.f32.mrb[81].mxu1 }
 0x45f   :  { %v7145_v62 = vadd.f32 %v4948_v11, %v9061_v31  ;;  %v7209_v59 = vadd.f32 %v5334_v61, %v9065_v33  ;;  %v4950_v14 = vpop.f32.mrb[82].mxu0  ;;  %v5336_v16 = vpop.f32.mrb[82].mxu1  ;;  %5962 = vmatprep.mubr.bf16.mxu0 %v5592_v51  ;;  %6123 = vmatprep.mubr.bf16.mxu1 %v5594_v52 }
 0x460   :  { %v7146_v5 = vadd.f32 %v4950_v14, %v9053_v44  ;;  %v7210_v7 = vadd.f32 %v5336_v16, %v9057_v46  ;;  %v4952_v22 = vpop.f32.mrb[83].mxu0  ;;  %v5338_v60 = vpop.f32.mrb[83].mxu1  ;;  %5963 = vmatmul.mubr.bf16.gmra.mrb[140].mxu0 %v5591_v36  ;;  %6124 = vmatmul.mubr.bf16.gmra.mrb[140].mxu1 %v5593_v13  ;;  %v5483_v45 = vmax.f32 %v7144_v56, 0.0  ;;  %v5485_v48 = vmax.f32 %v7208_v58, 0.0 }
 0x461   :  { %v7147_v63 = vadd.f32 %v4952_v22, %v9061_v31  ;;  %v7211_v23 = vadd.f32 %v5338_v60, %v9065_v33  ;;  %v5484_v26 = vmax.f32 %v7145_v62, 0.0  ;;  %v5486_v32 = vmax.f32 %v7209_v59, 0.0 }
 0x462   :  { %v5487_v25 = vmax.f32 %v7146_v5, 0.0  ;;  %v5489_v21 = vmax.f32 %v7210_v7, 0.0 }
 0x463   :  { %v5488_v35 = vmax.f32 %v7147_v63, 0.0  ;;  %v5490_v15 = vmax.f32 %v7211_v23, 0.0 }
 0x464   :  { %v5595_v18 = vpack.c.bf16 %v5487_v25, %v5483_v45  ;;  %v5597_v8 = vpack.c.bf16 %v5489_v21, %v5485_v48 }
 0x465   :  { %v5596_v10 = vpack.c.bf16 %v5488_v35, %v5484_v26  ;;  %v5598_v4 = vpack.c.bf16 %v5490_v15, %v5486_v32  ;;  %v4956_v12 = vpop.f32.mrb[84].mxu0  ;;  %v5342_v9 = vpop.f32.mrb[84].mxu1 }
 0x466   :  { %v7148_v17 = vadd.f32 %v4956_v12, %v9053_v44  ;;  %v7212_v0 = vadd.f32 %v5342_v9, %v9057_v46  ;;  %v4958_v6 = vpop.f32.mrb[85].mxu0  ;;  %v5344_v20 = vpop.f32.mrb[85].mxu1 }
 0x467   :  { %v7149_v2 = vadd.f32 %v4958_v6, %v9061_v31  ;;  %v7213_v27 = vadd.f32 %v5344_v20, %v9065_v33  ;;  %v4960_v3 = vpop.f32.mrb[86].mxu0  ;;  %v5346_v28 = vpop.f32.mrb[86].mxu1  ;;  %5970 = vmatprep.mubr.bf16.mxu0 %v5596_v10  ;;  %6131 = vmatprep.mubr.bf16.mxu1 %v5598_v4 }
 0x468   :  { %v7150_v29 = vadd.f32 %v4960_v3, %v9053_v44  ;;  %v7214_v1 = vadd.f32 %v5346_v28, %v9057_v46  ;;  %v4962_v30 = vpop.f32.mrb[87].mxu0  ;;  %v5348_v37 = vpop.f32.mrb[87].mxu1  ;;  %5971 = vmatmul.mubr.bf16.gmra.mrb[144].mxu0 %v5595_v18  ;;  %6132 = vmatmul.mubr.bf16.gmra.mrb[144].mxu1 %v5597_v8  ;;  %v5491_v57 = vmax.f32 %v7148_v17, 0.0  ;;  %v5493_v40 = vmax.f32 %v7212_v0, 0.0 }
 0x469   :  { %v7151_v24 = vadd.f32 %v4962_v30, %v9061_v31  ;;  %v7215_v19 = vadd.f32 %v5348_v37, %v9065_v33  ;;  %v5492_v55 = vmax.f32 %v7149_v2, 0.0  ;;  %v5494_v38 = vmax.f32 %v7213_v27, 0.0 }
 0x46a   :  { %v5495_v39 = vmax.f32 %v7150_v29, 0.0  ;;  %v5497_v34 = vmax.f32 %v7214_v1, 0.0 }
 0x46b   :  { %v5496_v41 = vmax.f32 %v7151_v24, 0.0  ;;  %v5498_v42 = vmax.f32 %v7215_v19, 0.0 }
 0x46c   :  { %v5599_v43 = vpack.c.bf16 %v5495_v39, %v5491_v57  ;;  %v5601_v47 = vpack.c.bf16 %v5497_v34, %v5493_v40 }
 0x46d   :  { %v5600_v49 = vpack.c.bf16 %v5496_v41, %v5492_v55  ;;  %v5602_v50 = vpack.c.bf16 %v5498_v42, %v5494_v38  ;;  %v4966_v36 = vpop.f32.mrb[88].mxu0  ;;  %v5352_v13 = vpop.f32.mrb[88].mxu1 }
 0x46e   :  { %v7152_v51 = vadd.f32 %v4966_v36, %v9053_v44  ;;  %v7216_v52 = vadd.f32 %v5352_v13, %v9057_v46  ;;  %v4968_v53 = vpop.f32.mrb[89].mxu0  ;;  %v5354_v54 = vpop.f32.mrb[89].mxu1 }
 0x46f   :  { %v7153_v56 = vadd.f32 %v4968_v53, %v9061_v31  ;;  %v7217_v58 = vadd.f32 %v5354_v54, %v9065_v33  ;;  %v4970_v11 = vpop.f32.mrb[90].mxu0  ;;  %v5356_v61 = vpop.f32.mrb[90].mxu1  ;;  %5978 = vmatprep.mubr.bf16.mxu0 %v5600_v49  ;;  %6139 = vmatprep.mubr.bf16.mxu1 %v5602_v50 }
 0x470   :  { %v7154_v62 = vadd.f32 %v4970_v11, %v9053_v44  ;;  %v7218_v59 = vadd.f32 %v5356_v61, %v9057_v46  ;;  %v4972_v14 = vpop.f32.mrb[91].mxu0  ;;  %v5358_v16 = vpop.f32.mrb[91].mxu1  ;;  %5979 = vmatmul.mubr.bf16.gmra.mrb[148].mxu0 %v5599_v43  ;;  %6140 = vmatmul.mubr.bf16.gmra.mrb[148].mxu1 %v5601_v47  ;;  %v5499_v22 = vmax.f32 %v7152_v51, 0.0  ;;  %v5501_v60 = vmax.f32 %v7216_v52, 0.0 }
 0x471   :  { %v7155_v5 = vadd.f32 %v4972_v14, %v9061_v31  ;;  %v7219_v7 = vadd.f32 %v5358_v16, %v9065_v33  ;;  %v5500_v45 = vmax.f32 %v7153_v56, 0.0  ;;  %v5502_v48 = vmax.f32 %v7217_v58, 0.0 }
 0x472   :  { %v5503_v63 = vmax.f32 %v7154_v62, 0.0  ;;  %v5505_v23 = vmax.f32 %v7218_v59, 0.0 }
 0x473   :  { %v5504_v25 = vmax.f32 %v7155_v5, 0.0  ;;  %v5506_v21 = vmax.f32 %v7219_v7, 0.0 }
 0x474   :  { %v5603_v26 = vpack.c.bf16 %v5503_v63, %v5499_v22  ;;  %v5605_v32 = vpack.c.bf16 %v5505_v23, %v5501_v60 }
 0x475   :  { %v5604_v35 = vpack.c.bf16 %v5504_v25, %v5500_v45  ;;  %v5606_v15 = vpack.c.bf16 %v5506_v21, %v5502_v48  ;;  %v4976_v18 = vpop.f32.mrb[92].mxu0  ;;  %v5362_v8 = vpop.f32.mrb[92].mxu1 }
 0x476   :  { %v7156_v10 = vadd.f32 %v4976_v18, %v9053_v44  ;;  %v7220_v4 = vadd.f32 %v5362_v8, %v9057_v46  ;;  %v4978_v12 = vpop.f32.mrb[93].mxu0  ;;  %v5364_v9 = vpop.f32.mrb[93].mxu1 }
 0x477   :  { %v7157_v17 = vadd.f32 %v4978_v12, %v9061_v31  ;;  %v7221_v0 = vadd.f32 %v5364_v9, %v9065_v33  ;;  %v4980_v6 = vpop.f32.mrb[94].mxu0  ;;  %v5366_v20 = vpop.f32.mrb[94].mxu1  ;;  %5986 = vmatprep.mubr.bf16.mxu0 %v5604_v35  ;;  %6147 = vmatprep.mubr.bf16.mxu1 %v5606_v15 }
 0x478   :  { %v7158_v2 = vadd.f32 %v4980_v6, %v9053_v44  ;;  %v7222_v27 = vadd.f32 %v5366_v20, %v9057_v46  ;;  %v4982_v3 = vpop.f32.mrb[95].mxu0  ;;  %v5368_v28 = vpop.f32.mrb[95].mxu1  ;;  %5987 = vmatmul.mubr.bf16.gmra.mrb[152].mxu0 %v5603_v26  ;;  %6148 = vmatmul.mubr.bf16.gmra.mrb[152].mxu1 %v5605_v32  ;;  %v5507_v30 = vmax.f32 %v7156_v10, 0.0  ;;  %v5509_v37 = vmax.f32 %v7220_v4, 0.0 }
 0x479   :  { %v7159_v29 = vadd.f32 %v4982_v3, %v9061_v31  ;;  %v7223_v1 = vadd.f32 %v5368_v28, %v9065_v33  ;;  %v5508_v57 = vmax.f32 %v7157_v17, 0.0  ;;  %v5510_v40 = vmax.f32 %v7221_v0, 0.0 }
 0x47a   :  { %v5511_v24 = vmax.f32 %v7158_v2, 0.0  ;;  %v5513_v19 = vmax.f32 %v7222_v27, 0.0 }
 0x47b   :  { %v5512_v39 = vmax.f32 %v7159_v29, 0.0  ;;  %v5514_v34 = vmax.f32 %v7223_v1, 0.0 }
 0x47c   :  { %v5607_v55 = vpack.c.bf16 %v5511_v24, %v5507_v30  ;;  %v5609_v38 = vpack.c.bf16 %v5513_v19, %v5509_v37 }
 0x47d   :  { %v5608_v41 = vpack.c.bf16 %v5512_v39, %v5508_v57  ;;  %v5610_v42 = vpack.c.bf16 %v5514_v34, %v5510_v40  ;;  %v4986_v43 = vpop.f32.mrb[96].mxu0  ;;  %v5372_v47 = vpop.f32.mrb[96].mxu1 }
 0x47e   :  { %v7160_v49 = vadd.f32 %v4986_v43, %v9053_v44  ;;  %v7224_v50 = vadd.f32 %v5372_v47, %v9057_v46  ;;  %v4988_v36 = vpop.f32.mrb[97].mxu0  ;;  %v5374_v13 = vpop.f32.mrb[97].mxu1 }
 0x47f   :  { %v7161_v51 = vadd.f32 %v4988_v36, %v9061_v31  ;;  %v7225_v52 = vadd.f32 %v5374_v13, %v9065_v33  ;;  %v4990_v53 = vpop.f32.mrb[98].mxu0  ;;  %v5376_v54 = vpop.f32.mrb[98].mxu1  ;;  %5994 = vmatprep.mubr.bf16.mxu0 %v5608_v41  ;;  %6155 = vmatprep.mubr.bf16.mxu1 %v5610_v42 }
 0x480   :  { %v7162_v56 = vadd.f32 %v4990_v53, %v9053_v44  ;;  %v7226_v58 = vadd.f32 %v5376_v54, %v9057_v46  ;;  %v4992_v11 = vpop.f32.mrb[99].mxu0  ;;  %v5378_v61 = vpop.f32.mrb[99].mxu1  ;;  %5995 = vmatmul.mubr.bf16.gmra.mrb[156].mxu0 %v5607_v55  ;;  %6156 = vmatmul.mubr.bf16.gmra.mrb[156].mxu1 %v5609_v38  ;;  %v5515_v14 = vmax.f32 %v7160_v49, 0.0  ;;  %v5517_v16 = vmax.f32 %v7224_v50, 0.0 }
 0x481   :  { %v7163_v62 = vadd.f32 %v4992_v11, %v9061_v31  ;;  %v7227_v59 = vadd.f32 %v5378_v61, %v9065_v33  ;;  %v5516_v22 = vmax.f32 %v7161_v51, 0.0  ;;  %v5518_v60 = vmax.f32 %v7225_v52, 0.0 }
 0x482   :  { %v5519_v5 = vmax.f32 %v7162_v56, 0.0  ;;  %v5521_v7 = vmax.f32 %v7226_v58, 0.0 }
 0x483   :  { %v5520_v63 = vmax.f32 %v7163_v62, 0.0  ;;  %v5522_v23 = vmax.f32 %v7227_v59, 0.0 }
 0x484   :  { %v5611_v45 = vpack.c.bf16 %v5519_v5, %v5515_v14  ;;  %v5613_v48 = vpack.c.bf16 %v5521_v7, %v5517_v16 }
 0x485   :  { %v5612_v25 = vpack.c.bf16 %v5520_v63, %v5516_v22  ;;  %v5614_v21 = vpack.c.bf16 %v5522_v23, %v5518_v60  ;;  %v4996_v26 = vpop.f32.mrb[100].mxu0  ;;  %v5382_v32 = vpop.f32.mrb[100].mxu1 }
 0x486   :  { %v7164_v35 = vadd.f32 %v4996_v26, %v9053_v44  ;;  %v7228_v15 = vadd.f32 %v5382_v32, %v9057_v46  ;;  %v4998_v18 = vpop.f32.mrb[101].mxu0  ;;  %v5384_v8 = vpop.f32.mrb[101].mxu1 }
 0x487   :  { %v7165_v10 = vadd.f32 %v4998_v18, %v9061_v31  ;;  %v7229_v4 = vadd.f32 %v5384_v8, %v9065_v33  ;;  %v5000_v12 = vpop.f32.mrb[102].mxu0  ;;  %v5386_v9 = vpop.f32.mrb[102].mxu1  ;;  %6002 = vmatprep.mubr.bf16.mxu0 %v5612_v25  ;;  %6163 = vmatprep.mubr.bf16.mxu1 %v5614_v21 }
 0x488   :  { %v7166_v17 = vadd.f32 %v5000_v12, %v9053_v44  ;;  %v7230_v0 = vadd.f32 %v5386_v9, %v9057_v46  ;;  %v5002_v6 = vpop.f32.mrb[103].mxu0  ;;  %v5388_v20 = vpop.f32.mrb[103].mxu1  ;;  %6003 = vmatmul.mubr.bf16.gmra.mrb[160].mxu0 %v5611_v45  ;;  %6164 = vmatmul.mubr.bf16.gmra.mrb[160].mxu1 %v5613_v48  ;;  %v5523_v3 = vmax.f32 %v7164_v35, 0.0  ;;  %v5525_v28 = vmax.f32 %v7228_v15, 0.0 }
 0x489   :  { %v7167_v2 = vadd.f32 %v5002_v6, %v9061_v31  ;;  %v7231_v27 = vadd.f32 %v5388_v20, %v9065_v33  ;;  %v5524_v30 = vmax.f32 %v7165_v10, 0.0  ;;  %v5526_v37 = vmax.f32 %v7229_v4, 0.0 }
 0x48a   :  { %v5527_v29 = vmax.f32 %v7166_v17, 0.0  ;;  %v5529_v1 = vmax.f32 %v7230_v0, 0.0 }
 0x48b   :  { %v5528_v24 = vmax.f32 %v7167_v2, 0.0  ;;  %v5530_v19 = vmax.f32 %v7231_v27, 0.0 }
 0x48c   :  { %v5615_v57 = vpack.c.bf16 %v5527_v29, %v5523_v3  ;;  %v5617_v40 = vpack.c.bf16 %v5529_v1, %v5525_v28 }
 0x48d   :  { %v5616_v39 = vpack.c.bf16 %v5528_v24, %v5524_v30  ;;  %v5618_v34 = vpack.c.bf16 %v5530_v19, %v5526_v37  ;;  %v5006_v55 = vpop.f32.mrb[104].mxu0  ;;  %v5392_v38 = vpop.f32.mrb[104].mxu1 }
 0x48e   :  { %v7168_v41 = vadd.f32 %v5006_v55, %v9053_v44  ;;  %v7232_v42 = vadd.f32 %v5392_v38, %v9057_v46  ;;  %v5008_v43 = vpop.f32.mrb[105].mxu0  ;;  %v5394_v47 = vpop.f32.mrb[105].mxu1 }
 0x48f   :  { %v7169_v49 = vadd.f32 %v5008_v43, %v9061_v31  ;;  %v7233_v50 = vadd.f32 %v5394_v47, %v9065_v33  ;;  %v5010_v36 = vpop.f32.mrb[106].mxu0  ;;  %v5396_v13 = vpop.f32.mrb[106].mxu1  ;;  %6010 = vmatprep.mubr.bf16.mxu0 %v5616_v39  ;;  %6171 = vmatprep.mubr.bf16.mxu1 %v5618_v34 }
 0x490   :  { %v7170_v51 = vadd.f32 %v5010_v36, %v9053_v44  ;;  %v7234_v52 = vadd.f32 %v5396_v13, %v9057_v46  ;;  %v5012_v53 = vpop.f32.mrb[107].mxu0  ;;  %v5398_v54 = vpop.f32.mrb[107].mxu1  ;;  %6011 = vmatmul.mubr.bf16.gmra.mrb[164].mxu0 %v5615_v57  ;;  %6172 = vmatmul.mubr.bf16.gmra.mrb[164].mxu1 %v5617_v40  ;;  %v5531_v11 = vmax.f32 %v7168_v41, 0.0  ;;  %v5533_v61 = vmax.f32 %v7232_v42, 0.0 }
 0x491   :  { %v7171_v56 = vadd.f32 %v5012_v53, %v9061_v31  ;;  %v7235_v58 = vadd.f32 %v5398_v54, %v9065_v33  ;;  %v5532_v14 = vmax.f32 %v7169_v49, 0.0  ;;  %v5534_v16 = vmax.f32 %v7233_v50, 0.0 }
 0x492   :  { %v5535_v62 = vmax.f32 %v7170_v51, 0.0  ;;  %v5537_v59 = vmax.f32 %v7234_v52, 0.0 }
 0x493   :  { %v5536_v5 = vmax.f32 %v7171_v56, 0.0  ;;  %v5538_v7 = vmax.f32 %v7235_v58, 0.0 }
 0x494   :  { %v5619_v22 = vpack.c.bf16 %v5535_v62, %v5531_v11  ;;  %v5621_v60 = vpack.c.bf16 %v5537_v59, %v5533_v61 }
 0x495   :  { %v5620_v63 = vpack.c.bf16 %v5536_v5, %v5532_v14  ;;  %v5622_v23 = vpack.c.bf16 %v5538_v7, %v5534_v16  ;;  %v5016_v45 = vpop.f32.mrb[108].mxu0  ;;  %v5402_v48 = vpop.f32.mrb[108].mxu1 }
 0x496   :  { %v7172_v25 = vadd.f32 %v5016_v45, %v9053_v44  ;;  %v7236_v21 = vadd.f32 %v5402_v48, %v9057_v46  ;;  %v5018_v26 = vpop.f32.mrb[109].mxu0  ;;  %v5404_v32 = vpop.f32.mrb[109].mxu1 }
 0x497   :  { %v7173_v35 = vadd.f32 %v5018_v26, %v9061_v31  ;;  %v7237_v15 = vadd.f32 %v5404_v32, %v9065_v33  ;;  %v5020_v18 = vpop.f32.mrb[110].mxu0  ;;  %v5406_v8 = vpop.f32.mrb[110].mxu1  ;;  %6018 = vmatprep.mubr.bf16.mxu0 %v5620_v63  ;;  %6179 = vmatprep.mubr.bf16.mxu1 %v5622_v23 }
 0x498   :  { %v7174_v10 = vadd.f32 %v5020_v18, %v9053_v44  ;;  %v7238_v4 = vadd.f32 %v5406_v8, %v9057_v46  ;;  %v5022_v12 = vpop.f32.mrb[111].mxu0  ;;  %v5408_v9 = vpop.f32.mrb[111].mxu1  ;;  %6019 = vmatmul.mubr.bf16.gmra.mrb[168].mxu0 %v5619_v22  ;;  %6180 = vmatmul.mubr.bf16.gmra.mrb[168].mxu1 %v5621_v60  ;;  %v5539_v6 = vmax.f32 %v7172_v25, 0.0  ;;  %v5541_v20 = vmax.f32 %v7236_v21, 0.0 }
 0x499   :  { %v7175_v17 = vadd.f32 %v5022_v12, %v9061_v31  ;;  %v7239_v0 = vadd.f32 %v5408_v9, %v9065_v33  ;;  %v5540_v3 = vmax.f32 %v7173_v35, 0.0  ;;  %v5542_v28 = vmax.f32 %v7237_v15, 0.0 }
 0x49a   :  { %v5543_v2 = vmax.f32 %v7174_v10, 0.0  ;;  %v5545_v27 = vmax.f32 %v7238_v4, 0.0 }
 0x49b   :  { %v5544_v29 = vmax.f32 %v7175_v17, 0.0  ;;  %v5546_v1 = vmax.f32 %v7239_v0, 0.0 }
 0x49c   :  { %v5623_v30 = vpack.c.bf16 %v5543_v2, %v5539_v6  ;;  %v5625_v37 = vpack.c.bf16 %v5545_v27, %v5541_v20 }
 0x49d   :  { %v5624_v24 = vpack.c.bf16 %v5544_v29, %v5540_v3  ;;  %v5626_v19 = vpack.c.bf16 %v5546_v1, %v5542_v28  ;;  %v5026_v57 = vpop.f32.mrb[112].mxu0  ;;  %v5412_v40 = vpop.f32.mrb[112].mxu1 }
 0x49e   :  { %v7176_v39 = vadd.f32 %v5026_v57, %v9053_v44  ;;  %v7240_v34 = vadd.f32 %v5412_v40, %v9057_v46  ;;  %v5028_v55 = vpop.f32.mrb[113].mxu0  ;;  %v5414_v38 = vpop.f32.mrb[113].mxu1 }
 0x49f   :  { %v7177_v41 = vadd.f32 %v5028_v55, %v9061_v31  ;;  %v7241_v42 = vadd.f32 %v5414_v38, %v9065_v33  ;;  %v5030_v43 = vpop.f32.mrb[114].mxu0  ;;  %v5416_v47 = vpop.f32.mrb[114].mxu1  ;;  %6026 = vmatprep.mubr.bf16.mxu0 %v5624_v24  ;;  %6187 = vmatprep.mubr.bf16.mxu1 %v5626_v19 }
 0x4a0   :  { %v7178_v49 = vadd.f32 %v5030_v43, %v9053_v44  ;;  %v7242_v50 = vadd.f32 %v5416_v47, %v9057_v46  ;;  %v5032_v36 = vpop.f32.mrb[115].mxu0  ;;  %v5418_v13 = vpop.f32.mrb[115].mxu1  ;;  %6027 = vmatmul.mubr.bf16.gmra.mrb[172].mxu0 %v5623_v30  ;;  %6188 = vmatmul.mubr.bf16.gmra.mrb[172].mxu1 %v5625_v37  ;;  %v5547_v53 = vmax.f32 %v7176_v39, 0.0  ;;  %v5549_v54 = vmax.f32 %v7240_v34, 0.0 }
 0x4a1   :  { %v7179_v51 = vadd.f32 %v5032_v36, %v9061_v31  ;;  %v7243_v52 = vadd.f32 %v5418_v13, %v9065_v33  ;;  %v5548_v11 = vmax.f32 %v7177_v41, 0.0  ;;  %v5550_v61 = vmax.f32 %v7241_v42, 0.0 }
 0x4a2   :  { %v5551_v56 = vmax.f32 %v7178_v49, 0.0  ;;  %v5553_v58 = vmax.f32 %v7242_v50, 0.0 }
 0x4a3   :  { %v5552_v62 = vmax.f32 %v7179_v51, 0.0  ;;  %v5554_v59 = vmax.f32 %v7243_v52, 0.0 }
 0x4a4   :  { %v5627_v14 = vpack.c.bf16 %v5551_v56, %v5547_v53  ;;  %v5629_v16 = vpack.c.bf16 %v5553_v58, %v5549_v54 }
 0x4a5   :  { %v5628_v5 = vpack.c.bf16 %v5552_v62, %v5548_v11  ;;  %v5630_v7 = vpack.c.bf16 %v5554_v59, %v5550_v61  ;;  %v5036_v22 = vpop.f32.mrb[116].mxu0  ;;  %v5422_v60 = vpop.f32.mrb[116].mxu1 }
 0x4a6   :  { %v7180_v63 = vadd.f32 %v5036_v22, %v9053_v44  ;;  %v7244_v23 = vadd.f32 %v5422_v60, %v9057_v46  ;;  %v5038_v45 = vpop.f32.mrb[117].mxu0  ;;  %v5424_v48 = vpop.f32.mrb[117].mxu1 }
 0x4a7   :  { %v7181_v25 = vadd.f32 %v5038_v45, %v9061_v31  ;;  %v7245_v21 = vadd.f32 %v5424_v48, %v9065_v33  ;;  %v5040_v26 = vpop.f32.mrb[118].mxu0  ;;  %v5426_v32 = vpop.f32.mrb[118].mxu1  ;;  %6034 = vmatprep.mubr.bf16.mxu0 %v5628_v5  ;;  %6195 = vmatprep.mubr.bf16.mxu1 %v5630_v7 }
 0x4a8   :  { %v7182_v35 = vadd.f32 %v5040_v26, %v9053_v44  ;;  %v7246_v15 = vadd.f32 %v5426_v32, %v9057_v46  ;;  %v5042_v18 = vpop.f32.mrb[119].mxu0  ;;  %v5428_v8 = vpop.f32.mrb[119].mxu1  ;;  %6035 = vmatmul.mubr.bf16.gmra.mrb[176].mxu0 %v5627_v14  ;;  %6196 = vmatmul.mubr.bf16.gmra.mrb[176].mxu1 %v5629_v16  ;;  %v5555_v12 = vmax.f32 %v7180_v63, 0.0  ;;  %v5557_v9 = vmax.f32 %v7244_v23, 0.0 }
 0x4a9   :  { %v7183_v10 = vadd.f32 %v5042_v18, %v9061_v31  ;;  %v7247_v4 = vadd.f32 %v5428_v8, %v9065_v33  ;;  %v5556_v6 = vmax.f32 %v7181_v25, 0.0  ;;  %v5558_v20 = vmax.f32 %v7245_v21, 0.0 }
 0x4aa   :  { %v5559_v17 = vmax.f32 %v7182_v35, 0.0  ;;  %v5561_v0 = vmax.f32 %v7246_v15, 0.0 }
 0x4ab   :  { %v5560_v2 = vmax.f32 %v7183_v10, 0.0  ;;  %v5562_v27 = vmax.f32 %v7247_v4, 0.0 }
 0x4ac   :  { %v5631_v3 = vpack.c.bf16 %v5559_v17, %v5555_v12  ;;  %v5633_v28 = vpack.c.bf16 %v5561_v0, %v5557_v9 }
 0x4ad   :  { %v5632_v29 = vpack.c.bf16 %v5560_v2, %v5556_v6  ;;  %v5634_v1 = vpack.c.bf16 %v5562_v27, %v5558_v20  ;;  %v5046_v30 = vpop.f32.mrb[120].mxu0  ;;  %v5432_v37 = vpop.f32.mrb[120].mxu1 }
 0x4ae   :  { %v7184_v24 = vadd.f32 %v5046_v30, %v9053_v44  ;;  %v7248_v19 = vadd.f32 %v5432_v37, %v9057_v46  ;;  %v5048_v57 = vpop.f32.mrb[121].mxu0  ;;  %v5434_v40 = vpop.f32.mrb[121].mxu1 }
 0x4af   :  { %v7185_v39 = vadd.f32 %v5048_v57, %v9061_v31  ;;  %v7249_v34 = vadd.f32 %v5434_v40, %v9065_v33  ;;  %v5050_v55 = vpop.f32.mrb[122].mxu0  ;;  %v5436_v38 = vpop.f32.mrb[122].mxu1  ;;  %6042 = vmatprep.mubr.bf16.mxu0 %v5632_v29  ;;  %6203 = vmatprep.mubr.bf16.mxu1 %v5634_v1 }
 0x4b0   :  { %v7186_v41 = vadd.f32 %v5050_v55, %v9053_v44  ;;  %v7250_v42 = vadd.f32 %v5436_v38, %v9057_v46  ;;  %v5052_v43 = vpop.f32.mrb[123].mxu0  ;;  %v5438_v47 = vpop.f32.mrb[123].mxu1  ;;  %6043 = vmatmul.mubr.bf16.gmra.mrb[180].mxu0 %v5631_v3  ;;  %6204 = vmatmul.mubr.bf16.gmra.mrb[180].mxu1 %v5633_v28  ;;  %v5563_v36 = vmax.f32 %v7184_v24, 0.0  ;;  %v5565_v13 = vmax.f32 %v7248_v19, 0.0 }
 0x4b1   :  { %v7187_v49 = vadd.f32 %v5052_v43, %v9061_v31  ;;  %v7251_v50 = vadd.f32 %v5438_v47, %v9065_v33  ;;  %v5564_v53 = vmax.f32 %v7185_v39, 0.0  ;;  %v5566_v54 = vmax.f32 %v7249_v34, 0.0 }
 0x4b2   :  { %v5567_v51 = vmax.f32 %v7186_v41, 0.0  ;;  %v5569_v52 = vmax.f32 %v7250_v42, 0.0 }
 0x4b3   :  { %v5568_v56 = vmax.f32 %v7187_v49, 0.0  ;;  %v5570_v58 = vmax.f32 %v7251_v50, 0.0 }
 0x4b4   :  { %v5635_v11 = vpack.c.bf16 %v5567_v51, %v5563_v36  ;;  %v5637_v61 = vpack.c.bf16 %v5569_v52, %v5565_v13 }
 0x4b5   :  { %v5636_v62 = vpack.c.bf16 %v5568_v56, %v5564_v53  ;;  %v5638_v59 = vpack.c.bf16 %v5570_v58, %v5566_v54  ;;  %v5056_v14 = vpop.f32.mrb[124].mxu0  ;;  %v5442_v16 = vpop.f32.mrb[124].mxu1 }
 0x4b6   :  { %v7188_v5 = vadd.f32 %v5056_v14, %v9053_v44  ;;  %v7252_v7 = vadd.f32 %v5442_v16, %v9057_v46  ;;  %v5058_v22 = vpop.f32.mrb[125].mxu0  ;;  %v5444_v60 = vpop.f32.mrb[125].mxu1 }
 0x4b7   :  { %v7189_v63 = vadd.f32 %v5058_v22, %v9061_v31  ;;  %v7253_v23 = vadd.f32 %v5444_v60, %v9065_v33  ;;  %v5060_v45 = vpop.f32.mrb[126].mxu0  ;;  %v5446_v48 = vpop.f32.mrb[126].mxu1  ;;  %6050 = vmatprep.mubr.bf16.mxu0 %v5636_v62  ;;  %6211 = vmatprep.mubr.bf16.mxu1 %v5638_v59 }
 0x4b8   :  { %v7190_v25 = vadd.f32 %v5060_v45, %v9053_v44  ;;  %v7254_v21 = vadd.f32 %v5446_v48, %v9057_v46  ;;  %v5062_v26 = vpop.f32.mrb[127].mxu0  ;;  %v5448_v32 = vpop.f32.mrb[127].mxu1  ;;  %6051 = vmatmul.mubr.bf16.gmra.mrb[184].mxu0 %v5635_v11  ;;  %6212 = vmatmul.mubr.bf16.gmra.mrb[184].mxu1 %v5637_v61  ;;  %v5571_v18 = vmax.f32 %v7188_v5, 0.0  ;;  %v5573_v8 = vmax.f32 %v7252_v7, 0.0 }
 0x4b9   :  { %v7191_v35 = vadd.f32 %v5062_v26, %v9061_v31  ;;  %v7255_v15 = vadd.f32 %v5448_v32, %v9065_v33  ;;  %v5572_v12 = vmax.f32 %v7189_v63, 0.0  ;;  %v5574_v9 = vmax.f32 %v7253_v23, 0.0  ;;  %v9198_v33 = vld [vmem:[%s9250_s6] ss:$0 sm:$0xff]  ;;  %s8631_s6 = smov [#allocation10]  }
 0x4ba   :  { %v5575_v10 = vmax.f32 %v7190_v25, 0.0  ;;  %v5577_v4 = vmax.f32 %v7254_v21, 0.0  ;;  %s6265_s8 = sshll.u32 %s8631_s6, 4  ;;  %s6266_s8 = int_to_ptr.vmem [resolvable:$true] %s6265_s8 }
 0x4bb   :  { %v5576_v17 = vmax.f32 %v7191_v35, 0.0  ;;  %v5578_v0 = vmax.f32 %v7255_v15, 0.0  ;;  %s8590_s9 = scalar_lea.vmem %s6266_s8, 4096  ;;  %p8595_p5 = scmp.lt.s32.totalorder %s6266_s8, %s6266_s8 }
 0x4bc   :  { %v5639_v6 = vpack.c.bf16 %v5575_v10, %v5571_v18  ;;  %v5641_v44 = vpack.c.bf16 %v5577_v4, %v5573_v8  ;;  %p8591_p4 = scmp.ne.s32.totalorder %s6266_s8, %s8590_s9  ;;  %p8596_p6 = scmp.lt.s32.totalorder %s8590_s9, %s8590_s9 }
 0x4bd   :  { %v5640_v20 = vpack.c.bf16 %v5576_v17, %v5572_v12  ;;  %v5642_v46 = vpack.c.bf16 %v5578_v0, %v5574_v9 }
 0x4be   :  { %p8597_p7 = por %p8596_p6, %p8595_p5 }
 0x4bf   :  { %6058 = vmatprep.mubr.bf16.mxu0 %v5640_v20  ;;  %6219 = vmatprep.mubr.bf16.mxu1 %v5642_v46 }
 0x4c0   :  { %6059 = vmatmul.mubr.bf16.gmra.mrb[188].mxu0 %v5639_v6  ;;  %6220 = vmatmul.mubr.bf16.gmra.mrb[188].mxu1 %v5641_v44  ;;  %p8598_p8 = pnand %p8597_p7, %p8591_p4 }
 0x51b   :  { %v6792_v2 = vpop.f32.mrb[128].mxu0  ;;  %v6904_v31 = vpop.f32.mrb[128].mxu1 }
 0x51c   :  { %v6793_v27 = vpop.f32.mrb[129].mxu0  ;;  %v6905_v3 = vpop.f32.mrb[129].mxu1 }
 0x51d   :  { %v6794_v28 = vadd.f32 %v6793_v27, %v6792_v2  ;;  %v6906_v29 = vadd.f32 %v6905_v3, %v6904_v31  ;;  %v6795_v1 = vpop.f32.mrb[130].mxu0  ;;  %v6907_v30 = vpop.f32.mrb[130].mxu1 }
 0x51e   :  { %v6796_v37 = vpop.f32.mrb[131].mxu0  ;;  %v6908_v24 = vpop.f32.mrb[131].mxu1 }
 0x51f   :  { %v5941_v19 = vadd.f32 %v6794_v28, %v9198_v33  ;;  %v6797_v57 = vadd.f32 %v6796_v37, %v6795_v1  ;;  %v6909_v40 = vadd.f32 %v6908_v24, %v6907_v30 }
 0x521   :  { %v6102_v39 = vadd.f32 %v6906_v29, %v5941_v19  ;;  %v5944_v34 = vadd.f32 %v6797_v57, %v9198_v33 }
 0x523   :  { %6228 = vst [vmem:[#allocation10] sm:$0xff] %v6102_v39  ;;  %v6105_v55 = vadd.f32 %v6909_v40, %v5944_v34  ;;  %v6798_v38 = vpop.f32.mrb[132].mxu0  ;;  %v6910_v41 = vpop.f32.mrb[132].mxu1 }
 0x524   :  { %v6799_v42 = vpop.f32.mrb[133].mxu0  ;;  %v6911_v43 = vpop.f32.mrb[133].mxu1 }
 0x525   :  { %6229 = vst [vmem:[#allocation10 + $0x8] sm:$0xff] %v6105_v55  ;;  %v6800_v47 = vadd.f32 %v6799_v42, %v6798_v38  ;;  %v6912_v49 = vadd.f32 %v6911_v43, %v6910_v41  ;;  %v6801_v50 = vpop.f32.mrb[134].mxu0  ;;  %v6913_v36 = vpop.f32.mrb[134].mxu1 }
 0x526   :  { %v6802_v13 = vpop.f32.mrb[135].mxu0  ;;  %v6914_v51 = vpop.f32.mrb[135].mxu1 }
 0x527   :  { %v5949_v52 = vadd.f32 %v6800_v47, %v9198_v33  ;;  %v6803_v53 = vadd.f32 %v6802_v13, %v6801_v50  ;;  %v6915_v54 = vadd.f32 %v6914_v51, %v6913_v36 }
 0x529   :  { %v6110_v56 = vadd.f32 %v6912_v49, %v5949_v52  ;;  %v5952_v58 = vadd.f32 %v6803_v53, %v9198_v33 }
 0x52b   :  { %6230 = vst [vmem:[#allocation10 + $0x10] sm:$0xff] %v6110_v56  ;;  %v6113_v11 = vadd.f32 %v6915_v54, %v5952_v58  ;;  %v6804_v61 = vpop.f32.mrb[136].mxu0  ;;  %v6916_v62 = vpop.f32.mrb[136].mxu1 }
 0x52c   :  { %v6805_v59 = vpop.f32.mrb[137].mxu0  ;;  %v6917_v14 = vpop.f32.mrb[137].mxu1 }
 0x52d   :  { %6231 = vst [vmem:[#allocation10 + $0x18] sm:$0xff] %v6113_v11  ;;  %v6806_v16 = vadd.f32 %v6805_v59, %v6804_v61  ;;  %v6918_v5 = vadd.f32 %v6917_v14, %v6916_v62  ;;  %v6807_v7 = vpop.f32.mrb[138].mxu0  ;;  %v6919_v22 = vpop.f32.mrb[138].mxu1 }
 0x52e   :  { %v6808_v60 = vpop.f32.mrb[139].mxu0  ;;  %v6920_v63 = vpop.f32.mrb[139].mxu1 }
 0x52f   :  { %v5957_v23 = vadd.f32 %v6806_v16, %v9198_v33  ;;  %v6809_v45 = vadd.f32 %v6808_v60, %v6807_v7  ;;  %v6921_v48 = vadd.f32 %v6920_v63, %v6919_v22 }
 0x531   :  { %v6118_v25 = vadd.f32 %v6918_v5, %v5957_v23  ;;  %v5960_v21 = vadd.f32 %v6809_v45, %v9198_v33 }
 0x533   :  { %6232 = vst [vmem:[#allocation10 + $0x20] sm:$0xff] %v6118_v25  ;;  %v6121_v26 = vadd.f32 %v6921_v48, %v5960_v21  ;;  %v6810_v32 = vpop.f32.mrb[140].mxu0  ;;  %v6922_v35 = vpop.f32.mrb[140].mxu1 }
 0x534   :  { %v6811_v15 = vpop.f32.mrb[141].mxu0  ;;  %v6923_v18 = vpop.f32.mrb[141].mxu1 }
 0x535   :  { %6233 = vst [vmem:[#allocation10 + $0x28] sm:$0xff] %v6121_v26  ;;  %v6812_v8 = vadd.f32 %v6811_v15, %v6810_v32  ;;  %v6924_v10 = vadd.f32 %v6923_v18, %v6922_v35  ;;  %v6813_v4 = vpop.f32.mrb[142].mxu0  ;;  %v6925_v12 = vpop.f32.mrb[142].mxu1 }
 0x536   :  { %v6814_v9 = vpop.f32.mrb[143].mxu0  ;;  %v6926_v17 = vpop.f32.mrb[143].mxu1 }
 0x537   :  { %v5965_v0 = vadd.f32 %v6812_v8, %v9198_v33  ;;  %v6815_v6 = vadd.f32 %v6814_v9, %v6813_v4  ;;  %v6927_v44 = vadd.f32 %v6926_v17, %v6925_v12 }
 0x539   :  { %v6126_v20 = vadd.f32 %v6924_v10, %v5965_v0  ;;  %v5968_v46 = vadd.f32 %v6815_v6, %v9198_v33 }
 0x53b   :  { %6234 = vst [vmem:[#allocation10 + $0x30] sm:$0xff] %v6126_v20  ;;  %v6129_v2 = vadd.f32 %v6927_v44, %v5968_v46  ;;  %v6816_v31 = vpop.f32.mrb[144].mxu0  ;;  %v6928_v27 = vpop.f32.mrb[144].mxu1 }
 0x53c   :  { %v6817_v3 = vpop.f32.mrb[145].mxu0  ;;  %v6929_v28 = vpop.f32.mrb[145].mxu1 }
 0x53d   :  { %6235 = vst [vmem:[#allocation10 + $0x38] sm:$0xff] %v6129_v2  ;;  %v6818_v29 = vadd.f32 %v6817_v3, %v6816_v31  ;;  %v6930_v1 = vadd.f32 %v6929_v28, %v6928_v27  ;;  %v6819_v30 = vpop.f32.mrb[146].mxu0  ;;  %v6931_v37 = vpop.f32.mrb[146].mxu1 }
 0x53e   :  { %v6820_v24 = vpop.f32.mrb[147].mxu0  ;;  %v6932_v19 = vpop.f32.mrb[147].mxu1 }
 0x53f   :  { %v5973_v57 = vadd.f32 %v6818_v29, %v9198_v33  ;;  %v6821_v40 = vadd.f32 %v6820_v24, %v6819_v30  ;;  %v6933_v39 = vadd.f32 %v6932_v19, %v6931_v37 }
 0x541   :  { %v6134_v34 = vadd.f32 %v6930_v1, %v5973_v57  ;;  %v5976_v55 = vadd.f32 %v6821_v40, %v9198_v33 }
 0x543   :  { %6236 = vst [vmem:[#allocation10 + $0x40] sm:$0xff] %v6134_v34  ;;  %v6137_v38 = vadd.f32 %v6933_v39, %v5976_v55  ;;  %v6822_v41 = vpop.f32.mrb[148].mxu0  ;;  %v6934_v42 = vpop.f32.mrb[148].mxu1 }
 0x544   :  { %v6823_v43 = vpop.f32.mrb[149].mxu0  ;;  %v6935_v47 = vpop.f32.mrb[149].mxu1 }
 0x545   :  { %6237 = vst [vmem:[#allocation10 + $0x48] sm:$0xff] %v6137_v38  ;;  %v6824_v49 = vadd.f32 %v6823_v43, %v6822_v41  ;;  %v6936_v50 = vadd.f32 %v6935_v47, %v6934_v42  ;;  %v6825_v36 = vpop.f32.mrb[150].mxu0  ;;  %v6937_v13 = vpop.f32.mrb[150].mxu1 }
 0x546   :  { %v6826_v51 = vpop.f32.mrb[151].mxu0  ;;  %v6938_v52 = vpop.f32.mrb[151].mxu1 }
 0x547   :  { %v5981_v53 = vadd.f32 %v6824_v49, %v9198_v33  ;;  %v6827_v54 = vadd.f32 %v6826_v51, %v6825_v36  ;;  %v6939_v56 = vadd.f32 %v6938_v52, %v6937_v13 }
 0x549   :  { %v6142_v58 = vadd.f32 %v6936_v50, %v5981_v53  ;;  %v5984_v11 = vadd.f32 %v6827_v54, %v9198_v33 }
 0x54b   :  { %6238 = vst [vmem:[#allocation10 + $0x50] sm:$0xff] %v6142_v58  ;;  %v6145_v61 = vadd.f32 %v6939_v56, %v5984_v11  ;;  %v6828_v62 = vpop.f32.mrb[152].mxu0  ;;  %v6940_v59 = vpop.f32.mrb[152].mxu1 }
 0x54c   :  { %v6829_v14 = vpop.f32.mrb[153].mxu0  ;;  %v6941_v16 = vpop.f32.mrb[153].mxu1 }
 0x54d   :  { %6239 = vst [vmem:[#allocation10 + $0x58] sm:$0xff] %v6145_v61  ;;  %v6830_v5 = vadd.f32 %v6829_v14, %v6828_v62  ;;  %v6942_v7 = vadd.f32 %v6941_v16, %v6940_v59  ;;  %v6831_v22 = vpop.f32.mrb[154].mxu0  ;;  %v6943_v60 = vpop.f32.mrb[154].mxu1 }
 0x54e   :  { %v6832_v63 = vpop.f32.mrb[155].mxu0  ;;  %v6944_v23 = vpop.f32.mrb[155].mxu1 }
 0x54f   :  { %v5989_v45 = vadd.f32 %v6830_v5, %v9198_v33  ;;  %v6833_v48 = vadd.f32 %v6832_v63, %v6831_v22  ;;  %v6945_v25 = vadd.f32 %v6944_v23, %v6943_v60 }
 0x551   :  { %v6150_v21 = vadd.f32 %v6942_v7, %v5989_v45  ;;  %v5992_v26 = vadd.f32 %v6833_v48, %v9198_v33 }
 0x553   :  { %6240 = vst [vmem:[#allocation10 + $0x60] sm:$0xff] %v6150_v21  ;;  %v6153_v32 = vadd.f32 %v6945_v25, %v5992_v26  ;;  %v6834_v35 = vpop.f32.mrb[156].mxu0  ;;  %v6946_v15 = vpop.f32.mrb[156].mxu1 }
 0x554   :  { %v6835_v18 = vpop.f32.mrb[157].mxu0  ;;  %v6947_v8 = vpop.f32.mrb[157].mxu1 }
 0x555   :  { %6241 = vst [vmem:[#allocation10 + $0x68] sm:$0xff] %v6153_v32  ;;  %v6836_v10 = vadd.f32 %v6835_v18, %v6834_v35  ;;  %v6948_v4 = vadd.f32 %v6947_v8, %v6946_v15  ;;  %v6837_v12 = vpop.f32.mrb[158].mxu0  ;;  %v6949_v9 = vpop.f32.mrb[158].mxu1 }
 0x556   :  { %v6838_v17 = vpop.f32.mrb[159].mxu0  ;;  %v6950_v0 = vpop.f32.mrb[159].mxu1 }
 0x557   :  { %v5997_v6 = vadd.f32 %v6836_v10, %v9198_v33  ;;  %v6839_v44 = vadd.f32 %v6838_v17, %v6837_v12  ;;  %v6951_v20 = vadd.f32 %v6950_v0, %v6949_v9 }
 0x559   :  { %v6158_v46 = vadd.f32 %v6948_v4, %v5997_v6  ;;  %v6000_v2 = vadd.f32 %v6839_v44, %v9198_v33 }
 0x55b   :  { %6242 = vst [vmem:[#allocation10 + $0x70] sm:$0xff] %v6158_v46  ;;  %v6161_v31 = vadd.f32 %v6951_v20, %v6000_v2  ;;  %v6840_v27 = vpop.f32.mrb[160].mxu0  ;;  %v6952_v3 = vpop.f32.mrb[160].mxu1 }
 0x55c   :  { %v6841_v28 = vpop.f32.mrb[161].mxu0  ;;  %v6953_v29 = vpop.f32.mrb[161].mxu1 }
 0x55d   :  { %6243 = vst [vmem:[#allocation10 + $0x78] sm:$0xff] %v6161_v31  ;;  %v6842_v1 = vadd.f32 %v6841_v28, %v6840_v27  ;;  %v6954_v30 = vadd.f32 %v6953_v29, %v6952_v3  ;;  %v6843_v37 = vpop.f32.mrb[162].mxu0  ;;  %v6955_v24 = vpop.f32.mrb[162].mxu1 }
 0x55e   :  { %v6844_v19 = vpop.f32.mrb[163].mxu0  ;;  %v6956_v57 = vpop.f32.mrb[163].mxu1 }
 0x55f   :  { %v6005_v40 = vadd.f32 %v6842_v1, %v9198_v33  ;;  %v6845_v39 = vadd.f32 %v6844_v19, %v6843_v37  ;;  %v6957_v34 = vadd.f32 %v6956_v57, %v6955_v24 }
 0x561   :  { %v6166_v55 = vadd.f32 %v6954_v30, %v6005_v40  ;;  %v6008_v38 = vadd.f32 %v6845_v39, %v9198_v33 }
 0x563   :  { %6244 = vst [vmem:[#allocation10 + $0x80] sm:$0xff] %v6166_v55  ;;  %v6169_v41 = vadd.f32 %v6957_v34, %v6008_v38  ;;  %v6846_v42 = vpop.f32.mrb[164].mxu0  ;;  %v6958_v43 = vpop.f32.mrb[164].mxu1 }
 0x564   :  { %v6847_v47 = vpop.f32.mrb[165].mxu0  ;;  %v6959_v49 = vpop.f32.mrb[165].mxu1 }
 0x565   :  { %6245 = vst [vmem:[#allocation10 + $0x88] sm:$0xff] %v6169_v41  ;;  %v6848_v50 = vadd.f32 %v6847_v47, %v6846_v42  ;;  %v6960_v36 = vadd.f32 %v6959_v49, %v6958_v43  ;;  %v6849_v13 = vpop.f32.mrb[166].mxu0  ;;  %v6961_v51 = vpop.f32.mrb[166].mxu1 }
 0x566   :  { %v6850_v52 = vpop.f32.mrb[167].mxu0  ;;  %v6962_v53 = vpop.f32.mrb[167].mxu1 }
 0x567   :  { %v6013_v54 = vadd.f32 %v6848_v50, %v9198_v33  ;;  %v6851_v56 = vadd.f32 %v6850_v52, %v6849_v13  ;;  %v6963_v58 = vadd.f32 %v6962_v53, %v6961_v51 }
 0x569   :  { %v6174_v11 = vadd.f32 %v6960_v36, %v6013_v54  ;;  %v6016_v61 = vadd.f32 %v6851_v56, %v9198_v33 }
 0x56b   :  { %6246 = vst [vmem:[#allocation10 + $0x90] sm:$0xff] %v6174_v11  ;;  %v6177_v62 = vadd.f32 %v6963_v58, %v6016_v61  ;;  %v6852_v59 = vpop.f32.mrb[168].mxu0  ;;  %v6964_v14 = vpop.f32.mrb[168].mxu1 }
 0x56c   :  { %v6853_v16 = vpop.f32.mrb[169].mxu0  ;;  %v6965_v5 = vpop.f32.mrb[169].mxu1 }
 0x56d   :  { %6247 = vst [vmem:[#allocation10 + $0x98] sm:$0xff] %v6177_v62  ;;  %v6854_v7 = vadd.f32 %v6853_v16, %v6852_v59  ;;  %v6966_v22 = vadd.f32 %v6965_v5, %v6964_v14  ;;  %v6855_v60 = vpop.f32.mrb[170].mxu0  ;;  %v6967_v63 = vpop.f32.mrb[170].mxu1 }
 0x56e   :  { %v6856_v23 = vpop.f32.mrb[171].mxu0  ;;  %v6968_v45 = vpop.f32.mrb[171].mxu1 }
 0x56f   :  { %v6021_v48 = vadd.f32 %v6854_v7, %v9198_v33  ;;  %v6857_v25 = vadd.f32 %v6856_v23, %v6855_v60  ;;  %v6969_v21 = vadd.f32 %v6968_v45, %v6967_v63 }
 0x571   :  { %v6182_v26 = vadd.f32 %v6966_v22, %v6021_v48  ;;  %v6024_v32 = vadd.f32 %v6857_v25, %v9198_v33 }
 0x573   :  { %6248 = vst [vmem:[#allocation10 + $0xa0] sm:$0xff] %v6182_v26  ;;  %v6185_v35 = vadd.f32 %v6969_v21, %v6024_v32  ;;  %v6858_v15 = vpop.f32.mrb[172].mxu0  ;;  %v6970_v18 = vpop.f32.mrb[172].mxu1 }
 0x574   :  { %v6859_v8 = vpop.f32.mrb[173].mxu0  ;;  %v6971_v10 = vpop.f32.mrb[173].mxu1 }
 0x575   :  { %6249 = vst [vmem:[#allocation10 + $0xa8] sm:$0xff] %v6185_v35  ;;  %v6860_v4 = vadd.f32 %v6859_v8, %v6858_v15  ;;  %v6972_v12 = vadd.f32 %v6971_v10, %v6970_v18  ;;  %v6861_v9 = vpop.f32.mrb[174].mxu0  ;;  %v6973_v17 = vpop.f32.mrb[174].mxu1 }
 0x576   :  { %v6862_v0 = vpop.f32.mrb[175].mxu0  ;;  %v6974_v6 = vpop.f32.mrb[175].mxu1 }
 0x577   :  { %v6029_v44 = vadd.f32 %v6860_v4, %v9198_v33  ;;  %v6863_v20 = vadd.f32 %v6862_v0, %v6861_v9  ;;  %v6975_v46 = vadd.f32 %v6974_v6, %v6973_v17 }
 0x579   :  { %v6190_v2 = vadd.f32 %v6972_v12, %v6029_v44  ;;  %v6032_v31 = vadd.f32 %v6863_v20, %v9198_v33 }
 0x57b   :  { %6250 = vst [vmem:[#allocation10 + $0xb0] sm:$0xff] %v6190_v2  ;;  %v6193_v27 = vadd.f32 %v6975_v46, %v6032_v31  ;;  %v6864_v3 = vpop.f32.mrb[176].mxu0  ;;  %v6976_v28 = vpop.f32.mrb[176].mxu1 }
 0x57c   :  { %v6865_v29 = vpop.f32.mrb[177].mxu0  ;;  %v6977_v1 = vpop.f32.mrb[177].mxu1 }
 0x57d   :  { %6251 = vst [vmem:[#allocation10 + $0xb8] sm:$0xff] %v6193_v27  ;;  %v6866_v30 = vadd.f32 %v6865_v29, %v6864_v3  ;;  %v6978_v37 = vadd.f32 %v6977_v1, %v6976_v28  ;;  %v6867_v24 = vpop.f32.mrb[178].mxu0  ;;  %v6979_v19 = vpop.f32.mrb[178].mxu1 }
 0x57e   :  { %v6868_v57 = vpop.f32.mrb[179].mxu0  ;;  %v6980_v40 = vpop.f32.mrb[179].mxu1 }
 0x57f   :  { %v6037_v39 = vadd.f32 %v6866_v30, %v9198_v33  ;;  %v6869_v34 = vadd.f32 %v6868_v57, %v6867_v24  ;;  %v6981_v55 = vadd.f32 %v6980_v40, %v6979_v19 }
 0x581   :  { %v6198_v38 = vadd.f32 %v6978_v37, %v6037_v39  ;;  %v6040_v41 = vadd.f32 %v6869_v34, %v9198_v33 }
 0x583   :  { %6252 = vst [vmem:[#allocation10 + $0xc0] sm:$0xff] %v6198_v38  ;;  %v6201_v42 = vadd.f32 %v6981_v55, %v6040_v41  ;;  %v6870_v43 = vpop.f32.mrb[180].mxu0  ;;  %v6982_v47 = vpop.f32.mrb[180].mxu1 }
 0x584   :  { %v6871_v49 = vpop.f32.mrb[181].mxu0  ;;  %v6983_v50 = vpop.f32.mrb[181].mxu1 }
 0x585   :  { %6253 = vst [vmem:[#allocation10 + $0xc8] sm:$0xff] %v6201_v42  ;;  %v6872_v36 = vadd.f32 %v6871_v49, %v6870_v43  ;;  %v6984_v13 = vadd.f32 %v6983_v50, %v6982_v47  ;;  %v6873_v51 = vpop.f32.mrb[182].mxu0  ;;  %v6985_v52 = vpop.f32.mrb[182].mxu1 }
 0x586   :  { %v6874_v53 = vpop.f32.mrb[183].mxu0  ;;  %v6986_v54 = vpop.f32.mrb[183].mxu1 }
 0x587   :  { %v6045_v56 = vadd.f32 %v6872_v36, %v9198_v33  ;;  %v6875_v58 = vadd.f32 %v6874_v53, %v6873_v51  ;;  %v6987_v11 = vadd.f32 %v6986_v54, %v6985_v52 }
 0x589   :  { %v6206_v61 = vadd.f32 %v6984_v13, %v6045_v56  ;;  %v6048_v62 = vadd.f32 %v6875_v58, %v9198_v33 }
 0x58b   :  { %6254 = vst [vmem:[#allocation10 + $0xd0] sm:$0xff] %v6206_v61  ;;  %v6209_v59 = vadd.f32 %v6987_v11, %v6048_v62  ;;  %v6876_v14 = vpop.f32.mrb[184].mxu0  ;;  %v6988_v16 = vpop.f32.mrb[184].mxu1 }
 0x58c   :  { %v6877_v5 = vpop.f32.mrb[185].mxu0  ;;  %v6989_v7 = vpop.f32.mrb[185].mxu1 }
 0x58d   :  { %6255 = vst [vmem:[#allocation10 + $0xd8] sm:$0xff] %v6209_v59  ;;  %v6878_v22 = vadd.f32 %v6877_v5, %v6876_v14  ;;  %v6990_v60 = vadd.f32 %v6989_v7, %v6988_v16  ;;  %v6879_v63 = vpop.f32.mrb[186].mxu0  ;;  %v6991_v23 = vpop.f32.mrb[186].mxu1 }
 0x58e   :  { %v6880_v45 = vpop.f32.mrb[187].mxu0  ;;  %v6992_v48 = vpop.f32.mrb[187].mxu1 }
 0x58f   :  { %v6053_v25 = vadd.f32 %v6878_v22, %v9198_v33  ;;  %v6881_v21 = vadd.f32 %v6880_v45, %v6879_v63  ;;  %v6993_v26 = vadd.f32 %v6992_v48, %v6991_v23 }
 0x591   :  { %v6214_v32 = vadd.f32 %v6990_v60, %v6053_v25  ;;  %v6056_v35 = vadd.f32 %v6881_v21, %v9198_v33 }
 0x593   :  { %6256 = vst [vmem:[#allocation10 + $0xe0] sm:$0xff] %v6214_v32  ;;  %v6217_v15 = vadd.f32 %v6993_v26, %v6056_v35  ;;  %v6882_v18 = vpop.f32.mrb[188].mxu0  ;;  %v6994_v8 = vpop.f32.mrb[188].mxu1 }
 0x594   :  { %v6883_v10 = vpop.f32.mrb[189].mxu0  ;;  %v6995_v4 = vpop.f32.mrb[189].mxu1 }
 0x595   :  { %6257 = vst [vmem:[#allocation10 + $0xe8] sm:$0xff] %v6217_v15  ;;  %v6884_v12 = vadd.f32 %v6883_v10, %v6882_v18  ;;  %v6996_v9 = vadd.f32 %v6995_v4, %v6994_v8  ;;  %v6885_v17 = vpop.f32.mrb[190].mxu0  ;;  %v6997_v0 = vpop.f32.mrb[190].mxu1 }
 0x596   :  { %v6886_v6 = vpop.f32.mrb[191].mxu0  ;;  %v6998_v44 = vpop.f32.mrb[191].mxu1 }
 0x597   :  { %v6061_v20 = vadd.f32 %v6884_v12, %v9198_v33  ;;  %v6887_v46 = vadd.f32 %v6886_v6, %v6885_v17  ;;  %v6999_v2 = vadd.f32 %v6998_v44, %v6997_v0 }
 0x599   :  { %v6222_v31 = vadd.f32 %v6996_v9, %v6061_v20  ;;  %v6064_v27 = vadd.f32 %v6887_v46, %v9198_v33 }
 0x59b   :  { %6258 = vst [vmem:[#allocation10 + $0xf0] sm:$0xff] %v6222_v31  ;;  %v6225_v3 = vadd.f32 %v6999_v2, %v6064_v27 }
 0x59d   :  { %6259 = vst [vmem:[#allocation10 + $0xf8] sm:$0xff] %v6225_v3 }
 0x59e   :  { %8601 = shalt.err (!%p8598_p8)
}
 0x59f   :  { %s8602_s14 = scalar_lea.hbm %s9251_s7, 4096 }
 0x5a0   :  { %p8603_p9 = scmp.ne.s32.totalorder %s9251_s7, %s8602_s14  ;;  %p8606_p10 = scmp.lt.u32.totalorder %s8602_s14, %s9251_s7 }
 0x5a2   :  { %p8608_p11 = pnand %p8606_p10, %p8603_p9 }
 0x5a4   :  { %8611 = shalt.err (!%p8608_p11)
}
 0x5a5   :  { %s8632_s16 = smov 128   ;;  %s8633_s19 = smov 8  }
 0x5a6   :  { %6271 = dma.vmem_to_hbm [thread:$0]  %s6266_s8, 4096, %s9251_s7, [#allocation4], %s8632_s16, %s8632_s16, %s8633_s19  }
 0x5a7   :  { %8618 = dma.done.wait [#allocation4], 4096  }
 0x5a8   :  { %8619 = vsyncadd [#allocation4], 4294963200 }
 0x5a9   :  { %6275 = vsyncpa [#allocation3], 1 }
 0x5aa   :  { %6276 = vsyncpa [#allocation6], 1 }
 0x5ab   :  { %6277 = vsyncpa [#allocation9], 1 }
 0x5ac   :  { %6278 = vsyncpa [#allocation4], 1 }

</bundles_post_ra>
